<compile_context>
chip_gen: v7x
topology: tpu7x:2x2x1
jax: 0.10.0
libtpu: 0.0.40
codegen_flags: <defaults>
</compile_context>

<pallas_src>
import functools

import jax
import jax.numpy as jnp
from jax.experimental import pallas as pl
from jax.experimental.pallas import tpu as pltpu

EPS = 1e-5


# --------------------------------------------------------------------------
# In-kernel helpers
# --------------------------------------------------------------------------

def _sigmoid(x):
    return 1.0 / (1.0 + jnp.exp(-x))


def _lstm_cell(gates, c_prev, H):
    # PyTorch gate order (i, f, g, o).  The g-gate columns of W_ih/W_hh/bias
    # were pre-scaled by 2 at parameter-build time so a single sigmoid over
    # the full 4H lane width covers every gate: tanh(u) = 2*sigmoid(2u) - 1.
    sg = _sigmoid(gates)
    i_g = sg[:, 0:H]
    f_g = sg[:, H:2 * H]
    g_g = 2.0 * sg[:, 2 * H:3 * H] - 1.0
    o_g = sg[:, 3 * H:4 * H]
    c_new = f_g * c_prev + i_g * g_g
    h_new = o_g * jnp.tanh(c_new)
    return h_new, c_new


# --------------------------------------------------------------------------
# Fused Encoder kernel
# --------------------------------------------------------------------------

def _encoder_kernel(x_ref, mlT_ref, mrT_ref, mlT2_ref, mrT2_ref,
                    bn0s_ref, bn0t_ref,
                    w1_ref, s1_ref, t1_ref,
                    w2_ref, s2_ref, t2_ref,
                    w3_ref, s3_ref, t3_ref,
                    w4_ref, s4_ref, t4_ref,
                    wih1_ref, whh1_ref, b1_ref, s5_ref, t5_ref,
                    wih2_ref, whh2_ref, b2_ref,
                    hs2d_ref, hS_ref,
                    pool1_scr, pool2_scr, hc_scr, hs1_scr,
                    *, B, T, H1, H2):
    T2, T4 = T // 2, T // 4

    def conv3_bn_relu(h, w_ref, s_ref, t_ref, mL, mR):
        # Conv1d(k=3, stride=1, pad=1) with the following BatchNorm folded in.
        # The three taps are N-stacked in w_ref -> ONE MXU matmul; tap slabs
        # are time-aligned with non-negative sublane rolls.  Zeroing the
        # per-batch boundary rows (mL / mR) reproduces the zero padding.
        y3 = jnp.dot(h, w_ref[...], preferred_element_type=jnp.float32)
        n = y3.shape[0]
        c = y3.shape[1] // 3
        a0 = y3[:, 0:c]             # tap k=0 -> contributes at t+1 (needs h[t-1])
        a1 = y3[:, c:2 * c]         # tap k=1 -> h[t]
        a2 = y3[:, 2 * c:3 * c]     # tap k=2 -> contributes at t-1 (needs h[t+1])
        left = pltpu.roll(a0, shift=1, axis=0) * mL
        right = pltpu.roll(a2, shift=n - 1, axis=0) * mR   # == roll(-1), non-neg form
        y = (left + a1 + right) * s_ref[...] + t_ref[...]  # folded BN (+ conv bias)
        return jnp.maximum(y, 0.0)

    # ---------------- conv stack, batch-major rows r = b*T + t ----------------
    h = x_ref[...].astype(jnp.float32) * bn0s_ref[...] + bn0t_ref[...]   # bn0 (eval)

    mlT, mrT = mlT_ref[...], mrT_ref[...]
    h = conv3_bn_relu(h, w1_ref, s1_ref, t1_ref, mlT, mrT)     # (B*T,  64)
    h = conv3_bn_relu(h, w2_ref, s2_ref, t2_ref, mlT, mrT)     # (B*T,  64)

    # MaxPool1d(2): pairwise max of adjacent time rows, then even-row select.
    n1 = B * T
    pool1_scr[...] = jnp.maximum(h, pltpu.roll(h, shift=n1 - 1, axis=0))
    h = pool1_scr[pl.ds(0, B * T2, stride=2), :]               # (B*T2, 64)

    mlT2, mrT2 = mlT2_ref[...], mrT2_ref[...]
    h = conv3_bn_relu(h, w3_ref, s3_ref, t3_ref, mlT2, mrT2)   # (B*T2, 128)
    h = conv3_bn_relu(h, w4_ref, s4_ref, t4_ref, mlT2, mrT2)   # (B*T2, 128)

    # MaxPool1d(2) fused with the batch-major -> time-major gather the LSTMs
    # want (row r = t*B + b):  pooled_time_major[t, b] = m2[b*T2 + 2t].
    n2 = B * T2
    pool2_scr[...] = jnp.maximum(h, pltpu.roll(h, shift=n2 - 1, axis=0))
    for t in range(T4):
        hc_scr[pl.ds(t * B, B), :] = pool2_scr[pl.ds(2 * t, B, stride=T2), :]
    hc = hc_scr[...]                                           # (T4*B, 128) time-major

    # ---------------- LSTM1 (+ fused bn5 / eval-dropout / ReLU) ---------------
    # Time-invariant input projection hoisted out of the recurrence.
    gx1 = jnp.dot(hc, wih1_ref[...], preferred_element_type=jnp.float32) + b1_ref[...]
    whh1 = whh1_ref[...]
    s5, t5 = s5_ref[...], t5_ref[...]
    h1 = jnp.zeros((B, H1), jnp.float32)
    c1 = jnp.zeros((B, H1), jnp.float32)
    for t in range(T4):                     # static unroll; h/c stay in vregs
        gates = gx1[t * B:(t + 1) * B, :] + jnp.dot(
            h1, whh1, preferred_element_type=jnp.float32)
        h1, c1 = _lstm_cell(gates, c1, H1)
        hs1_scr[pl.ds(t * B, B), :] = jnp.maximum(h1 * s5 + t5, 0.0)
    hs1 = hs1_scr[...]                                         # (T4*B, H1)

    # ---------------- LSTM2 ----------------
    gx2 = jnp.dot(hs1, wih2_ref[...], preferred_element_type=jnp.float32) + b2_ref[...]
    whh2 = whh2_ref[...]
    h2 = jnp.zeros((B, H2), jnp.float32)
    c2 = jnp.zeros((B, H2), jnp.float32)
    for t in range(T4):
        gates = gx2[t * B:(t + 1) * B, :] + jnp.dot(
            h2, whh2, preferred_element_type=jnp.float32)
        h2, c2 = _lstm_cell(gates, c2, H2)
        hs2d_ref[pl.ds(t * B, B), :] = h2.astype(hs2d_ref.dtype)
    hS_ref[...] = h2.astype(hS_ref.dtype)


# --------------------------------------------------------------------------
# Parameter folding helpers (plain JAX glue, run once outside the kernel)
# --------------------------------------------------------------------------

def fold_bn(gamma, beta, rmean, rvar):
    scale = gamma / jnp.sqrt(rvar + EPS)
    shift = beta - rmean * scale
    return scale, shift


def make_conv_params(W, b, bn_gamma, bn_beta, bn_rm, bn_rv):
    """W: torch Conv1d weight (Cout, Cin, 3), b: (Cout,).  Folds the following
    BatchNorm (eval) and N-stacks the 3 taps into one (Cin, 3*Cout) weight."""
    W = jnp.asarray(W, jnp.float32)
    Wk = jnp.transpose(W, (2, 1, 0))                          # (3, Cin, Cout)
    Wstack = jnp.concatenate([Wk[0], Wk[1], Wk[2]], axis=1)   # (Cin, 3*Cout)
    s, t = fold_bn(bn_gamma, bn_beta, bn_rm, bn_rv)
    scale = s[None, :]                                        # (1, Cout)
    shift = (s * jnp.asarray(b, jnp.float32) + t)[None, :]    # (1, Cout)
    return Wstack, scale, shift


def make_lstm_params(w_ih, w_hh, b_ih, b_hh):
    """torch LSTM weights, gate order (i,f,g,o).  Transposes to (In,4H)/(H,4H),
    combines biases, and pre-scales the g-gate columns by 2 so the kernel can
    evaluate tanh via a single full-width sigmoid."""
    H = w_hh.shape[1]
    wih = jnp.asarray(w_ih, jnp.float32).T                    # (In, 4H)
    whh = jnp.asarray(w_hh, jnp.float32).T                    # (H, 4H)
    b = (jnp.asarray(b_ih, jnp.float32) + jnp.asarray(b_hh, jnp.float32))[None, :]
    g_scale = jnp.concatenate([jnp.ones((2 * H,), jnp.float32),
                               2.0 * jnp.ones((H,), jnp.float32),
                               jnp.ones((H,), jnp.float32)])[None, :]
    return wih * g_scale, whh * g_scale, b * g_scale


def _boundary_masks(B, T):
    """(B*T, 1) masks that zero the per-batch-element first / last time rows."""
    t_idx = jnp.arange(B * T, dtype=jnp.int32) % T
    mL = (t_idx != 0).astype(jnp.float32)[:, None]
    mR = (t_idx != T - 1).astype(jnp.float32)[:, None]
    return mL, mR


# --------------------------------------------------------------------------
# Full Encoder forward (single fused pallas_call)
# --------------------------------------------------------------------------

def encoder_forward(x, params):
    """x: (B, T, num_features) channels-last.  Returns (hs_bar, hS) matching
    the PyTorch module in eval mode: hs_bar (T//4, B, H2), hS (1, B, H2)."""
    B, T, Cin = x.shape
    assert T % 4 == 0, "conv stack needs T divisible by 4 (two MaxPool1d(2))"
    T2, T4 = T // 2, T // 4

    bn0s, bn0t = params['bn0']
    w1, s1, t1 = params['conv1']
    w2, s2, t2 = params['conv2']
    w3, s3, t3 = params['conv3']
    w4, s4, t4 = params['conv4']
    wih1, whh1, b1, s5, t5 = params['lstm1']
    wih2, whh2, b2 = params['lstm2']
    C2 = w2.shape[1] // 3
    C4 = w4.shape[1] // 3
    H1 = whh1.shape[0]
    H2 = whh2.shape[0]

    x2d = x.reshape(B * T, Cin).astype(jnp.float32)        # batch-major rows
    mlT, mrT = _boundary_masks(B, T)
    mlT2, mrT2 = _boundary_masks(B, T2)

    inputs = (x2d, mlT, mrT, mlT2, mrT2, bn0s, bn0t,
              w1, s1, t1, w2, s2, t2, w3, s3, t3, w4, s4, t4,
              wih1, whh1, b1, s5, t5, wih2, whh2, b2)

    def full_spec(a):
        nd = a.ndim
        return pl.BlockSpec(a.shape, lambda *_, _n=nd: (0,) * _n)

    kernel = functools.partial(_encoder_kernel, B=B, T=T, H1=H1, H2=H2)

    hs2d, h_last = pl.pallas_call(
        kernel,
        out_shape=(jax.ShapeDtypeStruct((T4 * B, H2), jnp.float32),
                   jax.ShapeDtypeStruct((B, H2), jnp.float32)),
        grid_spec=pltpu.PrefetchScalarGridSpec(
            num_scalar_prefetch=0,
            grid=(1,),
            in_specs=[full_spec(a) for a in inputs],
            out_specs=(pl.BlockSpec((T4 * B, H2), lambda i: (0, 0)),
                       pl.BlockSpec((B, H2), lambda i: (0, 0))),
            scratch_shapes=[pltpu.VMEM((B * T, C2), jnp.float32),
                            pltpu.VMEM((B * T2, C4), jnp.float32),
                            pltpu.VMEM((T4 * B, C4), jnp.float32),
                            pltpu.VMEM((T4 * B, H1), jnp.float32)],
        ),
        compiler_params=pltpu.CompilerParams(
            dimension_semantics=("arbitrary",)),
    )(*inputs)

    hs_bar = hs2d.reshape(T4, B, H2)       # time-major rows -> (T4, B, H2), free
    return hs_bar, h_last[None, ...]       # hS: (1, B, H2)


if __name__ == "__main__":
    # Small, module-consistent hyperparameters
    num_features = 4
    lstm1_size = 32
    lstm2_size = 32
    B, T = 2, 16

    x = jax.random.normal(jax.random.PRNGKey(0), (B, T, num_features),
                          dtype=jnp.float32)

    pkeys = iter(jax.random.split(jax.random.PRNGKey(1), 64))

    def normal(shape, std=0.1):
        return std * jax.random.normal(next(pkeys), shape, dtype=jnp.float32)

    def bn_stats(c):
        gamma = 1.0 + 0.1 * jax.random.normal(next(pkeys), (c,), jnp.float32)
        beta = 0.05 * jax.random.normal(next(pkeys), (c,), jnp.float32)
        rm = 0.1 * jax.random.normal(next(pkeys), (c,), jnp.float32)
        rv = 0.5 + jax.random.uniform(next(pkeys), (c,), jnp.float32)
        return gamma, beta, rm, rv

    params = {}

    # bn0 is applied in-kernel BEFORE the conv zero padding (torch semantics).
    s0, t0 = fold_bn(*bn_stats(num_features))
    params['bn0'] = (s0[None, :], t0[None, :])

    params['conv1'] = make_conv_params(normal((64, num_features, 3)),
                                       normal((64,)), *bn_stats(64))
    params['conv2'] = make_conv_params(normal((64, 64, 3)),
                                       normal((64,)), *bn_stats(64))
    params['conv3'] = make_conv_params(normal((128, 64, 3)),
                                       normal((128,)), *bn_stats(128))
    params['conv4'] = make_conv_params(normal((128, 128, 3)),
                                       normal((128,)), *bn_stats(128))

    # lstm1 (128 -> lstm1_size) with bn5 + eval-dropout + relu fused on output
    wih1, whh1, b1 = make_lstm_params(normal((4 * lstm1_size, 128)),
                                      normal((4 * lstm1_size, lstm1_size)),
                                      normal((4 * lstm1_size,)),
                                      normal((4 * lstm1_size,)))
    s5, t5 = fold_bn(*bn_stats(lstm1_size))
    params['lstm1'] = (wih1, whh1, b1, s5[None, :], t5[None, :])

    # lstm2 (lstm1_size -> lstm2_size)
    params['lstm2'] = make_lstm_params(normal((4 * lstm2_size, lstm1_size)),
                                       normal((4 * lstm2_size, lstm2_size)),
                                       normal((4 * lstm2_size,)),
                                       normal((4 * lstm2_size,)))

    hs_bar, hS = encoder_forward(x, params)
    jax.block_until_ready((hs_bar, hS))
    assert hs_bar.shape == (T // 4, B, lstm2_size)
    assert hS.shape == (1, B, lstm2_size)
    print("KERNEL_OK")
</pallas_src>

<mosaic_0001>
module attributes {stable_mosaic.version = 11 : i64} {
  func.func @_encoder_kernel(%arg0: i32, %arg1: memref<32x4xf32, #tpu.memory_space<vmem>>, %arg2: memref<32x1xf32, #tpu.memory_space<vmem>>, %arg3: memref<32x1xf32, #tpu.memory_space<vmem>>, %arg4: memref<16x1xf32, #tpu.memory_space<vmem>>, %arg5: memref<16x1xf32, #tpu.memory_space<vmem>>, %arg6: memref<1x4xf32, #tpu.memory_space<vmem>>, %arg7: memref<1x4xf32, #tpu.memory_space<vmem>>, %arg8: memref<4x192xf32, #tpu.memory_space<vmem>>, %arg9: memref<1x64xf32, #tpu.memory_space<vmem>>, %arg10: memref<1x64xf32, #tpu.memory_space<vmem>>, %arg11: memref<64x192xf32, #tpu.memory_space<vmem>>, %arg12: memref<1x64xf32, #tpu.memory_space<vmem>>, %arg13: memref<1x64xf32, #tpu.memory_space<vmem>>, %arg14: memref<64x384xf32, #tpu.memory_space<vmem>>, %arg15: memref<1x128xf32, #tpu.memory_space<vmem>>, %arg16: memref<1x128xf32, #tpu.memory_space<vmem>>, %arg17: memref<128x384xf32, #tpu.memory_space<vmem>>, %arg18: memref<1x128xf32, #tpu.memory_space<vmem>>, %arg19: memref<1x128xf32, #tpu.memory_space<vmem>>, %arg20: memref<128x128xf32, #tpu.memory_space<vmem>>, %arg21: memref<32x128xf32, #tpu.memory_space<vmem>>, %arg22: memref<1x128xf32, #tpu.memory_space<vmem>>, %arg23: memref<1x32xf32, #tpu.memory_space<vmem>>, %arg24: memref<1x32xf32, #tpu.memory_space<vmem>>, %arg25: memref<32x128xf32, #tpu.memory_space<vmem>>, %arg26: memref<32x128xf32, #tpu.memory_space<vmem>>, %arg27: memref<1x128xf32, #tpu.memory_space<vmem>>, %arg28: memref<8x32xf32, #tpu.memory_space<vmem>>, %arg29: memref<2x32xf32, #tpu.memory_space<vmem>>, %arg30: memref<32x64xf32, #tpu.memory_space<vmem>>, %arg31: memref<16x128xf32, #tpu.memory_space<vmem>>, %arg32: memref<8x128xf32, #tpu.memory_space<vmem>>, %arg33: memref<8x32xf32, #tpu.memory_space<vmem>>) attributes {dimension_semantics = [#tpu.dimension_semantics<arbitrary>], iteration_bounds = array<i64: 1>, scalar_prefetch = 0 : i64, scratch_operands = 4 : i64, tpu.core_type = #tpu.core_type<tc>, window_params = [{pipeline_mode = #tpu.pipeline_mode<synchronous>, transform_indices = @transform_0, window_bounds = array<i64: 32, 4>}, {pipeline_mode = #tpu.pipeline_mode<synchronous>, transform_indices = @transform_1, window_bounds = array<i64: 32, 1>}, {pipeline_mode = #tpu.pipeline_mode<synchronous>, transform_indices = @transform_2, window_bounds = array<i64: 32, 1>}, {pipeline_mode = #tpu.pipeline_mode<synchronous>, transform_indices = @transform_3, window_bounds = array<i64: 16, 1>}, {pipeline_mode = #tpu.pipeline_mode<synchronous>, transform_indices = @transform_4, window_bounds = array<i64: 16, 1>}, {pipeline_mode = #tpu.pipeline_mode<synchronous>, transform_indices = @transform_5, window_bounds = array<i64: 1, 4>}, {pipeline_mode = #tpu.pipeline_mode<synchronous>, transform_indices = @transform_6, window_bounds = array<i64: 1, 4>}, {pipeline_mode = #tpu.pipeline_mode<synchronous>, transform_indices = @transform_7, window_bounds = array<i64: 4, 192>}, {pipeline_mode = #tpu.pipeline_mode<synchronous>, transform_indices = @transform_8, window_bounds = array<i64: 1, 64>}, {pipeline_mode = #tpu.pipeline_mode<synchronous>, transform_indices = @transform_9, window_bounds = array<i64: 1, 64>}, {pipeline_mode = #tpu.pipeline_mode<synchronous>, transform_indices = @transform_10, window_bounds = array<i64: 64, 192>}, {pipeline_mode = #tpu.pipeline_mode<synchronous>, transform_indices = @transform_11, window_bounds = array<i64: 1, 64>}, {pipeline_mode = #tpu.pipeline_mode<synchronous>, transform_indices = @transform_12, window_bounds = array<i64: 1, 64>}, {pipeline_mode = #tpu.pipeline_mode<synchronous>, transform_indices = @transform_13, window_bounds = array<i64: 64, 384>}, {pipeline_mode = #tpu.pipeline_mode<synchronous>, transform_indices = @transform_14, window_bounds = array<i64: 1, 128>}, {pipeline_mode = #tpu.pipeline_mode<synchronous>, transform_indices = @transform_15, window_bounds = array<i64: 1, 128>}, {pipeline_mode = #tpu.pipeline_mode<synchronous>, transform_indices = @transform_16, window_bounds = array<i64: 128, 384>}, {pipeline_mode = #tpu.pipeline_mode<synchronous>, transform_indices = @transform_17, window_bounds = array<i64: 1, 128>}, {pipeline_mode = #tpu.pipeline_mode<synchronous>, transform_indices = @transform_18, window_bounds = array<i64: 1, 128>}, {pipeline_mode = #tpu.pipeline_mode<synchronous>, transform_indices = @transform_19, window_bounds = array<i64: 128, 128>}, {pipeline_mode = #tpu.pipeline_mode<synchronous>, transform_indices = @transform_20, window_bounds = array<i64: 32, 128>}, {pipeline_mode = #tpu.pipeline_mode<synchronous>, transform_indices = @transform_21, window_bounds = array<i64: 1, 128>}, {pipeline_mode = #tpu.pipeline_mode<synchronous>, transform_indices = @transform_22, window_bounds = array<i64: 1, 32>}, {pipeline_mode = #tpu.pipeline_mode<synchronous>, transform_indices = @transform_23, window_bounds = array<i64: 1, 32>}, {pipeline_mode = #tpu.pipeline_mode<synchronous>, transform_indices = @transform_24, window_bounds = array<i64: 32, 128>}, {pipeline_mode = #tpu.pipeline_mode<synchronous>, transform_indices = @transform_25, window_bounds = array<i64: 32, 128>}, {pipeline_mode = #tpu.pipeline_mode<synchronous>, transform_indices = @transform_26, window_bounds = array<i64: 1, 128>}, {pipeline_mode = #tpu.pipeline_mode<synchronous>, transform_indices = @transform_27, window_bounds = array<i64: 8, 32>}, {pipeline_mode = #tpu.pipeline_mode<synchronous>, transform_indices = @transform_28, window_bounds = array<i64: 2, 32>}]} {
    %c0 = arith.constant 0 : index
    %c0_0 = arith.constant 0 : index
    %0 = vector.load %arg1[%c0, %c0_0] : memref<32x4xf32, #tpu.memory_space<vmem>>, vector<32x4xf32>
    %c0_1 = arith.constant 0 : index
    %c0_2 = arith.constant 0 : index
    %1 = vector.load %arg6[%c0_1, %c0_2] : memref<1x4xf32, #tpu.memory_space<vmem>>, vector<1x4xf32>
    %2 = vector.broadcast %1 : vector<1x4xf32> to vector<32x4xf32>
    %3 = arith.mulf %0, %2 : vector<32x4xf32>
    %c0_3 = arith.constant 0 : index
    %c0_4 = arith.constant 0 : index
    %4 = vector.load %arg7[%c0_3, %c0_4] : memref<1x4xf32, #tpu.memory_space<vmem>>, vector<1x4xf32>
    %5 = vector.broadcast %4 : vector<1x4xf32> to vector<32x4xf32>
    %6 = arith.addf %3, %5 : vector<32x4xf32>
    %c0_5 = arith.constant 0 : index
    %c0_6 = arith.constant 0 : index
    %7 = vector.load %arg2[%c0_5, %c0_6] : memref<32x1xf32, #tpu.memory_space<vmem>>, vector<32x1xf32>
    %c0_7 = arith.constant 0 : index
    %c0_8 = arith.constant 0 : index
    %8 = vector.load %arg3[%c0_7, %c0_8] : memref<32x1xf32, #tpu.memory_space<vmem>>, vector<32x1xf32>
    %c0_9 = arith.constant 0 : index
    %c0_10 = arith.constant 0 : index
    %9 = vector.load %arg8[%c0_9, %c0_10] : memref<4x192xf32, #tpu.memory_space<vmem>>, vector<4x192xf32>
    %cst = arith.constant dense<0.000000e+00> : vector<32x192xf32>
    %10 = tpu.matmul %6, %9, %cst {dimension_numbers = #tpu.dot_dimension_numbers<[1], [0], [0], [1], [0, 0, 1, 1], [], []>} : vector<32x4xf32>, vector<4x192xf32>, vector<32x192xf32> -> vector<32x192xf32>
    %11 = vector.extract_strided_slice %10 {offsets = [0, 0], sizes = [32, 64], strides = [1, 1]} : vector<32x192xf32> to vector<32x64xf32>
    %12 = vector.extract_strided_slice %10 {offsets = [0, 64], sizes = [32, 64], strides = [1, 1]} : vector<32x192xf32> to vector<32x64xf32>
    %13 = vector.extract_strided_slice %10 {offsets = [0, 128], sizes = [32, 64], strides = [1, 1]} : vector<32x192xf32> to vector<32x64xf32>
    %c1_i32 = arith.constant 1 : i32
    %14 = tpu.dynamic_rotate %11 by %c1_i32 dim 0 : vector<32x64xf32>, i32 -> vector<32x64xf32>
    %15 = vector.broadcast %7 : vector<32x1xf32> to vector<32x64xf32>
    %16 = arith.mulf %14, %15 : vector<32x64xf32>
    %c31_i32 = arith.constant 31 : i32
    %17 = tpu.dynamic_rotate %13 by %c31_i32 dim 0 : vector<32x64xf32>, i32 -> vector<32x64xf32>
    %18 = vector.broadcast %8 : vector<32x1xf32> to vector<32x64xf32>
    %19 = arith.mulf %17, %18 : vector<32x64xf32>
    %20 = arith.addf %16, %12 : vector<32x64xf32>
    %21 = arith.addf %20, %19 : vector<32x64xf32>
    %c0_11 = arith.constant 0 : index
    %c0_12 = arith.constant 0 : index
    %22 = vector.load %arg9[%c0_11, %c0_12] : memref<1x64xf32, #tpu.memory_space<vmem>>, vector<1x64xf32>
    %23 = vector.broadcast %22 : vector<1x64xf32> to vector<32x64xf32>
    %24 = arith.mulf %21, %23 : vector<32x64xf32>
    %c0_13 = arith.constant 0 : index
    %c0_14 = arith.constant 0 : index
    %25 = vector.load %arg10[%c0_13, %c0_14] : memref<1x64xf32, #tpu.memory_space<vmem>>, vector<1x64xf32>
    %26 = vector.broadcast %25 : vector<1x64xf32> to vector<32x64xf32>
    %27 = arith.addf %24, %26 : vector<32x64xf32>
    %cst_15 = arith.constant 0.000000e+00 : f32
    %28 = vector.broadcast %cst_15 : f32 to vector<32x64xf32>
    %29 = arith.maximumf %27, %28 : vector<32x64xf32>
    %c0_16 = arith.constant 0 : index
    %c0_17 = arith.constant 0 : index
    %30 = vector.load %arg11[%c0_16, %c0_17] : memref<64x192xf32, #tpu.memory_space<vmem>>, vector<64x192xf32>
    %cst_18 = arith.constant dense<0.000000e+00> : vector<32x192xf32>
    %31 = tpu.matmul %29, %30, %cst_18 {dimension_numbers = #tpu.dot_dimension_numbers<[1], [0], [0], [1], [0, 0, 1, 1], [], []>} : vector<32x64xf32>, vector<64x192xf32>, vector<32x192xf32> -> vector<32x192xf32>
    %32 = vector.extract_strided_slice %31 {offsets = [0, 0], sizes = [32, 64], strides = [1, 1]} : vector<32x192xf32> to vector<32x64xf32>
    %33 = vector.extract_strided_slice %31 {offsets = [0, 64], sizes = [32, 64], strides = [1, 1]} : vector<32x192xf32> to vector<32x64xf32>
    %34 = vector.extract_strided_slice %31 {offsets = [0, 128], sizes = [32, 64], strides = [1, 1]} : vector<32x192xf32> to vector<32x64xf32>
    %c1_i32_19 = arith.constant 1 : i32
    %35 = tpu.dynamic_rotate %32 by %c1_i32_19 dim 0 : vector<32x64xf32>, i32 -> vector<32x64xf32>
    %36 = vector.broadcast %7 : vector<32x1xf32> to vector<32x64xf32>
    %37 = arith.mulf %35, %36 : vector<32x64xf32>
    %c31_i32_20 = arith.constant 31 : i32
    %38 = tpu.dynamic_rotate %34 by %c31_i32_20 dim 0 : vector<32x64xf32>, i32 -> vector<32x64xf32>
    %39 = vector.broadcast %8 : vector<32x1xf32> to vector<32x64xf32>
    %40 = arith.mulf %38, %39 : vector<32x64xf32>
    %41 = arith.addf %37, %33 : vector<32x64xf32>
    %42 = arith.addf %41, %40 : vector<32x64xf32>
    %c0_21 = arith.constant 0 : index
    %c0_22 = arith.constant 0 : index
    %43 = vector.load %arg12[%c0_21, %c0_22] : memref<1x64xf32, #tpu.memory_space<vmem>>, vector<1x64xf32>
    %44 = vector.broadcast %43 : vector<1x64xf32> to vector<32x64xf32>
    %45 = arith.mulf %42, %44 : vector<32x64xf32>
    %c0_23 = arith.constant 0 : index
    %c0_24 = arith.constant 0 : index
    %46 = vector.load %arg13[%c0_23, %c0_24] : memref<1x64xf32, #tpu.memory_space<vmem>>, vector<1x64xf32>
    %47 = vector.broadcast %46 : vector<1x64xf32> to vector<32x64xf32>
    %48 = arith.addf %45, %47 : vector<32x64xf32>
    %cst_25 = arith.constant 0.000000e+00 : f32
    %49 = vector.broadcast %cst_25 : f32 to vector<32x64xf32>
    %50 = arith.maximumf %48, %49 : vector<32x64xf32>
    %c31_i32_26 = arith.constant 31 : i32
    %51 = tpu.dynamic_rotate %50 by %c31_i32_26 dim 0 : vector<32x64xf32>, i32 -> vector<32x64xf32>
    %52 = arith.maximumf %50, %51 : vector<32x64xf32>
    %c0_27 = arith.constant 0 : index
    %c0_28 = arith.constant 0 : index
    %53 = vector.load %arg30[%c0_27, %c0_28] : memref<32x64xf32, #tpu.memory_space<vmem>>, vector<32x64xf32>
    tpu.vector_store %arg30[%c0_27, %c0_28], %52 {strides = array<i32>} : memref<32x64xf32, #tpu.memory_space<vmem>>, vector<32x64xf32>,
    %c0_29 = arith.constant 0 : index
    %c0_30 = arith.constant 0 : index
    %54 = tpu.strided_load %arg30[%c0_29, %c0_30] {strides = array<i32: 2, 1>} : memref<32x64xf32, #tpu.memory_space<vmem>>, vector<16x64xf32>
    %c0_31 = arith.constant 0 : index
    %c0_32 = arith.constant 0 : index
    %55 = vector.load %arg4[%c0_31, %c0_32] : memref<16x1xf32, #tpu.memory_space<vmem>>, vector<16x1xf32>
    %c0_33 = arith.constant 0 : index
    %c0_34 = arith.constant 0 : index
    %56 = vector.load %arg5[%c0_33, %c0_34] : memref<16x1xf32, #tpu.memory_space<vmem>>, vector<16x1xf32>
    %c0_35 = arith.constant 0 : index
    %c0_36 = arith.constant 0 : index
    %57 = vector.load %arg14[%c0_35, %c0_36] : memref<64x384xf32, #tpu.memory_space<vmem>>, vector<64x384xf32>
    %cst_37 = arith.constant dense<0.000000e+00> : vector<16x384xf32>
    %58 = tpu.matmul %54, %57, %cst_37 {dimension_numbers = #tpu.dot_dimension_numbers<[1], [0], [0], [1], [0, 0, 1, 1], [], []>} : vector<16x64xf32>, vector<64x384xf32>, vector<16x384xf32> -> vector<16x384xf32>
    %59 = vector.extract_strided_slice %58 {offsets = [0, 0], sizes = [16, 128], strides = [1, 1]} : vector<16x384xf32> to vector<16x128xf32>
    %60 = vector.extract_strided_slice %58 {offsets = [0, 128], sizes = [16, 128], strides = [1, 1]} : vector<16x384xf32> to vector<16x128xf32>
    %61 = vector.extract_strided_slice %58 {offsets = [0, 256], sizes = [16, 128], strides = [1, 1]} : vector<16x384xf32> to vector<16x128xf32>
    %c1_i32_38 = arith.constant 1 : i32
    %62 = tpu.dynamic_rotate %59 by %c1_i32_38 dim 0 : vector<16x128xf32>, i32 -> vector<16x128xf32>
    %63 = vector.broadcast %55 : vector<16x1xf32> to vector<16x128xf32>
    %64 = arith.mulf %62, %63 : vector<16x128xf32>
    %c15_i32 = arith.constant 15 : i32
    %65 = tpu.dynamic_rotate %61 by %c15_i32 dim 0 : vector<16x128xf32>, i32 -> vector<16x128xf32>
    %66 = vector.broadcast %56 : vector<16x1xf32> to vector<16x128xf32>
    %67 = arith.mulf %65, %66 : vector<16x128xf32>
    %68 = arith.addf %64, %60 : vector<16x128xf32>
    %69 = arith.addf %68, %67 : vector<16x128xf32>
    %c0_39 = arith.constant 0 : index
    %c0_40 = arith.constant 0 : index
    %70 = vector.load %arg15[%c0_39, %c0_40] : memref<1x128xf32, #tpu.memory_space<vmem>>, vector<1x128xf32>
    %71 = vector.broadcast %70 : vector<1x128xf32> to vector<16x128xf32>
    %72 = arith.mulf %69, %71 : vector<16x128xf32>
    %c0_41 = arith.constant 0 : index
    %c0_42 = arith.constant 0 : index
    %73 = vector.load %arg16[%c0_41, %c0_42] : memref<1x128xf32, #tpu.memory_space<vmem>>, vector<1x128xf32>
    %74 = vector.broadcast %73 : vector<1x128xf32> to vector<16x128xf32>
    %75 = arith.addf %72, %74 : vector<16x128xf32>
    %cst_43 = arith.constant 0.000000e+00 : f32
    %76 = vector.broadcast %cst_43 : f32 to vector<16x128xf32>
    %77 = arith.maximumf %75, %76 : vector<16x128xf32>
    %c0_44 = arith.constant 0 : index
    %c0_45 = arith.constant 0 : index
    %78 = vector.load %arg17[%c0_44, %c0_45] : memref<128x384xf32, #tpu.memory_space<vmem>>, vector<128x384xf32>
    %cst_46 = arith.constant dense<0.000000e+00> : vector<16x384xf32>
    %79 = tpu.matmul %77, %78, %cst_46 {dimension_numbers = #tpu.dot_dimension_numbers<[1], [0], [0], [1], [0, 0, 1, 1], [], []>} : vector<16x128xf32>, vector<128x384xf32>, vector<16x384xf32> -> vector<16x384xf32>
    %80 = vector.extract_strided_slice %79 {offsets = [0, 0], sizes = [16, 128], strides = [1, 1]} : vector<16x384xf32> to vector<16x128xf32>
    %81 = vector.extract_strided_slice %79 {offsets = [0, 128], sizes = [16, 128], strides = [1, 1]} : vector<16x384xf32> to vector<16x128xf32>
    %82 = vector.extract_strided_slice %79 {offsets = [0, 256], sizes = [16, 128], strides = [1, 1]} : vector<16x384xf32> to vector<16x128xf32>
    %c1_i32_47 = arith.constant 1 : i32
    %83 = tpu.dynamic_rotate %80 by %c1_i32_47 dim 0 : vector<16x128xf32>, i32 -> vector<16x128xf32>
    %84 = vector.broadcast %55 : vector<16x1xf32> to vector<16x128xf32>
    %85 = arith.mulf %83, %84 : vector<16x128xf32>
    %c15_i32_48 = arith.constant 15 : i32
    %86 = tpu.dynamic_rotate %82 by %c15_i32_48 dim 0 : vector<16x128xf32>, i32 -> vector<16x128xf32>
    %87 = vector.broadcast %56 : vector<16x1xf32> to vector<16x128xf32>
    %88 = arith.mulf %86, %87 : vector<16x128xf32>
    %89 = arith.addf %85, %81 : vector<16x128xf32>
    %90 = arith.addf %89, %88 : vector<16x128xf32>
    %c0_49 = arith.constant 0 : index
    %c0_50 = arith.constant 0 : index
    %91 = vector.load %arg18[%c0_49, %c0_50] : memref<1x128xf32, #tpu.memory_space<vmem>>, vector<1x128xf32>
    %92 = vector.broadcast %91 : vector<1x128xf32> to vector<16x128xf32>
    %93 = arith.mulf %90, %92 : vector<16x128xf32>
    %c0_51 = arith.constant 0 : index
    %c0_52 = arith.constant 0 : index
    %94 = vector.load %arg19[%c0_51, %c0_52] : memref<1x128xf32, #tpu.memory_space<vmem>>, vector<1x128xf32>
    %95 = vector.broadcast %94 : vector<1x128xf32> to vector<16x128xf32>
    %96 = arith.addf %93, %95 : vector<16x128xf32>
    %cst_53 = arith.constant 0.000000e+00 : f32
    %97 = vector.broadcast %cst_53 : f32 to vector<16x128xf32>
    %98 = arith.maximumf %96, %97 : vector<16x128xf32>
    %c15_i32_54 = arith.constant 15 : i32
    %99 = tpu.dynamic_rotate %98 by %c15_i32_54 dim 0 : vector<16x128xf32>, i32 -> vector<16x128xf32>
    %100 = arith.maximumf %98, %99 : vector<16x128xf32>
    %c0_55 = arith.constant 0 : index
    %c0_56 = arith.constant 0 : index
    %101 = vector.load %arg31[%c0_55, %c0_56] : memref<16x128xf32, #tpu.memory_space<vmem>>, vector<16x128xf32>
    tpu.vector_store %arg31[%c0_55, %c0_56], %100 {strides = array<i32>} : memref<16x128xf32, #tpu.memory_space<vmem>>, vector<16x128xf32>,
    %c0_57 = arith.constant 0 : index
    %c0_58 = arith.constant 0 : index
    %102 = tpu.strided_load %arg31[%c0_57, %c0_58] {strides = array<i32: 8, 1>} : memref<16x128xf32, #tpu.memory_space<vmem>>, vector<2x128xf32>
    %c0_59 = arith.constant 0 : index
    %c0_60 = arith.constant 0 : index
    %103 = vector.load %arg32[%c0_59, %c0_60] : memref<8x128xf32, #tpu.memory_space<vmem>>, vector<2x128xf32>
    tpu.vector_store %arg32[%c0_59, %c0_60], %102 {strides = array<i32>} : memref<8x128xf32, #tpu.memory_space<vmem>>, vector<2x128xf32>,
    %c2 = arith.constant 2 : index
    %c0_61 = arith.constant 0 : index
    %104 = tpu.strided_load %arg31[%c2, %c0_61] {strides = array<i32: 8, 1>} : memref<16x128xf32, #tpu.memory_space<vmem>>, vector<2x128xf32>
    %c2_62 = arith.constant 2 : index
    %c0_63 = arith.constant 0 : index
    %105 = vector.load %arg32[%c2_62, %c0_63] : memref<8x128xf32, #tpu.memory_space<vmem>>, vector<2x128xf32>
    tpu.vector_store %arg32[%c2_62, %c0_63], %104 {strides = array<i32>} : memref<8x128xf32, #tpu.memory_space<vmem>>, vector<2x128xf32>,
    %c4 = arith.constant 4 : index
    %c0_64 = arith.constant 0 : index
    %106 = tpu.strided_load %arg31[%c4, %c0_64] {strides = array<i32: 8, 1>} : memref<16x128xf32, #tpu.memory_space<vmem>>, vector<2x128xf32>
    %c4_65 = arith.constant 4 : index
    %c0_66 = arith.constant 0 : index
    %107 = vector.load %arg32[%c4_65, %c0_66] : memref<8x128xf32, #tpu.memory_space<vmem>>, vector<2x128xf32>
    tpu.vector_store %arg32[%c4_65, %c0_66], %106 {strides = array<i32>} : memref<8x128xf32, #tpu.memory_space<vmem>>, vector<2x128xf32>,
    %c6 = arith.constant 6 : index
    %c0_67 = arith.constant 0 : index
    %108 = tpu.strided_load %arg31[%c6, %c0_67] {strides = array<i32: 8, 1>} : memref<16x128xf32, #tpu.memory_space<vmem>>, vector<2x128xf32>
    %c6_68 = arith.constant 6 : index
    %c0_69 = arith.constant 0 : index
    %109 = vector.load %arg32[%c6_68, %c0_69] : memref<8x128xf32, #tpu.memory_space<vmem>>, vector<2x128xf32>
    tpu.vector_store %arg32[%c6_68, %c0_69], %108 {strides = array<i32>} : memref<8x128xf32, #tpu.memory_space<vmem>>, vector<2x128xf32>,
    %c0_70 = arith.constant 0 : index
    %c0_71 = arith.constant 0 : index
    %110 = vector.load %arg32[%c0_70, %c0_71] : memref<8x128xf32, #tpu.memory_space<vmem>>, vector<8x128xf32>
    %c0_72 = arith.constant 0 : index
    %c0_73 = arith.constant 0 : index
    %111 = vector.load %arg20[%c0_72, %c0_73] : memref<128x128xf32, #tpu.memory_space<vmem>>, vector<128x128xf32>
    %cst_74 = arith.constant dense<0.000000e+00> : vector<8x128xf32>
    %112 = tpu.matmul %110, %111, %cst_74 {dimension_numbers = #tpu.dot_dimension_numbers<[1], [0], [0], [1], [0, 0, 1, 1], [], []>} : vector<8x128xf32>, vector<128x128xf32>, vector<8x128xf32> -> vector<8x128xf32>
    %c0_75 = arith.constant 0 : index
    %c0_76 = arith.constant 0 : index
    %113 = vector.load %arg22[%c0_75, %c0_76] : memref<1x128xf32, #tpu.memory_space<vmem>>, vector<1x128xf32>
    %114 = vector.broadcast %113 : vector<1x128xf32> to vector<8x128xf32>
    %115 = arith.addf %112, %114 : vector<8x128xf32>
    %c0_77 = arith.constant 0 : index
    %c0_78 = arith.constant 0 : index
    %116 = vector.load %arg21[%c0_77, %c0_78] : memref<32x128xf32, #tpu.memory_space<vmem>>, vector<32x128xf32>
    %c0_79 = arith.constant 0 : index
    %c0_80 = arith.constant 0 : index
    %117 = vector.load %arg23[%c0_79, %c0_80] : memref<1x32xf32, #tpu.memory_space<vmem>>, vector<1x32xf32>
    %c0_81 = arith.constant 0 : index
    %c0_82 = arith.constant 0 : index
    %118 = vector.load %arg24[%c0_81, %c0_82] : memref<1x32xf32, #tpu.memory_space<vmem>>, vector<1x32xf32>
    %cst_83 = arith.constant 0.000000e+00 : f32
    %119 = vector.broadcast %cst_83 : f32 to vector<2x32xf32>
    %cst_84 = arith.constant 0.000000e+00 : f32
    %120 = vector.broadcast %cst_84 : f32 to vector<2x32xf32>
    %121 = vector.extract_strided_slice %115 {offsets = [0, 0], sizes = [2, 128], strides = [1, 1]} : vector<8x128xf32> to vector<2x128xf32>
    %cst_85 = arith.constant dense<0.000000e+00> : vector<2x128xf32>
    %122 = tpu.matmul %119, %116, %cst_85 {dimension_numbers = #tpu.dot_dimension_numbers<[1], [0], [0], [1], [0, 0, 1, 1], [], []>} : vector<2x32xf32>, vector<32x128xf32>, vector<2x128xf32> -> vector<2x128xf32>
    %123 = arith.addf %121, %122 : vector<2x128xf32>
    %cst_86 = arith.constant 0.000000e+00 : f32
    %124 = vector.broadcast %cst_86 : f32 to vector<2x128xf32>
    %125 = arith.subf %124, %123 : vector<2x128xf32>
    %126 = math.exp %125 : vector<2x128xf32>
    %cst_87 = arith.constant 1.000000e+00 : f32
    %127 = vector.broadcast %cst_87 : f32 to vector<2x128xf32>
    %128 = arith.addf %127, %126 : vector<2x128xf32>
    %cst_88 = arith.constant 1.000000e+00 : f32
    %129 = vector.broadcast %cst_88 : f32 to vector<2x128xf32>
    %130 = arith.divf %129, %128 : vector<2x128xf32>
    %131 = vector.extract_strided_slice %130 {offsets = [0, 0], sizes = [2, 32], strides = [1, 1]} : vector<2x128xf32> to vector<2x32xf32>
    %132 = vector.extract_strided_slice %130 {offsets = [0, 32], sizes = [2, 32], strides = [1, 1]} : vector<2x128xf32> to vector<2x32xf32>
    %133 = vector.extract_strided_slice %130 {offsets = [0, 64], sizes = [2, 32], strides = [1, 1]} : vector<2x128xf32> to vector<2x32xf32>
    %cst_89 = arith.constant 2.000000e+00 : f32
    %134 = vector.broadcast %cst_89 : f32 to vector<2x32xf32>
    %135 = arith.mulf %134, %133 : vector<2x32xf32>
    %cst_90 = arith.constant 1.000000e+00 : f32
    %136 = vector.broadcast %cst_90 : f32 to vector<2x32xf32>
    %137 = arith.subf %135, %136 : vector<2x32xf32>
    %138 = vector.extract_strided_slice %130 {offsets = [0, 96], sizes = [2, 32], strides = [1, 1]} : vector<2x128xf32> to vector<2x32xf32>
    %139 = arith.mulf %132, %120 : vector<2x32xf32>
    %140 = arith.mulf %131, %137 : vector<2x32xf32>
    %141 = arith.addf %139, %140 : vector<2x32xf32>
    %142 = math.tanh %141 : vector<2x32xf32>
    %143 = arith.mulf %138, %142 : vector<2x32xf32>
    %144 = vector.broadcast %117 : vector<1x32xf32> to vector<2x32xf32>
    %145 = arith.mulf %143, %144 : vector<2x32xf32>
    %146 = vector.broadcast %118 : vector<1x32xf32> to vector<2x32xf32>
    %147 = arith.addf %145, %146 : vector<2x32xf32>
    %cst_91 = arith.constant 0.000000e+00 : f32
    %148 = vector.broadcast %cst_91 : f32 to vector<2x32xf32>
    %149 = arith.maximumf %147, %148 : vector<2x32xf32>
    %c0_92 = arith.constant 0 : index
    %c0_93 = arith.constant 0 : index
    %150 = vector.load %arg33[%c0_92, %c0_93] : memref<8x32xf32, #tpu.memory_space<vmem>>, vector<2x32xf32>
    tpu.vector_store %arg33[%c0_92, %c0_93], %149 {strides = array<i32>} : memref<8x32xf32, #tpu.memory_space<vmem>>, vector<2x32xf32>,
    %151 = vector.extract_strided_slice %115 {offsets = [2, 0], sizes = [2, 128], strides = [1, 1]} : vector<8x128xf32> to vector<2x128xf32>
    %cst_94 = arith.constant dense<0.000000e+00> : vector<2x128xf32>
    %152 = tpu.matmul %143, %116, %cst_94 {dimension_numbers = #tpu.dot_dimension_numbers<[1], [0], [0], [1], [0, 0, 1, 1], [], []>} : vector<2x32xf32>, vector<32x128xf32>, vector<2x128xf32> -> vector<2x128xf32>
    %153 = arith.addf %151, %152 : vector<2x128xf32>
    %cst_95 = arith.constant 0.000000e+00 : f32
    %154 = vector.broadcast %cst_95 : f32 to vector<2x128xf32>
    %155 = arith.subf %154, %153 : vector<2x128xf32>
    %156 = math.exp %155 : vector<2x128xf32>
    %cst_96 = arith.constant 1.000000e+00 : f32
    %157 = vector.broadcast %cst_96 : f32 to vector<2x128xf32>
    %158 = arith.addf %157, %156 : vector<2x128xf32>
    %cst_97 = arith.constant 1.000000e+00 : f32
    %159 = vector.broadcast %cst_97 : f32 to vector<2x128xf32>
    %160 = arith.divf %159, %158 : vector<2x128xf32>
    %161 = vector.extract_strided_slice %160 {offsets = [0, 0], sizes = [2, 32], strides = [1, 1]} : vector<2x128xf32> to vector<2x32xf32>
    %162 = vector.extract_strided_slice %160 {offsets = [0, 32], sizes = [2, 32], strides = [1, 1]} : vector<2x128xf32> to vector<2x32xf32>
    %163 = vector.extract_strided_slice %160 {offsets = [0, 64], sizes = [2, 32], strides = [1, 1]} : vector<2x128xf32> to vector<2x32xf32>
    %cst_98 = arith.constant 2.000000e+00 : f32
    %164 = vector.broadcast %cst_98 : f32 to vector<2x32xf32>
    %165 = arith.mulf %164, %163 : vector<2x32xf32>
    %cst_99 = arith.constant 1.000000e+00 : f32
    %166 = vector.broadcast %cst_99 : f32 to vector<2x32xf32>
    %167 = arith.subf %165, %166 : vector<2x32xf32>
    %168 = vector.extract_strided_slice %160 {offsets = [0, 96], sizes = [2, 32], strides = [1, 1]} : vector<2x128xf32> to vector<2x32xf32>
    %169 = arith.mulf %162, %141 : vector<2x32xf32>
    %170 = arith.mulf %161, %167 : vector<2x32xf32>
    %171 = arith.addf %169, %170 : vector<2x32xf32>
    %172 = math.tanh %171 : vector<2x32xf32>
    %173 = arith.mulf %168, %172 : vector<2x32xf32>
    %174 = vector.broadcast %117 : vector<1x32xf32> to vector<2x32xf32>
    %175 = arith.mulf %173, %174 : vector<2x32xf32>
    %176 = vector.broadcast %118 : vector<1x32xf32> to vector<2x32xf32>
    %177 = arith.addf %175, %176 : vector<2x32xf32>
    %cst_100 = arith.constant 0.000000e+00 : f32
    %178 = vector.broadcast %cst_100 : f32 to vector<2x32xf32>
    %179 = arith.maximumf %177, %178 : vector<2x32xf32>
    %c2_101 = arith.constant 2 : index
    %c0_102 = arith.constant 0 : index
    %180 = vector.load %arg33[%c2_101, %c0_102] : memref<8x32xf32, #tpu.memory_space<vmem>>, vector<2x32xf32>
    tpu.vector_store %arg33[%c2_101, %c0_102], %179 {strides = array<i32>} : memref<8x32xf32, #tpu.memory_space<vmem>>, vector<2x32xf32>,
    %181 = vector.extract_strided_slice %115 {offsets = [4, 0], sizes = [2, 128], strides = [1, 1]} : vector<8x128xf32> to vector<2x128xf32>
    %cst_103 = arith.constant dense<0.000000e+00> : vector<2x128xf32>
    %182 = tpu.matmul %173, %116, %cst_103 {dimension_numbers = #tpu.dot_dimension_numbers<[1], [0], [0], [1], [0, 0, 1, 1], [], []>} : vector<2x32xf32>, vector<32x128xf32>, vector<2x128xf32> -> vector<2x128xf32>
    %183 = arith.addf %181, %182 : vector<2x128xf32>
    %cst_104 = arith.constant 0.000000e+00 : f32
    %184 = vector.broadcast %cst_104 : f32 to vector<2x128xf32>
    %185 = arith.subf %184, %183 : vector<2x128xf32>
    %186 = math.exp %185 : vector<2x128xf32>
    %cst_105 = arith.constant 1.000000e+00 : f32
    %187 = vector.broadcast %cst_105 : f32 to vector<2x128xf32>
    %188 = arith.addf %187, %186 : vector<2x128xf32>
    %cst_106 = arith.constant 1.000000e+00 : f32
    %189 = vector.broadcast %cst_106 : f32 to vector<2x128xf32>
    %190 = arith.divf %189, %188 : vector<2x128xf32>
    %191 = vector.extract_strided_slice %190 {offsets = [0, 0], sizes = [2, 32], strides = [1, 1]} : vector<2x128xf32> to vector<2x32xf32>
    %192 = vector.extract_strided_slice %190 {offsets = [0, 32], sizes = [2, 32], strides = [1, 1]} : vector<2x128xf32> to vector<2x32xf32>
    %193 = vector.extract_strided_slice %190 {offsets = [0, 64], sizes = [2, 32], strides = [1, 1]} : vector<2x128xf32> to vector<2x32xf32>
    %cst_107 = arith.constant 2.000000e+00 : f32
    %194 = vector.broadcast %cst_107 : f32 to vector<2x32xf32>
    %195 = arith.mulf %194, %193 : vector<2x32xf32>
    %cst_108 = arith.constant 1.000000e+00 : f32
    %196 = vector.broadcast %cst_108 : f32 to vector<2x32xf32>
    %197 = arith.subf %195, %196 : vector<2x32xf32>
    %198 = vector.extract_strided_slice %190 {offsets = [0, 96], sizes = [2, 32], strides = [1, 1]} : vector<2x128xf32> to vector<2x32xf32>
    %199 = arith.mulf %192, %171 : vector<2x32xf32>
    %200 = arith.mulf %191, %197 : vector<2x32xf32>
    %201 = arith.addf %199, %200 : vector<2x32xf32>
    %202 = math.tanh %201 : vector<2x32xf32>
    %203 = arith.mulf %198, %202 : vector<2x32xf32>
    %204 = vector.broadcast %117 : vector<1x32xf32> to vector<2x32xf32>
    %205 = arith.mulf %203, %204 : vector<2x32xf32>
    %206 = vector.broadcast %118 : vector<1x32xf32> to vector<2x32xf32>
    %207 = arith.addf %205, %206 : vector<2x32xf32>
    %cst_109 = arith.constant 0.000000e+00 : f32
    %208 = vector.broadcast %cst_109 : f32 to vector<2x32xf32>
    %209 = arith.maximumf %207, %208 : vector<2x32xf32>
    %c4_110 = arith.constant 4 : index
    %c0_111 = arith.constant 0 : index
    %210 = vector.load %arg33[%c4_110, %c0_111] : memref<8x32xf32, #tpu.memory_space<vmem>>, vector<2x32xf32>
    tpu.vector_store %arg33[%c4_110, %c0_111], %209 {strides = array<i32>} : memref<8x32xf32, #tpu.memory_space<vmem>>, vector<2x32xf32>,
    %211 = vector.extract_strided_slice %115 {offsets = [6, 0], sizes = [2, 128], strides = [1, 1]} : vector<8x128xf32> to vector<2x128xf32>
    %cst_112 = arith.constant dense<0.000000e+00> : vector<2x128xf32>
    %212 = tpu.matmul %203, %116, %cst_112 {dimension_numbers = #tpu.dot_dimension_numbers<[1], [0], [0], [1], [0, 0, 1, 1], [], []>} : vector<2x32xf32>, vector<32x128xf32>, vector<2x128xf32> -> vector<2x128xf32>
    %213 = arith.addf %211, %212 : vector<2x128xf32>
    %cst_113 = arith.constant 0.000000e+00 : f32
    %214 = vector.broadcast %cst_113 : f32 to vector<2x128xf32>
    %215 = arith.subf %214, %213 : vector<2x128xf32>
    %216 = math.exp %215 : vector<2x128xf32>
    %cst_114 = arith.constant 1.000000e+00 : f32
    %217 = vector.broadcast %cst_114 : f32 to vector<2x128xf32>
    %218 = arith.addf %217, %216 : vector<2x128xf32>
    %cst_115 = arith.constant 1.000000e+00 : f32
    %219 = vector.broadcast %cst_115 : f32 to vector<2x128xf32>
    %220 = arith.divf %219, %218 : vector<2x128xf32>
    %221 = vector.extract_strided_slice %220 {offsets = [0, 0], sizes = [2, 32], strides = [1, 1]} : vector<2x128xf32> to vector<2x32xf32>
    %222 = vector.extract_strided_slice %220 {offsets = [0, 32], sizes = [2, 32], strides = [1, 1]} : vector<2x128xf32> to vector<2x32xf32>
    %223 = vector.extract_strided_slice %220 {offsets = [0, 64], sizes = [2, 32], strides = [1, 1]} : vector<2x128xf32> to vector<2x32xf32>
    %cst_116 = arith.constant 2.000000e+00 : f32
    %224 = vector.broadcast %cst_116 : f32 to vector<2x32xf32>
    %225 = arith.mulf %224, %223 : vector<2x32xf32>
    %cst_117 = arith.constant 1.000000e+00 : f32
    %226 = vector.broadcast %cst_117 : f32 to vector<2x32xf32>
    %227 = arith.subf %225, %226 : vector<2x32xf32>
    %228 = vector.extract_strided_slice %220 {offsets = [0, 96], sizes = [2, 32], strides = [1, 1]} : vector<2x128xf32> to vector<2x32xf32>
    %229 = arith.mulf %222, %201 : vector<2x32xf32>
    %230 = arith.mulf %221, %227 : vector<2x32xf32>
    %231 = arith.addf %229, %230 : vector<2x32xf32>
    %232 = math.tanh %231 : vector<2x32xf32>
    %233 = arith.mulf %228, %232 : vector<2x32xf32>
    %234 = vector.broadcast %117 : vector<1x32xf32> to vector<2x32xf32>
    %235 = arith.mulf %233, %234 : vector<2x32xf32>
    %236 = vector.broadcast %118 : vector<1x32xf32> to vector<2x32xf32>
    %237 = arith.addf %235, %236 : vector<2x32xf32>
    %cst_118 = arith.constant 0.000000e+00 : f32
    %238 = vector.broadcast %cst_118 : f32 to vector<2x32xf32>
    %239 = arith.maximumf %237, %238 : vector<2x32xf32>
    %c6_119 = arith.constant 6 : index
    %c0_120 = arith.constant 0 : index
    %240 = vector.load %arg33[%c6_119, %c0_120] : memref<8x32xf32, #tpu.memory_space<vmem>>, vector<2x32xf32>
    tpu.vector_store %arg33[%c6_119, %c0_120], %239 {strides = array<i32>} : memref<8x32xf32, #tpu.memory_space<vmem>>, vector<2x32xf32>,
    %c0_121 = arith.constant 0 : index
    %c0_122 = arith.constant 0 : index
    %241 = vector.load %arg33[%c0_121, %c0_122] : memref<8x32xf32, #tpu.memory_space<vmem>>, vector<8x32xf32>
    %c0_123 = arith.constant 0 : index
    %c0_124 = arith.constant 0 : index
    %242 = vector.load %arg25[%c0_123, %c0_124] : memref<32x128xf32, #tpu.memory_space<vmem>>, vector<32x128xf32>
    %cst_125 = arith.constant dense<0.000000e+00> : vector<8x128xf32>
    %243 = tpu.matmul %241, %242, %cst_125 {dimension_numbers = #tpu.dot_dimension_numbers<[1], [0], [0], [1], [0, 0, 1, 1], [], []>} : vector<8x32xf32>, vector<32x128xf32>, vector<8x128xf32> -> vector<8x128xf32>
    %c0_126 = arith.constant 0 : index
    %c0_127 = arith.constant 0 : index
    %244 = vector.load %arg27[%c0_126, %c0_127] : memref<1x128xf32, #tpu.memory_space<vmem>>, vector<1x128xf32>
    %245 = vector.broadcast %244 : vector<1x128xf32> to vector<8x128xf32>
    %246 = arith.addf %243, %245 : vector<8x128xf32>
    %c0_128 = arith.constant 0 : index
    %c0_129 = arith.constant 0 : index
    %247 = vector.load %arg26[%c0_128, %c0_129] : memref<32x128xf32, #tpu.memory_space<vmem>>, vector<32x128xf32>
    %cst_130 = arith.constant 0.000000e+00 : f32
    %248 = vector.broadcast %cst_130 : f32 to vector<2x32xf32>
    %cst_131 = arith.constant 0.000000e+00 : f32
    %249 = vector.broadcast %cst_131 : f32 to vector<2x32xf32>
    %250 = vector.extract_strided_slice %246 {offsets = [0, 0], sizes = [2, 128], strides = [1, 1]} : vector<8x128xf32> to vector<2x128xf32>
    %cst_132 = arith.constant dense<0.000000e+00> : vector<2x128xf32>
    %251 = tpu.matmul %248, %247, %cst_132 {dimension_numbers = #tpu.dot_dimension_numbers<[1], [0], [0], [1], [0, 0, 1, 1], [], []>} : vector<2x32xf32>, vector<32x128xf32>, vector<2x128xf32> -> vector<2x128xf32>
    %252 = arith.addf %250, %251 : vector<2x128xf32>
    %cst_133 = arith.constant 0.000000e+00 : f32
    %253 = vector.broadcast %cst_133 : f32 to vector<2x128xf32>
    %254 = arith.subf %253, %252 : vector<2x128xf32>
    %255 = math.exp %254 : vector<2x128xf32>
    %cst_134 = arith.constant 1.000000e+00 : f32
    %256 = vector.broadcast %cst_134 : f32 to vector<2x128xf32>
    %257 = arith.addf %256, %255 : vector<2x128xf32>
    %cst_135 = arith.constant 1.000000e+00 : f32
    %258 = vector.broadcast %cst_135 : f32 to vector<2x128xf32>
    %259 = arith.divf %258, %257 : vector<2x128xf32>
    %260 = vector.extract_strided_slice %259 {offsets = [0, 0], sizes = [2, 32], strides = [1, 1]} : vector<2x128xf32> to vector<2x32xf32>
    %261 = vector.extract_strided_slice %259 {offsets = [0, 32], sizes = [2, 32], strides = [1, 1]} : vector<2x128xf32> to vector<2x32xf32>
    %262 = vector.extract_strided_slice %259 {offsets = [0, 64], sizes = [2, 32], strides = [1, 1]} : vector<2x128xf32> to vector<2x32xf32>
    %cst_136 = arith.constant 2.000000e+00 : f32
    %263 = vector.broadcast %cst_136 : f32 to vector<2x32xf32>
    %264 = arith.mulf %263, %262 : vector<2x32xf32>
    %cst_137 = arith.constant 1.000000e+00 : f32
    %265 = vector.broadcast %cst_137 : f32 to vector<2x32xf32>
    %266 = arith.subf %264, %265 : vector<2x32xf32>
    %267 = vector.extract_strided_slice %259 {offsets = [0, 96], sizes = [2, 32], strides = [1, 1]} : vector<2x128xf32> to vector<2x32xf32>
    %268 = arith.mulf %261, %249 : vector<2x32xf32>
    %269 = arith.mulf %260, %266 : vector<2x32xf32>
    %270 = arith.addf %268, %269 : vector<2x32xf32>
    %271 = math.tanh %270 : vector<2x32xf32>
    %272 = arith.mulf %267, %271 : vector<2x32xf32>
    %c0_138 = arith.constant 0 : index
    %c0_139 = arith.constant 0 : index
    %273 = vector.load %arg28[%c0_138, %c0_139] : memref<8x32xf32, #tpu.memory_space<vmem>>, vector<2x32xf32>
    tpu.vector_store %arg28[%c0_138, %c0_139], %272 {strides = array<i32>} : memref<8x32xf32, #tpu.memory_space<vmem>>, vector<2x32xf32>,
    %274 = vector.extract_strided_slice %246 {offsets = [2, 0], sizes = [2, 128], strides = [1, 1]} : vector<8x128xf32> to vector<2x128xf32>
    %cst_140 = arith.constant dense<0.000000e+00> : vector<2x128xf32>
    %275 = tpu.matmul %272, %247, %cst_140 {dimension_numbers = #tpu.dot_dimension_numbers<[1], [0], [0], [1], [0, 0, 1, 1], [], []>} : vector<2x32xf32>, vector<32x128xf32>, vector<2x128xf32> -> vector<2x128xf32>
    %276 = arith.addf %274, %275 : vector<2x128xf32>
    %cst_141 = arith.constant 0.000000e+00 : f32
    %277 = vector.broadcast %cst_141 : f32 to vector<2x128xf32>
    %278 = arith.subf %277, %276 : vector<2x128xf32>
    %279 = math.exp %278 : vector<2x128xf32>
    %cst_142 = arith.constant 1.000000e+00 : f32
    %280 = vector.broadcast %cst_142 : f32 to vector<2x128xf32>
    %281 = arith.addf %280, %279 : vector<2x128xf32>
    %cst_143 = arith.constant 1.000000e+00 : f32
    %282 = vector.broadcast %cst_143 : f32 to vector<2x128xf32>
    %283 = arith.divf %282, %281 : vector<2x128xf32>
    %284 = vector.extract_strided_slice %283 {offsets = [0, 0], sizes = [2, 32], strides = [1, 1]} : vector<2x128xf32> to vector<2x32xf32>
    %285 = vector.extract_strided_slice %283 {offsets = [0, 32], sizes = [2, 32], strides = [1, 1]} : vector<2x128xf32> to vector<2x32xf32>
    %286 = vector.extract_strided_slice %283 {offsets = [0, 64], sizes = [2, 32], strides = [1, 1]} : vector<2x128xf32> to vector<2x32xf32>
    %cst_144 = arith.constant 2.000000e+00 : f32
    %287 = vector.broadcast %cst_144 : f32 to vector<2x32xf32>
    %288 = arith.mulf %287, %286 : vector<2x32xf32>
    %cst_145 = arith.constant 1.000000e+00 : f32
    %289 = vector.broadcast %cst_145 : f32 to vector<2x32xf32>
    %290 = arith.subf %288, %289 : vector<2x32xf32>
    %291 = vector.extract_strided_slice %283 {offsets = [0, 96], sizes = [2, 32], strides = [1, 1]} : vector<2x128xf32> to vector<2x32xf32>
    %292 = arith.mulf %285, %270 : vector<2x32xf32>
    %293 = arith.mulf %284, %290 : vector<2x32xf32>
    %294 = arith.addf %292, %293 : vector<2x32xf32>
    %295 = math.tanh %294 : vector<2x32xf32>
    %296 = arith.mulf %291, %295 : vector<2x32xf32>
    %c2_146 = arith.constant 2 : index
    %c0_147 = arith.constant 0 : index
    %297 = vector.load %arg28[%c2_146, %c0_147] : memref<8x32xf32, #tpu.memory_space<vmem>>, vector<2x32xf32>
    tpu.vector_store %arg28[%c2_146, %c0_147], %296 {strides = array<i32>} : memref<8x32xf32, #tpu.memory_space<vmem>>, vector<2x32xf32>,
    %298 = vector.extract_strided_slice %246 {offsets = [4, 0], sizes = [2, 128], strides = [1, 1]} : vector<8x128xf32> to vector<2x128xf32>
    %cst_148 = arith.constant dense<0.000000e+00> : vector<2x128xf32>
    %299 = tpu.matmul %296, %247, %cst_148 {dimension_numbers = #tpu.dot_dimension_numbers<[1], [0], [0], [1], [0, 0, 1, 1], [], []>} : vector<2x32xf32>, vector<32x128xf32>, vector<2x128xf32> -> vector<2x128xf32>
    %300 = arith.addf %298, %299 : vector<2x128xf32>
    %cst_149 = arith.constant 0.000000e+00 : f32
    %301 = vector.broadcast %cst_149 : f32 to vector<2x128xf32>
    %302 = arith.subf %301, %300 : vector<2x128xf32>
    %303 = math.exp %302 : vector<2x128xf32>
    %cst_150 = arith.constant 1.000000e+00 : f32
    %304 = vector.broadcast %cst_150 : f32 to vector<2x128xf32>
    %305 = arith.addf %304, %303 : vector<2x128xf32>
    %cst_151 = arith.constant 1.000000e+00 : f32
    %306 = vector.broadcast %cst_151 : f32 to vector<2x128xf32>
    %307 = arith.divf %306, %305 : vector<2x128xf32>
    %308 = vector.extract_strided_slice %307 {offsets = [0, 0], sizes = [2, 32], strides = [1, 1]} : vector<2x128xf32> to vector<2x32xf32>
    %309 = vector.extract_strided_slice %307 {offsets = [0, 32], sizes = [2, 32], strides = [1, 1]} : vector<2x128xf32> to vector<2x32xf32>
    %310 = vector.extract_strided_slice %307 {offsets = [0, 64], sizes = [2, 32], strides = [1, 1]} : vector<2x128xf32> to vector<2x32xf32>
    %cst_152 = arith.constant 2.000000e+00 : f32
    %311 = vector.broadcast %cst_152 : f32 to vector<2x32xf32>
    %312 = arith.mulf %311, %310 : vector<2x32xf32>
    %cst_153 = arith.constant 1.000000e+00 : f32
    %313 = vector.broadcast %cst_153 : f32 to vector<2x32xf32>
    %314 = arith.subf %312, %313 : vector<2x32xf32>
    %315 = vector.extract_strided_slice %307 {offsets = [0, 96], sizes = [2, 32], strides = [1, 1]} : vector<2x128xf32> to vector<2x32xf32>
    %316 = arith.mulf %309, %294 : vector<2x32xf32>
    %317 = arith.mulf %308, %314 : vector<2x32xf32>
    %318 = arith.addf %316, %317 : vector<2x32xf32>
    %319 = math.tanh %318 : vector<2x32xf32>
    %320 = arith.mulf %315, %319 : vector<2x32xf32>
    %c4_154 = arith.constant 4 : index
    %c0_155 = arith.constant 0 : index
    %321 = vector.load %arg28[%c4_154, %c0_155] : memref<8x32xf32, #tpu.memory_space<vmem>>, vector<2x32xf32>
    tpu.vector_store %arg28[%c4_154, %c0_155], %320 {strides = array<i32>} : memref<8x32xf32, #tpu.memory_space<vmem>>, vector<2x32xf32>,
    %322 = vector.extract_strided_slice %246 {offsets = [6, 0], sizes = [2, 128], strides = [1, 1]} : vector<8x128xf32> to vector<2x128xf32>
    %cst_156 = arith.constant dense<0.000000e+00> : vector<2x128xf32>
    %323 = tpu.matmul %320, %247, %cst_156 {dimension_numbers = #tpu.dot_dimension_numbers<[1], [0], [0], [1], [0, 0, 1, 1], [], []>} : vector<2x32xf32>, vector<32x128xf32>, vector<2x128xf32> -> vector<2x128xf32>
    %324 = arith.addf %322, %323 : vector<2x128xf32>
    %cst_157 = arith.constant 0.000000e+00 : f32
    %325 = vector.broadcast %cst_157 : f32 to vector<2x128xf32>
    %326 = arith.subf %325, %324 : vector<2x128xf32>
    %327 = math.exp %326 : vector<2x128xf32>
    %cst_158 = arith.constant 1.000000e+00 : f32
    %328 = vector.broadcast %cst_158 : f32 to vector<2x128xf32>
    %329 = arith.addf %328, %327 : vector<2x128xf32>
    %cst_159 = arith.constant 1.000000e+00 : f32
    %330 = vector.broadcast %cst_159 : f32 to vector<2x128xf32>
    %331 = arith.divf %330, %329 : vector<2x128xf32>
    %332 = vector.extract_strided_slice %331 {offsets = [0, 0], sizes = [2, 32], strides = [1, 1]} : vector<2x128xf32> to vector<2x32xf32>
    %333 = vector.extract_strided_slice %331 {offsets = [0, 32], sizes = [2, 32], strides = [1, 1]} : vector<2x128xf32> to vector<2x32xf32>
    %334 = vector.extract_strided_slice %331 {offsets = [0, 64], sizes = [2, 32], strides = [1, 1]} : vector<2x128xf32> to vector<2x32xf32>
    %cst_160 = arith.constant 2.000000e+00 : f32
    %335 = vector.broadcast %cst_160 : f32 to vector<2x32xf32>
    %336 = arith.mulf %335, %334 : vector<2x32xf32>
    %cst_161 = arith.constant 1.000000e+00 : f32
    %337 = vector.broadcast %cst_161 : f32 to vector<2x32xf32>
    %338 = arith.subf %336, %337 : vector<2x32xf32>
    %339 = vector.extract_strided_slice %331 {offsets = [0, 96], sizes = [2, 32], strides = [1, 1]} : vector<2x128xf32> to vector<2x32xf32>
    %340 = arith.mulf %333, %318 : vector<2x32xf32>
    %341 = arith.mulf %332, %338 : vector<2x32xf32>
    %342 = arith.addf %340, %341 : vector<2x32xf32>
    %343 = math.tanh %342 : vector<2x32xf32>
    %344 = arith.mulf %339, %343 : vector<2x32xf32>
    %c6_162 = arith.constant 6 : index
    %c0_163 = arith.constant 0 : index
    %345 = vector.load %arg28[%c6_162, %c0_163] : memref<8x32xf32, #tpu.memory_space<vmem>>, vector<2x32xf32>
    tpu.vector_store %arg28[%c6_162, %c0_163], %344 {strides = array<i32>} : memref<8x32xf32, #tpu.memory_space<vmem>>, vector<2x32xf32>,
    %c0_164 = arith.constant 0 : index
    %c0_165 = arith.constant 0 : index
    %346 = vector.load %arg29[%c0_164, %c0_165] : memref<2x32xf32, #tpu.memory_space<vmem>>, vector<2x32xf32>
    tpu.vector_store %arg29[%c0_164, %c0_165], %344 {strides = array<i32>} : memref<2x32xf32, #tpu.memory_space<vmem>>, vector<2x32xf32>,
    return
  }
  func.func @transform_0(%arg0: i32) -> (i32, i32) {
    %c0_i32 = arith.constant 0 : i32
    %c0_i32_0 = arith.constant 0 : i32
    %c0_i32_1 = arith.constant 0 : i32
    return %c0_i32, %c0_i32_0 : i32, i32
  }
  func.func @transform_1(%arg0: i32) -> (i32, i32) {
    %c0_i32 = arith.constant 0 : i32
    %c0_i32_0 = arith.constant 0 : i32
    %c0_i32_1 = arith.constant 0 : i32
    return %c0_i32, %c0_i32_0 : i32, i32
  }
  func.func @transform_2(%arg0: i32) -> (i32, i32) {
    %c0_i32 = arith.constant 0 : i32
    %c0_i32_0 = arith.constant 0 : i32
    %c0_i32_1 = arith.constant 0 : i32
    return %c0_i32, %c0_i32_0 : i32, i32
  }
  func.func @transform_3(%arg0: i32) -> (i32, i32) {
    %c0_i32 = arith.constant 0 : i32
    %c0_i32_0 = arith.constant 0 : i32
    %c0_i32_1 = arith.constant 0 : i32
    return %c0_i32, %c0_i32_0 : i32, i32
  }
  func.func @transform_4(%arg0: i32) -> (i32, i32) {
    %c0_i32 = arith.constant 0 : i32
    %c0_i32_0 = arith.constant 0 : i32
    %c0_i32_1 = arith.constant 0 : i32
    return %c0_i32, %c0_i32_0 : i32, i32
  }
  func.func @transform_5(%arg0: i32) -> (i32, i32) {
    %c0_i32 = arith.constant 0 : i32
    %c0_i32_0 = arith.constant 0 : i32
    %c0_i32_1 = arith.constant 0 : i32
    return %c0_i32, %c0_i32_0 : i32, i32
  }
  func.func @transform_6(%arg0: i32) -> (i32, i32) {
    %c0_i32 = arith.constant 0 : i32
    %c0_i32_0 = arith.constant 0 : i32
    %c0_i32_1 = arith.constant 0 : i32
    return %c0_i32, %c0_i32_0 : i32, i32
  }
  func.func @transform_7(%arg0: i32) -> (i32, i32) {
    %c0_i32 = arith.constant 0 : i32
    %c0_i32_0 = arith.constant 0 : i32
    %c0_i32_1 = arith.constant 0 : i32
    return %c0_i32, %c0_i32_0 : i32, i32
  }
  func.func @transform_8(%arg0: i32) -> (i32, i32) {
    %c0_i32 = arith.constant 0 : i32
    %c0_i32_0 = arith.constant 0 : i32
    %c0_i32_1 = arith.constant 0 : i32
    return %c0_i32, %c0_i32_0 : i32, i32
  }
  func.func @transform_9(%arg0: i32) -> (i32, i32) {
    %c0_i32 = arith.constant 0 : i32
    %c0_i32_0 = arith.constant 0 : i32
    %c0_i32_1 = arith.constant 0 : i32
    return %c0_i32, %c0_i32_0 : i32, i32
  }
  func.func @transform_10(%arg0: i32) -> (i32, i32) {
    %c0_i32 = arith.constant 0 : i32
    %c0_i32_0 = arith.constant 0 : i32
    %c0_i32_1 = arith.constant 0 : i32
    return %c0_i32, %c0_i32_0 : i32, i32
  }
  func.func @transform_11(%arg0: i32) -> (i32, i32) {
    %c0_i32 = arith.constant 0 : i32
    %c0_i32_0 = arith.constant 0 : i32
    %c0_i32_1 = arith.constant 0 : i32
    return %c0_i32, %c0_i32_0 : i32, i32
  }
  func.func @transform_12(%arg0: i32) -> (i32, i32) {
    %c0_i32 = arith.constant 0 : i32
    %c0_i32_0 = arith.constant 0 : i32
    %c0_i32_1 = arith.constant 0 : i32
    return %c0_i32, %c0_i32_0 : i32, i32
  }
  func.func @transform_13(%arg0: i32) -> (i32, i32) {
    %c0_i32 = arith.constant 0 : i32
    %c0_i32_0 = arith.constant 0 : i32
    %c0_i32_1 = arith.constant 0 : i32
    return %c0_i32, %c0_i32_0 : i32, i32
  }
  func.func @transform_14(%arg0: i32) -> (i32, i32) {
    %c0_i32 = arith.constant 0 : i32
    %c0_i32_0 = arith.constant 0 : i32
    %c0_i32_1 = arith.constant 0 : i32
    return %c0_i32, %c0_i32_0 : i32, i32
  }
  func.func @transform_15(%arg0: i32) -> (i32, i32) {
    %c0_i32 = arith.constant 0 : i32
    %c0_i32_0 = arith.constant 0 : i32
    %c0_i32_1 = arith.constant 0 : i32
    return %c0_i32, %c0_i32_0 : i32, i32
  }
  func.func @transform_16(%arg0: i32) -> (i32, i32) {
    %c0_i32 = arith.constant 0 : i32
    %c0_i32_0 = arith.constant 0 : i32
    %c0_i32_1 = arith.constant 0 : i32
    return %c0_i32, %c0_i32_0 : i32, i32
  }
  func.func @transform_17(%arg0: i32) -> (i32, i32) {
    %c0_i32 = arith.constant 0 : i32
    %c0_i32_0 = arith.constant 0 : i32
    %c0_i32_1 = arith.constant 0 : i32
    return %c0_i32, %c0_i32_0 : i32, i32
  }
  func.func @transform_18(%arg0: i32) -> (i32, i32) {
    %c0_i32 = arith.constant 0 : i32
    %c0_i32_0 = arith.constant 0 : i32
    %c0_i32_1 = arith.constant 0 : i32
    return %c0_i32, %c0_i32_0 : i32, i32
  }
  func.func @transform_19(%arg0: i32) -> (i32, i32) {
    %c0_i32 = arith.constant 0 : i32
    %c0_i32_0 = arith.constant 0 : i32
    %c0_i32_1 = arith.constant 0 : i32
    return %c0_i32, %c0_i32_0 : i32, i32
  }
  func.func @transform_20(%arg0: i32) -> (i32, i32) {
    %c0_i32 = arith.constant 0 : i32
    %c0_i32_0 = arith.constant 0 : i32
    %c0_i32_1 = arith.constant 0 : i32
    return %c0_i32, %c0_i32_0 : i32, i32
  }
  func.func @transform_21(%arg0: i32) -> (i32, i32) {
    %c0_i32 = arith.constant 0 : i32
    %c0_i32_0 = arith.constant 0 : i32
    %c0_i32_1 = arith.constant 0 : i32
    return %c0_i32, %c0_i32_0 : i32, i32
  }
  func.func @transform_22(%arg0: i32) -> (i32, i32) {
    %c0_i32 = arith.constant 0 : i32
    %c0_i32_0 = arith.constant 0 : i32
    %c0_i32_1 = arith.constant 0 : i32
    return %c0_i32, %c0_i32_0 : i32, i32
  }
  func.func @transform_23(%arg0: i32) -> (i32, i32) {
    %c0_i32 = arith.constant 0 : i32
    %c0_i32_0 = arith.constant 0 : i32
    %c0_i32_1 = arith.constant 0 : i32
    return %c0_i32, %c0_i32_0 : i32, i32
  }
  func.func @transform_24(%arg0: i32) -> (i32, i32) {
    %c0_i32 = arith.constant 0 : i32
    %c0_i32_0 = arith.constant 0 : i32
    %c0_i32_1 = arith.constant 0 : i32
    return %c0_i32, %c0_i32_0 : i32, i32
  }
  func.func @transform_25(%arg0: i32) -> (i32, i32) {
    %c0_i32 = arith.constant 0 : i32
    %c0_i32_0 = arith.constant 0 : i32
    %c0_i32_1 = arith.constant 0 : i32
    return %c0_i32, %c0_i32_0 : i32, i32
  }
  func.func @transform_26(%arg0: i32) -> (i32, i32) {
    %c0_i32 = arith.constant 0 : i32
    %c0_i32_0 = arith.constant 0 : i32
    %c0_i32_1 = arith.constant 0 : i32
    return %c0_i32, %c0_i32_0 : i32, i32
  }
  func.func @transform_27(%arg0: i32) -> (i32, i32) {
    %c0_i32 = arith.constant 0 : i32
    %c0_i32_0 = arith.constant 0 : i32
    %c0_i32_1 = arith.constant 0 : i32
    return %c0_i32, %c0_i32_0 : i32, i32
  }
  func.func @transform_28(%arg0: i32) -> (i32, i32) {
    %c0_i32 = arith.constant 0 : i32
    %c0_i32_0 = arith.constant 0 : i32
    %c0_i32_1 = arith.constant 0 : i32
    return %c0_i32, %c0_i32_0 : i32, i32
  }
}

</mosaic_0001>

<bundles_post_ra>
// kernel: tpu_custom_call.1
= control target key start
LH: loop header
LB: loop body
LE: loop exit
PB: predicated region body
PF: predicated region fallthrough
CT: control target
= control target key end

     0   :  { %s4202_s0 = inlined_call_operand.vmem [shape: f32[32,4], index: 0, kind: input, shape index: {}]   ;;  %s4203_s1 = inlined_call_operand.vmem [shape: f32[32,1], index: 1, kind: input, shape index: {}]   ;;  %s4204_s2 = inlined_call_operand.vmem [shape: f32[32,1], index: 2, kind: input, shape index: {}]   ;;  %s4205_s3 = inlined_call_operand.vmem [shape: f32[16,1], index: 3, kind: input, shape index: {}]   ;;  %s4206_s4 = inlined_call_operand.vmem [shape: f32[16,1], index: 4, kind: input, shape index: {}]   ;;  %s4207_s5 = inlined_call_operand.hbm [shape: f32[1,4], index: 5, kind: input, shape index: {}]   ;;  %s4208_s6 = inlined_call_operand.hbm [shape: f32[1,4], index: 6, kind: input, shape index: {}]   ;;  %s4209_s7 = inlined_call_operand.hbm [shape: f32[4,192], index: 7, kind: input, shape index: {}]   ;;  %s4210_s8 = inlined_call_operand.hbm [shape: f32[1,64], index: 8, kind: input, shape index: {}]   ;;  %s4211_s9 = inlined_call_operand.hbm [shape: f32[1,64], index: 9, kind: input, shape index: {}]   ;;  %s4212_s10 = inlined_call_operand.vmem [shape: f32[64,192], index: 10, kind: input, shape index: {}]   ;;  %s4213_s11 = inlined_call_operand.hbm [shape: f32[1,64], index: 11, kind: input, shape index: {}]   ;;  %s4214_s12 = inlined_call_operand.hbm [shape: f32[1,64], index: 12, kind: input, shape index: {}]   ;;  %s4215_s13 = inlined_call_operand.hbm [shape: f32[64,384], index: 13, kind: input, shape index: {}]   ;;  %s4216_s14 = inlined_call_operand.hbm [shape: f32[1,128], index: 14, kind: input, shape index: {}]   ;;  %s4217_s15 = inlined_call_operand.hbm [shape: f32[1,128], index: 15, kind: input, shape index: {}]   ;;  %s4218_s16 = inlined_call_operand.hbm [shape: f32[128,384], index: 16, kind: input, shape index: {}]   ;;  %s4219_s17 = inlined_call_operand.vmem [shape: f32[1,128], index: 17, kind: input, shape index: {}]   ;;  %s4220_s18 = inlined_call_operand.vmem [shape: f32[1,128], index: 18, kind: input, shape index: {}]   ;;  %s4221_s19 = inlined_call_operand.hbm [shape: f32[128,128], index: 19, kind: input, shape index: {}]   ;;  %s4222_s20 = inlined_call_operand.vmem [shape: f32[32,128], index: 20, kind: input, shape index: {}]   ;;  %s4223_s21 = inlined_call_operand.hbm [shape: f32[1,128], index: 21, kind: input, shape index: {}]   ;;  %s4224_s22 = inlined_call_operand.hbm [shape: f32[1,32], index: 22, kind: input, shape index: {}]   ;;  %s4225_s23 = inlined_call_operand.hbm [shape: f32[1,32], index: 23, kind: input, shape index: {}]   ;;  %s4226_s24 = inlined_call_operand.vmem [shape: f32[32,128], index: 24, kind: input, shape index: {}]   ;;  %s4227_s25 = inlined_call_operand.vmem [shape: f32[32,128], index: 25, kind: input, shape index: {}]   ;;  %s4228_s26 = inlined_call_operand.vmem [shape: f32[1,128], index: 26, kind: input, shape index: {}]   ;;  %s4229_s27 = inlined_call_operand.hbm [shape: f32[8,32], index: 27, kind: output, shape index: {0}]   ;;  %s4230_s28 = inlined_call_operand.hbm [shape: f32[2,32], index: 28, kind: output, shape index: {1}]  }
   0x1   :  { %4245 = sst [smem:[#allocation43_spill]] %s4202_s0 }
   0x2   :  { %4246 = sst [smem:[#allocation44_spill]] %s4203_s1 }
   0x3   :  { %4247 = sst [smem:[#allocation45_spill]] %s4204_s2 }
   0x4   :  { %4248 = sst [smem:[#allocation46_spill]] %s4205_s3 }
   0x5   :  { %4249 = sst [smem:[#allocation47_spill]] %s4206_s4 }
   0x6   :  { %4250 = sst [smem:[#allocation48_spill]] %s4207_s5 }
   0x7   :  { %4251 = sst [smem:[#allocation49_spill]] %s4208_s6 }
   0x8   :  { %4252 = sst [smem:[#allocation50_spill]] %s4209_s7 }
   0x9   :  { %4253 = sst [smem:[#allocation51_spill]] %s4210_s8 }
   0xa   :  { %4254 = sst [smem:[#allocation52_spill]] %s4211_s9 }
   0xb   :  { %4255 = sst [smem:[#allocation53_spill]] %s4212_s10 }
   0xc   :  { %4256 = sst [smem:[#allocation54_spill]] %s4213_s11 }
   0xd   :  { %4257 = sst [smem:[#allocation55_spill]] %s4214_s12 }
   0xe   :  { %4258 = sst [smem:[#allocation56_spill]] %s4230_s28 }
   0xf   :  { %34 = vsyncpa [#allocation7], 0 }
  0x10   :  { %35 = vsyncpa [#allocation10], 0 }
  0x11   :  { %36 = vsyncpa [#allocation13], 0 }
  0x12   :  { %37 = vsyncpa [#allocation16], 0 }
  0x13   :  { %38 = vsyncpa [#allocation19], 0 }
  0x14   :  { %39 = vsyncpa [#allocation22], 0 }
  0x15   :  { %40 = vsyncpa [#allocation25], 0 }
  0x16   :  { %41 = vsyncpa [#allocation28], 0 }
  0x17   :  { %42 = vsyncpa [#allocation8], 0 }
  0x18   :  { %43 = vsyncpa [#allocation32], 0  ;;  %s3358_s8 = smov [#allocation9]   ;;  %s3359_s9 = smov [#allocation12]  }
  0x19   :  { %s70_s5 = sshll.u32 %s3358_s8, 4  ;;  %s90_s30 = sshll.u32 %s3359_s9, 4  ;;  %s71_s5 = int_to_ptr.vmem [resolvable:$true] %s70_s5  ;;  %s91_s30 = int_to_ptr.vmem [resolvable:$true] %s90_s30 }
  0x1a   :  { %s4259_s10 = sld [smem:[#allocation49_spill]] }
  0x20   :  { %s2964_s0 = scalar_lea.hbm %s4259_s10, 16 }
  0x21   :  { %p2965_p0 = scmp.ne.s32.totalorder %s4259_s10, %s2964_s0  ;;  %p2968_p1 = scmp.lt.u32.totalorder %s2964_s0, %s4259_s10 }
  0x23   :  { %p2970_p2 = pnand %p2968_p1, %p2965_p0 }
  0x25   :  { %2973 = shalt.err (!%p2970_p2)
}
  0x26   :  { %s2974_s12 = scalar_lea.vmem %s71_s5, 16  ;;  %s2978_s1 = scalar_lea.vmem %s71_s5, 32 }
  0x27   :  { %p2975_p3 = scmp.ne.s32.totalorder %s71_s5, %s2974_s12  ;;  %p2979_p4 = scmp.lt.s32.totalorder %s71_s5, %s71_s5 }
  0x28   :  { %p2980_p5 = scmp.lt.s32.totalorder %s2978_s1, %s2974_s12 }
  0x2a   :  { %p2981_p6 = por %p2980_p5, %p2979_p4 }
  0x2c   :  { %p2982_p7 = pnand %p2981_p6, %p2975_p3 }
  0x2e   :  { %2985 = shalt.err (!%p2982_p7)
}
  0x2f   :  { %73 = dma.hbm_to_vmem [thread:$0]  %s4259_s10, 16, %s71_s5, [#allocation10]  }
  0x30   :  { %s4260_s6 = sld [smem:[#allocation51_spill]] }
  0x36   :  { %s2986_s11 = scalar_lea.hbm %s4260_s6, 16 }
  0x37   :  { %p2987_p8 = scmp.ne.s32.totalorder %s4260_s6, %s2986_s11  ;;  %p2990_p9 = scmp.lt.u32.totalorder %s2986_s11, %s4260_s6 }
  0x39   :  { %p2992_p10 = pnand %p2990_p9, %p2987_p8 }
  0x3b   :  { %2995 = shalt.err (!%p2992_p10)
}
  0x3c   :  { %s2996_s12 = scalar_lea.vmem %s91_s30, 16  ;;  %s3000_s1 = scalar_lea.vmem %s91_s30, 32 }
  0x3d   :  { %p2997_p11 = scmp.ne.s32.totalorder %s91_s30, %s2996_s12  ;;  %p3001_p12 = scmp.lt.s32.totalorder %s91_s30, %s91_s30 }
  0x3e   :  { %p3002_p13 = scmp.lt.s32.totalorder %s3000_s1, %s2996_s12 }
  0x40   :  { %p3003_p0 = por %p3002_p13, %p3001_p12 }
  0x42   :  { %p3004_p1 = pnand %p3003_p0, %p2997_p11 }
  0x44   :  { %3007 = shalt.err (!%p3004_p1)
}
  0x45   :  { %93 = dma.hbm_to_vmem [thread:$0]  %s4260_s6, 16, %s91_s30, [#allocation13]  }
  0x46   :  { %s3360_s4 = smov [#allocation15]   ;;  %s3361_s9 = smov [#allocation18]  }
  0x47   :  { %s112_s8 = sshll.u32 %s3360_s4, 4  ;;  %s131_s3 = sshll.u32 %s3361_s9, 4  ;;  %s113_s8 = int_to_ptr.vmem [resolvable:$true] %s112_s8  ;;  %s3555_s3 = int_to_ptr.vmem [resolvable:$true] %s131_s3 }
  0x48   :  { %s4261_s0 = sld [smem:[#allocation54_spill]] }
  0x4e   :  { %s3008_s2 = scalar_lea.hbm %s4261_s0, 16 }
  0x4f   :  { %p3009_p2 = scmp.ne.s32.totalorder %s4261_s0, %s3008_s2  ;;  %p3012_p3 = scmp.lt.u32.totalorder %s3008_s2, %s4261_s0 }
  0x51   :  { %p3014_p4 = pnand %p3012_p3, %p3009_p2 }
  0x53   :  { %3017 = shalt.err (!%p3014_p4)
}
  0x54   :  { %s3018_s30 = scalar_lea.vmem %s113_s8, 16  ;;  %s3022_s6 = scalar_lea.vmem %s113_s8, 32 }
  0x55   :  { %p3019_p5 = scmp.ne.s32.totalorder %s113_s8, %s3018_s30  ;;  %p3023_p6 = scmp.lt.s32.totalorder %s113_s8, %s113_s8 }
  0x56   :  { %p3024_p7 = scmp.lt.s32.totalorder %s3022_s6, %s3018_s30 }
  0x58   :  { %p3025_p8 = por %p3024_p7, %p3023_p6 }
  0x5a   :  { %p3026_p9 = pnand %p3025_p8, %p3019_p5 }
  0x5c   :  { %3029 = shalt.err (!%p3026_p9)
}
  0x5d   :  { %115 = dma.hbm_to_vmem [thread:$0]  %s4261_s0, 16, %s113_s8, [#allocation16]  }
  0x5e   :  { %s3030_s11 = scalar_lea.hbm %s4215_s13, 3072 }
  0x5f   :  { %p3031_p10 = scmp.ne.s32.totalorder %s4215_s13, %s3030_s11  ;;  %p3034_p11 = scmp.lt.u32.totalorder %s3030_s11, %s4215_s13 }
  0x61   :  { %p3036_p12 = pnand %p3034_p11, %p3031_p10 }
  0x63   :  { %3039 = shalt.err (!%p3036_p12)
}
  0x64   :  { %s3040_s12 = scalar_lea.vmem %s3555_s3, 3072  ;;  %p3045_p0 = scmp.lt.s32.totalorder %s3555_s3, %s3555_s3 }
  0x65   :  { %p3041_p13 = scmp.ne.s32.totalorder %s3555_s3, %s3040_s12  ;;  %p3046_p1 = scmp.lt.s32.totalorder %s3040_s12, %s3040_s12 }
  0x67   :  { %p3047_p2 = por %p3046_p1, %p3045_p0 }
  0x69   :  { %p3048_p3 = pnand %p3047_p2, %p3041_p13 }
  0x6b   :  { %3051 = shalt.err (!%p3048_p3)
}
  0x6c   :  { %s3362_s8 = smov 384   ;;  %s3363_s0 = smov 24  }
  0x6d   :  { %137 = dma.hbm_to_vmem [thread:$0]  %s4215_s13, 3072, %s3555_s3, [#allocation19], %s3362_s8, %s3362_s8, %s3363_s0  }
  0x6e   :  { %s3364_s6 = smov [#allocation21]   ;;  %s3365_s10 = smov [#allocation24]  }
  0x6f   :  { %s154_s5 = sshll.u32 %s3364_s6, 4  ;;  %s179_s4 = sshll.u32 %s3365_s10, 4  ;;  %s155_s5 = int_to_ptr.vmem [resolvable:$true] %s154_s5  ;;  %s3589_s4 = int_to_ptr.vmem [resolvable:$true] %s179_s4 }
  0x70   :  { %s3052_s28 = scalar_lea.hbm %s4217_s15, 16 }
  0x71   :  { %p3053_p4 = scmp.ne.s32.totalorder %s4217_s15, %s3052_s28  ;;  %p3056_p5 = scmp.lt.u32.totalorder %s3052_s28, %s4217_s15 }
  0x73   :  { %p3058_p6 = pnand %p3056_p5, %p3053_p4 }
  0x75   :  { %3061 = shalt.err (!%p3058_p6)
}
  0x76   :  { %s3062_s13 = scalar_lea.vmem %s155_s5, 16  ;;  %s3066_s3 = scalar_lea.vmem %s155_s5, 32 }
  0x77   :  { %p3063_p7 = scmp.ne.s32.totalorder %s155_s5, %s3062_s13  ;;  %p3067_p8 = scmp.lt.s32.totalorder %s155_s5, %s155_s5 }
  0x78   :  { %p3068_p9 = scmp.lt.s32.totalorder %s3066_s3, %s3062_s13 }
  0x7a   :  { %p3069_p10 = por %p3068_p9, %p3067_p8 }
  0x7c   :  { %p3070_p11 = pnand %p3069_p10, %p3063_p7 }
  0x7e   :  { %3073 = shalt.err (!%p3070_p11)
}
  0x7f   :  { %157 = dma.hbm_to_vmem [thread:$0]  %s4217_s15, 16, %s155_s5, [#allocation22]  }
  0x80   :  { %s3074_s9 = scalar_lea.hbm %s4221_s19, 2048 }
  0x81   :  { %p3075_p12 = scmp.ne.s32.totalorder %s4221_s19, %s3074_s9  ;;  %p3078_p13 = scmp.lt.u32.totalorder %s3074_s9, %s4221_s19 }
  0x83   :  { %p3080_p0 = pnand %p3078_p13, %p3075_p12 }
  0x85   :  { %3083 = shalt.err (!%p3080_p0)
}
  0x86   :  { %s3084_s7 = scalar_lea.vmem %s3589_s4, 2048  ;;  %p3089_p2 = scmp.lt.s32.totalorder %s3589_s4, %s3589_s4 }
  0x87   :  { %p3085_p1 = scmp.ne.s32.totalorder %s3589_s4, %s3084_s7  ;;  %p3090_p3 = scmp.lt.s32.totalorder %s3084_s7, %s3084_s7 }
  0x89   :  { %p3091_p4 = por %p3090_p3, %p3089_p2 }
  0x8b   :  { %p3092_p5 = pnand %p3091_p4, %p3085_p1 }
  0x8d   :  { %3095 = shalt.err (!%p3092_p5)
}
  0x8e   :  { %s3366_s15 = smov 128   ;;  %s3367_s5 = smov 8  }
  0x8f   :  { %185 = dma.hbm_to_vmem [thread:$0]  %s4221_s19, 2048, %s3589_s4, [#allocation25], %s3366_s15, %s3366_s15, %s3367_s5  }
  0x90   :  { %s3368_s3 = smov [#allocation27]   ;;  %s3369_s30 = smov [#allocation6]  }
  0x91   :  { %s204_s1 = sshll.u32 %s3368_s3, 4  ;;  %s60_s6 = sshll.u32 %s3369_s30, 4  ;;  %s205_s1 = int_to_ptr.vmem [resolvable:$true] %s204_s1  ;;  %s61_s6 = int_to_ptr.vmem [resolvable:$true] %s60_s6 }
  0x92   :  { %s3096_s11 = scalar_lea.hbm %s4224_s22, 16 }
  0x93   :  { %p3097_p6 = scmp.ne.s32.totalorder %s4224_s22, %s3096_s11  ;;  %p3100_p7 = scmp.lt.u32.totalorder %s3096_s11, %s4224_s22 }
  0x95   :  { %p3102_p8 = pnand %p3100_p7, %p3097_p6 }
  0x97   :  { %3105 = shalt.err (!%p3102_p8)
}
  0x98   :  { %s3106_s19 = scalar_lea.vmem %s205_s1, 16  ;;  %s3110_s4 = scalar_lea.vmem %s205_s1, 32 }
  0x99   :  { %p3107_p9 = scmp.ne.s32.totalorder %s205_s1, %s3106_s19  ;;  %p3111_p10 = scmp.lt.s32.totalorder %s205_s1, %s205_s1 }
  0x9a   :  { %p3112_p11 = scmp.lt.s32.totalorder %s3110_s4, %s3106_s19 }
  0x9c   :  { %p3113_p12 = por %p3112_p11, %p3111_p10 }
  0x9e   :  { %p3114_p13 = pnand %p3113_p12, %p3107_p9 }
  0xa0   :  { %3117 = shalt.err (!%p3114_p13)
}
  0xa1   :  { %207 = dma.hbm_to_vmem [thread:$0]  %s4224_s22, 16, %s205_s1, [#allocation28]  }
  0xa2   :  { %s4262_s3 = sld [smem:[#allocation48_spill]] }
  0xa8   :  { %s3118_s30 = scalar_lea.hbm %s4262_s3, 16 }
  0xa9   :  { %p3119_p0 = scmp.ne.s32.totalorder %s4262_s3, %s3118_s30  ;;  %p3122_p1 = scmp.lt.u32.totalorder %s3118_s30, %s4262_s3 }
  0xab   :  { %p3124_p2 = pnand %p3122_p1, %p3119_p0 }
  0xad   :  { %3127 = shalt.err (!%p3124_p2)
}
  0xae   :  { %s3128_s29 = scalar_lea.vmem %s61_s6, 16  ;;  %s3132_s2 = scalar_lea.vmem %s61_s6, 32 }
  0xaf   :  { %p3129_p3 = scmp.ne.s32.totalorder %s61_s6, %s3128_s29  ;;  %p3133_p4 = scmp.lt.s32.totalorder %s61_s6, %s61_s6 }
  0xb0   :  { %p3134_p5 = scmp.lt.s32.totalorder %s3132_s2, %s3128_s29 }
  0xb2   :  { %p3135_p6 = por %p3134_p5, %p3133_p4 }
  0xb4   :  { %p3136_p7 = pnand %p3135_p6, %p3129_p3 }
  0xb6   :  { %3139 = shalt.err (!%p3136_p7)
}
  0xb7   :  { %63 = dma.hbm_to_vmem [thread:$0]  %s4262_s3, 16, %s61_s6, [#allocation7]  }
  0xb8   :  { %s3370_s7 = smov [#allocation11]   ;;  %s3371_s4 = smov [#allocation14]  }
  0xb9   :  { %s80_s19 = sshll.u32 %s3370_s7, 4  ;;  %s100_s15 = sshll.u32 %s3371_s4, 4  ;;  %s81_s19 = int_to_ptr.vmem [resolvable:$true] %s80_s19  ;;  %s101_s15 = int_to_ptr.vmem [resolvable:$true] %s100_s15 }
  0xba   :  { %s4263_s13 = sld [smem:[#allocation50_spill]] }
  0xc0   :  { %s3140_s30 = scalar_lea.hbm %s4263_s13, 128 }
  0xc1   :  { %p3141_p8 = scmp.ne.s32.totalorder %s4263_s13, %s3140_s30  ;;  %p3144_p9 = scmp.lt.u32.totalorder %s3140_s30, %s4263_s13 }
  0xc3   :  { %p3146_p10 = pnand %p3144_p9, %p3141_p8 }
  0xc5   :  { %3149 = shalt.err (!%p3146_p10)
}
  0xc6   :  { %s3150_s6 = scalar_lea.vmem %s81_s19, 128  ;;  %p3155_p12 = scmp.lt.s32.totalorder %s81_s19, %s81_s19 }
  0xc7   :  { %p3151_p11 = scmp.ne.s32.totalorder %s81_s19, %s3150_s6  ;;  %p3156_p13 = scmp.lt.s32.totalorder %s3150_s6, %s3150_s6 }
  0xc9   :  { %p3157_p0 = por %p3156_p13, %p3155_p12 }
  0xcb   :  { %p3158_p1 = pnand %p3157_p0, %p3151_p11 }
  0xcd   :  { %3161 = shalt.err (!%p3158_p1)
}
  0xce   :  { %83 = dma.hbm_to_vmem [thread:$0]  %s4263_s13, 128, %s81_s19, [#allocation10]  }
  0xcf   :  { %s4264_s1 = sld [smem:[#allocation52_spill]] }
  0xd5   :  { %s3162_s7 = scalar_lea.hbm %s4264_s1, 16 }
  0xd6   :  { %p3163_p2 = scmp.ne.s32.totalorder %s4264_s1, %s3162_s7  ;;  %p3166_p3 = scmp.lt.u32.totalorder %s3162_s7, %s4264_s1 }
  0xd8   :  { %p3168_p4 = pnand %p3166_p3, %p3163_p2 }
  0xda   :  { %3171 = shalt.err (!%p3168_p4)
}
  0xdb   :  { %s3172_s10 = scalar_lea.vmem %s101_s15, 16  ;;  %s3176_s9 = scalar_lea.vmem %s101_s15, 32 }
  0xdc   :  { %p3173_p5 = scmp.ne.s32.totalorder %s101_s15, %s3172_s10  ;;  %p3177_p6 = scmp.lt.s32.totalorder %s101_s15, %s101_s15 }
  0xdd   :  { %p3178_p7 = scmp.lt.s32.totalorder %s3176_s9, %s3172_s10 }
  0xdf   :  { %p3179_p8 = por %p3178_p7, %p3177_p6 }
  0xe1   :  { %p3180_p9 = pnand %p3179_p8, %p3173_p5 }
  0xe3   :  { %3183 = shalt.err (!%p3180_p9)
}
  0xe4   :  { %103 = dma.hbm_to_vmem [thread:$0]  %s4264_s1, 16, %s101_s15, [#allocation13]  }
  0xe5   :  { %s3372_s11 = smov [#allocation17]   ;;  %s3373_s6 = smov [#allocation20]  }
  0xe6   :  { %s122_s28 = sshll.u32 %s3372_s11, 4  ;;  %s144_s3 = sshll.u32 %s3373_s6, 4  ;;  %s123_s28 = int_to_ptr.vmem [resolvable:$true] %s122_s28  ;;  %s145_s3 = int_to_ptr.vmem [resolvable:$true] %s144_s3 }
  0xe7   :  { %s4265_s22 = sld [smem:[#allocation55_spill]] }
  0xed   :  { %s3184_s7 = scalar_lea.hbm %s4265_s22, 16 }
  0xee   :  { %p3185_p10 = scmp.ne.s32.totalorder %s4265_s22, %s3184_s7  ;;  %p3188_p11 = scmp.lt.u32.totalorder %s3184_s7, %s4265_s22 }
  0xf0   :  { %p3190_p12 = pnand %p3188_p11, %p3185_p10 }
  0xf2   :  { %3193 = shalt.err (!%p3190_p12)
}
  0xf3   :  { %s3194_s15 = scalar_lea.vmem %s123_s28, 16  ;;  %s3198_s1 = scalar_lea.vmem %s123_s28, 32 }
  0xf4   :  { %p3195_p13 = scmp.ne.s32.totalorder %s123_s28, %s3194_s15  ;;  %p3199_p0 = scmp.lt.s32.totalorder %s123_s28, %s123_s28 }
  0xf5   :  { %p3200_p1 = scmp.lt.s32.totalorder %s3198_s1, %s3194_s15 }
  0xf7   :  { %p3201_p2 = por %p3200_p1, %p3199_p0 }
  0xf9   :  { %p3202_p3 = pnand %p3201_p2, %p3195_p13 }
  0xfb   :  { %3205 = shalt.err (!%p3202_p3)
}
  0xfc   :  { %125 = dma.hbm_to_vmem [thread:$0]  %s4265_s22, 16, %s123_s28, [#allocation16]  }
  0xfd   :  { %s3206_s11 = scalar_lea.hbm %s4216_s14, 16 }
  0xfe   :  { %p3207_p4 = scmp.ne.s32.totalorder %s4216_s14, %s3206_s11  ;;  %p3210_p5 = scmp.lt.u32.totalorder %s3206_s11, %s4216_s14 }
 0x100   :  { %p3212_p6 = pnand %p3210_p5, %p3207_p4 }
 0x102   :  { %3215 = shalt.err (!%p3212_p6)
}
 0x103   :  { %s3216_s4 = scalar_lea.vmem %s145_s3, 16  ;;  %s3220_s5 = scalar_lea.vmem %s145_s3, 32 }
 0x104   :  { %p3217_p7 = scmp.ne.s32.totalorder %s145_s3, %s3216_s4  ;;  %p3221_p8 = scmp.lt.s32.totalorder %s145_s3, %s145_s3 }
 0x105   :  { %p3222_p9 = scmp.lt.s32.totalorder %s3220_s5, %s3216_s4 }
 0x107   :  { %p3223_p10 = por %p3222_p9, %p3221_p8 }
 0x109   :  { %p3224_p11 = pnand %p3223_p10, %p3217_p7 }
 0x10b   :  { %3227 = shalt.err (!%p3224_p11)
}
 0x10c   :  { %147 = dma.hbm_to_vmem [thread:$0]  %s4216_s14, 16, %s145_s3, [#allocation19]  }
 0x10d   :  { %s3374_s12 = smov [#allocation23]   ;;  %s3375_s15 = smov [#allocation26]  }
 0x10e   :  { %s163_s30 = sshll.u32 %s3374_s12, 4  ;;  %s194_s1 = sshll.u32 %s3375_s15, 4  ;;  %s164_s30 = int_to_ptr.vmem [resolvable:$true] %s163_s30  ;;  %s195_s1 = int_to_ptr.vmem [resolvable:$true] %s194_s1 }
 0x10f   :  { %s3228_s19 = scalar_lea.hbm %s4218_s16, 6144 }
 0x110   :  { %p3229_p12 = scmp.ne.s32.totalorder %s4218_s16, %s3228_s19  ;;  %p3232_p13 = scmp.lt.u32.totalorder %s3228_s19, %s4218_s16 }
 0x112   :  { %p3234_p0 = pnand %p3232_p13, %p3229_p12 }
 0x114   :  { %3237 = shalt.err (!%p3234_p0)
}
 0x115   :  { %s3238_s14 = scalar_lea.vmem %s164_s30, 6144  ;;  %p3243_p2 = scmp.lt.s32.totalorder %s164_s30, %s164_s30 }
 0x116   :  { %p3239_p1 = scmp.ne.s32.totalorder %s164_s30, %s3238_s14  ;;  %p3244_p3 = scmp.lt.s32.totalorder %s3238_s14, %s3238_s14 }
 0x118   :  { %p3245_p4 = por %p3244_p3, %p3243_p2 }
 0x11a   :  { %p3246_p5 = pnand %p3245_p4, %p3239_p1 }
 0x11c   :  { %3249 = shalt.err (!%p3246_p5)
}
 0x11d   :  { %169 = dma.hbm_to_vmem [thread:$0]  %s4218_s16, 6144, %s164_s30, [#allocation22], %s3362_s8, %s3362_s8, %s3363_s0  }
 0x11e   :  { %s3250_s5 = scalar_lea.hbm %s4223_s21, 16 }
 0x11f   :  { %p3251_p6 = scmp.ne.s32.totalorder %s4223_s21, %s3250_s5  ;;  %p3254_p7 = scmp.lt.u32.totalorder %s3250_s5, %s4223_s21 }
 0x121   :  { %p3256_p8 = pnand %p3254_p7, %p3251_p6 }
 0x123   :  { %3259 = shalt.err (!%p3256_p8)
}
 0x124   :  { %s3260_s10 = scalar_lea.vmem %s195_s1, 16  ;;  %s3264_s9 = scalar_lea.vmem %s195_s1, 32 }
 0x125   :  { %p3261_p9 = scmp.ne.s32.totalorder %s195_s1, %s3260_s10  ;;  %p3265_p10 = scmp.lt.s32.totalorder %s195_s1, %s195_s1 }
 0x126   :  { %p3266_p11 = scmp.lt.s32.totalorder %s3264_s9, %s3260_s10 }
 0x128   :  { %p3267_p12 = por %p3266_p11, %p3265_p10 }
 0x12a   :  { %p3268_p13 = pnand %p3267_p12, %p3261_p9 }
 0x12c   :  { %3271 = shalt.err (!%p3268_p13)
}
 0x12d   :  { %197 = dma.hbm_to_vmem [thread:$0]  %s4223_s21, 16, %s195_s1, [#allocation25]  }
 0x12e   :  { %s3376_s0 = smov [#allocation29]   ;;  %s3272_s11 = scalar_lea.hbm %s4225_s23, 16 }
 0x12f   :  { %s214_s30 = sshll.u32 %s3376_s0, 4  ;;  %p3273_p0 = scmp.ne.s32.totalorder %s4225_s23, %s3272_s11  ;;  %s215_s30 = int_to_ptr.vmem [resolvable:$true] %s214_s30 }
 0x130   :  { %p3276_p1 = scmp.lt.u32.totalorder %s3272_s11, %s4225_s23 }
 0x132   :  { %p3278_p2 = pnand %p3276_p1, %p3273_p0 }
 0x134   :  { %3281 = shalt.err (!%p3278_p2)
}
 0x135   :  { %s3282_s2 = scalar_lea.vmem %s215_s30, 16  ;;  %s3286_s21 = scalar_lea.vmem %s215_s30, 32 }
 0x136   :  { %p3283_p3 = scmp.ne.s32.totalorder %s215_s30, %s3282_s2  ;;  %p3287_p4 = scmp.lt.s32.totalorder %s215_s30, %s215_s30 }
 0x137   :  { %p3288_p5 = scmp.lt.s32.totalorder %s3286_s21, %s3282_s2 }
 0x139   :  { %p3289_p6 = por %p3288_p5, %p3287_p4 }
 0x13b   :  { %p3290_p7 = pnand %p3289_p6, %p3283_p3 }
 0x13d   :  { %3293 = shalt.err (!%p3290_p7)
}
 0x13e   :  { %217 = dma.hbm_to_vmem [thread:$0]  %s4225_s23, 16, %s215_s30, [#allocation28]  }
 0x13f   :  { %3338 = dma.done.wait [#allocation7], 16  }
 0x140   :  { %3339 = vsyncadd [#allocation7], 4294967280 }
 0x141   :  { %3340 = dma.done.wait [#allocation10], 144  }
 0x142   :  { %3341 = vsyncadd [#allocation10], 4294967152 }
 0x143   :  { %3342 = dma.done.wait [#allocation13], 32  }
 0x144   :  { %3343 = vsyncadd [#allocation13], 4294967264 }
 0x145   :  { %3344 = dma.done.wait [#allocation16], 32  }
 0x146   :  { %3345 = vsyncadd [#allocation16], 4294967264 }
 0x147   :  { %3346 = dma.done.wait [#allocation19], 3088  }
 0x148   :  { %3347 = vsyncadd [#allocation19], 4294964208 }
 0x149   :  { %3348 = dma.done.wait [#allocation22], 6160  }
 0x14a   :  { %3349 = vsyncadd [#allocation22], 4294961136 }
 0x14b   :  { %3350 = dma.done.wait [#allocation25], 2064  }
 0x14c   :  { %3351 = vsyncadd [#allocation25], 4294965232 }
 0x14d   :  { %3352 = dma.done.wait [#allocation28], 32  }
 0x14e   :  { %3353 = vsyncadd [#allocation28], 4294967264  ;;  %v3377_v0 = vmov 0.0   ;;  %v3378_v1 = vmov 0   ;;  %v303_v2 = vld [vmem:[#allocation11] sm:$0xff]  ;;  %vm319_vm0 = vcmask 1043456   ;;  %v417_v48 = vlaneseq }
 0x14f   :  { %388 = vmatprep.mubr.f32.mxu0 %v3377_v0  ;;  %2913 = vset.pattern.permute.xlu0 %v3378_v1  ;;  %s4266_s5 = sld [smem:[#allocation43_spill]]  ;;  %v2374_v4 = vld [vmem:[#allocation6] ss:$0 sm:$0xff]  ;;  %v305_v5 = vcombine.high %v303_v2, %v303_v2  ;;  %v2375_v7 = vld [vmem:[#allocation9] ss:$0 sm:$0xff]  ;;  %vm306_vm1 = vcmask 31744  }
 0x150   :  { %2914 = vset.pattern.permute.xlu1 %v3378_v1  ;;  %624 = vmatprep.mubr.f32.mxu1 %v3377_v0  ;;  %s4267_s16 = sld [smem:[#allocation44_spill]]  ;;  %s4268_s13 = sld [smem:[#allocation45_spill]]  ;;  %v3819_v50 = vshrl.u32 %v417_v48, 7  ;;  %vm547_vm4 = vcmask 523264   ;;  %vm3381_vm5 = vmmov 0   ;;  %vm1339_vm6 = vcmask 261120  }
 0x151   :  { %2376 = vmatprep.subr.msk.mxu0 %vm319_vm0, %v305_v5  ;;  %s4269_s4 = sld [smem:[#allocation53_spill]]  ;;  %s3379_s30 = smov 64   ;;  %vm1462_vm7 = vcmask 254976   ;;  %vm1578_vm8 = vcmask 257026   ;;  %vm1695_vm9 = vcmask 259076   ;;  %vm1812_vm10 = vcmask 261126  }
 0x152   :  { %2377 = vmatpush1.msk.msra.mxu0 %vm319_vm0, %v303_v2  ;;  %vm419_vm2 = vcmp.lt.s32.totalorder %v3819_v50, 1  ;;  %vm452_vm3 = vcmp.lt.s32.totalorder %v3819_v50, 7  ;;  %s4270_s29 = sld [smem:[#allocation46_spill]]  ;;  %s4271_s1 = sld [smem:[#allocation47_spill]] }
 0x153   :  { %s3385_s10 = smov [#allocation31]  }
 0x154   :  { %s2354_s9 = sshll.u32 %s3385_s10, 4  ;;  %s2355_s9 = int_to_ptr.vmem [resolvable:$true] %s2354_s9 }
 0x155   :  { %v269_v3 = vld [vmem:[%s4266_s5] sm:$0xff]  ;;  %v270_v8 = vld [vmem:[%s4266_s5 + $0x8] sm:$0xff]  ;;  %v271_v10 = vld [vmem:[%s4266_s5 + $0x10] sm:$0xff] }
 0x156   :  { %v280_v6 = vmul.f32 %v2374_v4, %v269_v3  ;;  %v281_v9 = vmul.f32 %v2374_v4, %v270_v8  ;;  %v295_v11 = vld [vmem:[%s4267_s16] sm:$0xff]  ;;  %v296_v12 = vld [vmem:[%s4267_s16 + $0x8] sm:$0xff]  ;;  %v282_v16 = vmul.f32 %v2374_v4, %v271_v10  ;;  %v272_v18 = vld [vmem:[%s4266_s5 + $0x18] sm:$0xff] }
 0x157   :  { %426 = vperm.xlu0 %2913, %v295_v11   ;;  %431 = vperm.xlu1 %2914, %v296_v12   ;;  %v299_v14 = vld [vmem:[%s4268_s13] sm:$0xff]  ;;  %v300_v17 = vld [vmem:[%s4268_s13 + $0x8] sm:$0xff]  ;;  %v297_v19 = vld [vmem:[%s4267_s16 + $0x10] sm:$0xff]  ;;  %v283_v21 = vmul.f32 %v2374_v4, %v272_v18 }
 0x158   :  { %v291_v13 = vadd.f32 %v2375_v7, %v280_v6  ;;  %v292_v15 = vadd.f32 %v2375_v7, %v281_v9  ;;  %v293_v20 = vadd.f32 %v2375_v7, %v282_v16  ;;  %v301_v22 = vld [vmem:[%s4268_s13 + $0x10] sm:$0xff]  ;;  %v532_v24 = vld [vmem:[%s4269_s4 + $0x8] sm:$0xff]  ;;  %v534_v25 = vld [vmem:[%s4269_s4 + $0x18] sm:$0xff] }
 0x159   :  { %v294_v23 = vadd.f32 %v2375_v7, %v283_v21  ;;  %v531_v26 = vld [vmem:[%s4269_s4] sm:$0xff]  ;;  %v2695_v27 = vpack.c.bf16 %v534_v25, %v532_v24  ;;  %v533_v28 = vld [vmem:[%s4269_s4 + $0x10] sm:$0xff]  ;;  %v536_v29 = vld [vmem:[%s4269_s4 + $0x28] sm:$0xff] }
 0x15a   :  { %2378 = vmatmul.mubr.msk.f32.vlgmr.msra.gmra.mrb[0].mxu0 %vm306_vm1, %v291_v13  ;;  %v538_v30 = vld [vmem:[%s4269_s4 + $0x38] sm:$0xff]  ;;  %v2697_v31 = vpack.c.bf16 %v533_v28, %v531_v26  ;;  %v535_v33 = vld [vmem:[%s4269_s4 + $0x20] sm:$0xff]  ;;  %v537_v34 = vld [vmem:[%s4269_s4 + $0x30] sm:$0xff] }
 0x15b   :  { %394 = vmatprep.mubr.f32.mxu0 %v3377_v0  ;;  %459 = vperm.xlu0 %2913, %v299_v14   ;;  %v2699_v32 = vpack.c.bf16 %v538_v30, %v536_v29  ;;  %v2701_v35 = vpack.c.bf16 %v537_v34, %v535_v33  ;;  %v540_v36 = vld [vmem:[%s4269_s4 + $0x48] sm:$0xff]  ;;  %v542_v37 = vld [vmem:[%s4269_s4 + $0x58] sm:$0xff]  ;;  %v539_v39 = vld [vmem:[%s4269_s4 + $0x40] sm:$0xff] }
 0x15c   :  { %464 = vperm.xlu1 %2914, %v300_v17   ;;  %2696 = vmatprep.subr.bf16.mxu1 %v2695_v27  ;;  %v2703_v38 = vpack.c.bf16 %v542_v37, %v540_v36  ;;  %v541_v40 = vld [vmem:[%s4269_s4 + $0x50] sm:$0xff]  ;;  %v544_v42 = vld [vmem:[%s4269_s4 + $0x68] sm:$0xff]  ;;  %v546_v43 = vld [vmem:[%s4269_s4 + $0x78] sm:$0xff] }
 0x15d   :  { %2698 = vmatpush1.bf16.msra.mxu1 %v2697_v31  ;;  %v2705_v41 = vpack.c.bf16 %v541_v40, %v539_v39  ;;  %v2707_v44 = vpack.c.bf16 %v546_v43, %v544_v42  ;;  %v543_v45 = vld [vmem:[%s4269_s4 + $0x60] sm:$0xff]  ;;  %v545_v46 = vld [vmem:[%s4269_s4 + $0x70] sm:$0xff]  ;;  %v298_v52 = vld [vmem:[%s4267_s16 + $0x18] sm:$0xff] }
 0x15e   :  { %2379 = vmatmul.mubr.msk.f32.gmra.mrb[2].mxu0 %vm306_vm1, %v292_v15  ;;  %2700 = vmatprep.subr.bf16.mxu1 %v2699_v32  ;;  %v2709_v47 = vpack.c.bf16 %v545_v46, %v543_v45  ;;  %v302_v59 = vld [vmem:[%s4268_s13 + $0x18] sm:$0xff]  ;;  %v2383_v26 = vld [vmem:[#allocation14] ss:$0 sm:$0xff] }
 0x15f   :  { %400 = vmatprep.mubr.f32.mxu0 %v3377_v0  ;;  %436 = vperm.xlu0 %2913, %v297_v19  }
 0x161   :  { %2702 = vmatpush1.bf16.msra.mxu1 %v2701_v35 }
 0x162   :  { %2380 = vmatmul.mubr.msk.f32.gmra.mrb[4].mxu0 %vm306_vm1, %v293_v20  ;;  %2704 = vmatprep.subr.bf16.mxu1 %v2703_v38 }
 0x163   :  { %406 = vmatprep.mubr.f32.mxu0 %v3377_v0  ;;  %469 = vperm.xlu0 %2913, %v301_v22  }
 0x165   :  { %2706 = vmatpush1.bf16.msra.mxu1 %v2705_v41 }
 0x166   :  { %2381 = vmatmul.mubr.msk.f32.gmra.mrb[6].mxu0 %vm306_vm1, %v294_v23  ;;  %2708 = vmatprep.subr.bf16.mxu1 %v2707_v44  ;;  %v2382_v23 = vld [vmem:[#allocation12] ss:$0 sm:$0xff] }
 0x167   :  { %840 = vmatprep.mubr.f32.mxu0 %v3377_v0 }
 0x169   :  { %2710 = vmatpush1.bf16.msra.mxu1 %v2709_v47 }
 0x1d6   :  { %v3849_v13 = vpop.permute.xlu0 %426  ;;  %v3853_v15 = vpop.permute.xlu1 %431 }
 0x1da   :  { %v3851_v14 = vpop.permute.xlu0 %459 }
 0x1db   :  { %v3857_v17 = vpop.permute.xlu1 %464 }
 0x1de   :  { %v3855_v16 = vpop.permute.xlu0 %436 }
 0x1e2   :  { %v3860_v19 = vpop.permute.xlu0 %469 }
 0x22d   :  { %v390_v49 = vpop.f32.mrb[0].mxu0 }
 0x22e   :  { %485 = vrot.lane.b32.xlu1 %v390_v49, %s3379_s30  ;;  %v392_v51 = vpop.f32.mrb[1].mxu0  ;;  %v413_v54 = vrot.slane %v390_v49, 7 }
 0x22f   :  { %v448_v57 = vrot.slane %v392_v51, 1 }
 0x231   :  { %v396_v53 = vpop.f32.mrb[2].mxu0 }
 0x232   :  { %v414_v55 = vrot.slane %v396_v53, 7  ;;  %441 = vperm.xlu1 %2914, %v298_v52   ;;  %487 = vrot.lane.b32.xlu0 %v396_v53, %s3379_s30  ;;  %v398_v56 = vpop.f32.mrb[3].mxu0 }
 0x233   :  { %v449_v58 = vrot.slane %v398_v56, 1 }
 0x234   :  { %v422_v60 = vsel %vm419_vm2, %v413_v54, %v414_v55 }
 0x235   :  { %v455_v61 = vsel %vm452_vm3, %v448_v57, %v449_v58  ;;  %v402_v62 = vpop.f32.mrb[4].mxu0  ;;  %v445_v24 = vmul.f32 %v3853_v15, %v422_v60 }
 0x236   :  { %v415_v63 = vrot.slane %v402_v62, 7  ;;  %474 = vperm.xlu1 %2914, %v302_v59   ;;  %489 = vrot.lane.b32.xlu0 %v402_v62, %s3379_s30  ;;  %v404_v1 = vpop.f32.mrb[5].mxu0  ;;  %v477_v21 = vmul.f32 %v3851_v14, %v455_v61  ;;  %v746_v61 = vld [vmem:[#allocation18] sm:$0xff]  ;;  %v749_v62 = vld [vmem:[#allocation18 + $0x18] sm:$0xff] }
 0x237   :  { %v450_v2 = vrot.slane %v404_v1, 1 }
 0x238   :  { %v421_v3 = vsel %vm419_vm2, %v414_v55, %v415_v63 }
 0x239   :  { %v408_v4 = vpop.f32.mrb[6].mxu0  ;;  %v454_v5 = vsel %vm452_vm3, %v449_v58, %v450_v2  ;;  %v446_v31 = vmul.f32 %v3855_v16, %v421_v3  ;;  %v750_v58 = vld [vmem:[#allocation18 + $0x20] sm:$0xff]  ;;  %v756_v3 = vld [vmem:[#allocation18 + $0x50] sm:$0xff] }
 0x23a   :  { %v416_v6 = vrot.slane %v408_v4, 7  ;;  %v410_v7 = vpop.f32.mrb[7].mxu0  ;;  %491 = vrot.lane.b32.xlu1 %v408_v4, %s3379_s30  ;;  %v478_v28 = vmul.f32 %v3857_v17, %v454_v5 }
 0x23b   :  { %v451_v8 = vrot.slane %v410_v7, 1 }
 0x23c   :  { %v423_v9 = vsel %vm419_vm2, %v416_v6, %v413_v54  ;;  %v420_v10 = vsel %vm419_vm2, %v415_v63, %v416_v6  ;;  %v2713_v63 = vpack.c.bf16 %v749_v62, %v746_v61  ;;  %v766_v62 = vld [vmem:[#allocation18 + $0xa0] sm:$0xff] }
 0x23d   :  { %v453_v11 = vsel %vm452_vm3, %v450_v2, %v451_v8  ;;  %v456_v12 = vsel %vm452_vm3, %v451_v8, %v448_v57  ;;  %v444_v18 = vmul.f32 %v3849_v13, %v423_v9  ;;  %v747_v57 = vld [vmem:[#allocation18 + $0x8] sm:$0xff]  ;;  %v753_v2 = vld [vmem:[#allocation18 + $0x38] sm:$0xff]  ;;  %v752_v8 = vld [vmem:[#allocation18 + $0x30] sm:$0xff] }
 0x23e   :  { %v479_v35 = vmul.f32 %v3860_v19, %v453_v11  ;;  %v2711_v60 = vpack.c.bf16 %v750_v58, %v747_v57  ;;  %v2715_v7 = vpack.c.bf16 %v756_v3, %v753_v2  ;;  %v755_v9 = vld [vmem:[#allocation18 + $0x48] sm:$0xff]  ;;  %v745_v2 = vld [vmem:[%s4271_s1 + $0x8] sm:$0xff] }
 0x23f   :  { %v744_v57 = vld [vmem:[%s4271_s1] sm:$0xff] }
 0x240   :  { %2712 = vmatprep.subr.bf16.mxu0 %v2711_v60 }
 0x241   :  { %2714 = vmatpush1.bf16.msra.mxu0 %v2713_v63  ;;  %v769_v63 = vld [vmem:[#allocation18 + $0xb8] sm:$0xff] }
 0x242   :  { %2716 = vmatprep.subr.bf16.mxu0 %v2715_v7  ;;  %v2388_v7 = vld [vmem:[#allocation15] ss:$0 sm:$0xff] }
 0x2a0   :  { %v486_v20 = vpop.permute.xlu1 %485 }
 0x2a1   :  { %v497_v22 = vadd.f32 %v486_v20, %v444_v18 }
 0x2a3   :  { %v501_v25 = vadd.f32 %v497_v22, %v477_v21  ;;  %v759_v22 = vld [vmem:[#allocation18 + $0x68] sm:$0xff] }
 0x2a4   :  { %v488_v27 = vpop.permute.xlu0 %487 }
 0x2a5   :  { %v512_v29 = vmul.f32 %v2382_v23, %v501_v25  ;;  %v498_v30 = vadd.f32 %v488_v27, %v445_v24  ;;  %v758_v27 = vld [vmem:[#allocation18 + $0x60] sm:$0xff] }
 0x2a7   :  { %v523_v32 = vadd.f32 %v2383_v26, %v512_v29  ;;  %v502_v33 = vadd.f32 %v498_v30, %v478_v28  ;;  %v761_v28 = vld [vmem:[#allocation18 + $0x78] sm:$0xff]  ;;  %v742_v30 = vld [vmem:[%s4270_s29] sm:$0xff] }
 0x2a8   :  { %v490_v34 = vpop.permute.xlu0 %489 }
 0x2a9   :  { %v527_v36 = vmax.f32 %v523_v32, 0.0  ;;  %v513_v37 = vmul.f32 %v2382_v23, %v502_v33  ;;  %v499_v38 = vadd.f32 %v490_v34, %v446_v31  ;;  %v2721_v31 = vpack.c.bf16 %v761_v28, %v758_v27  ;;  %v765_v34 = vld [vmem:[#allocation18 + $0x98] sm:$0xff] }
 0x2ab   :  { %v524_v39 = vadd.f32 %v2383_v26, %v513_v37  ;;  %v503_v40 = vadd.f32 %v499_v38, %v479_v35  ;;  %2384 = vmatmul.mubr.msk.f32.vlgmr.msra.gmra.mrb[0].mxu1 %vm547_vm4, %v527_v36  ;;  %v768_v35 = vld [vmem:[#allocation18 + $0xb0] sm:$0xff]  ;;  %v767_v38 = vld [vmem:[#allocation18 + $0xa8] sm:$0xff] }
 0x2ac   :  { %630 = vmatprep.mubr.f32.mxu1 %v3377_v0  ;;  %v2723_v36 = vpack.c.bf16 %v768_v35, %v765_v34  ;;  %v764_v37 = vld [vmem:[#allocation18 + $0x90] sm:$0xff] }
 0x2ad   :  { %v528_v41 = vmax.f32 %v524_v39, 0.0  ;;  %v514_v42 = vmul.f32 %v2382_v23, %v503_v40  ;;  %v743_v39 = vld [vmem:[%s4270_s29 + $0x8] sm:$0xff]  ;;  %v2725_v40 = vpack.c.bf16 %v767_v38, %v764_v37 }
 0x2af   :  { %v525_v43 = vadd.f32 %v2383_v26, %v514_v42  ;;  %2385 = vmatmul.mubr.msk.f32.gmra.mrb[2].mxu1 %vm547_vm4, %v528_v41  ;;  %v748_v41 = vld [vmem:[#allocation18 + $0x10] sm:$0xff]  ;;  %v751_v42 = vld [vmem:[#allocation18 + $0x28] sm:$0xff] }
 0x2b0   :  { %636 = vmatprep.mubr.f32.mxu1 %v3377_v0 }
 0x2b1   :  { %v529_v44 = vmax.f32 %v525_v43, 0.0  ;;  %v3871_v45 = vpop.permute.xlu1 %441  ;;  %v2727_v43 = vpack.c.bf16 %v751_v42, %v748_v41 }
 0x2b2   :  { %v447_v47 = vmul.f32 %v3871_v45, %v420_v10 }
 0x2b3   :  { %2386 = vmatmul.mubr.msk.f32.gmra.mrb[4].mxu1 %vm547_vm4, %v529_v44  ;;  %2728 = vmatprep.subr.bf16.mxu1 %v2727_v43  ;;  %v754_v44 = vld [vmem:[#allocation18 + $0x40] sm:$0xff] }
 0x2b4   :  { %642 = vmatprep.mubr.f32.mxu1 %v3377_v0  ;;  %2730 = vmatpush3.bf16.msra.mxu1 %v2727_v43 }
 0x2b5   :  { %v3875_v46 = vpop.permute.xlu1 %474 }
 0x2b6   :  { %v480_v49 = vmul.f32 %v3875_v46, %v456_v12  ;;  %v2717_v12 = vpack.c.bf16 %v755_v9, %v752_v8 }
 0x2b8   :  { %2718 = vmatpush1.bf16.msra.mxu0 %v2717_v12 }
 0x2b9   :  { %v492_v48 = vpop.permute.xlu1 %491 }
 0x2ba   :  { %v500_v51 = vadd.f32 %v492_v48, %v447_v47  ;;  %v757_v47 = vld [vmem:[#allocation18 + $0x58] sm:$0xff] }
 0x2bb   :  { %v2731_v48 = vpack.c.bf16 %v757_v47, %v754_v44 }
 0x2bc   :  { %v504_v52 = vadd.f32 %v500_v51, %v480_v49  ;;  %v760_v51 = vld [vmem:[#allocation18 + $0x70] sm:$0xff] }
 0x2bd   :  { %2732 = vmatprep.subr.bf16.mxu1 %v2731_v48 }
 0x2be   :  { %v515_v53 = vmul.f32 %v2382_v23, %v504_v52  ;;  %v762_v23 = vld [vmem:[#allocation18 + $0x80] sm:$0xff]  ;;  %2734 = vmatpush3.bf16.msra.mxu1 %v2731_v48  ;;  %v763_v52 = vld [vmem:[#allocation18 + $0x88] sm:$0xff] }
 0x2c0   :  { %v526_v54 = vadd.f32 %v2383_v26, %v515_v53  ;;  %v2719_v26 = vpack.c.bf16 %v762_v23, %v759_v22 }
 0x2c2   :  { %v530_v55 = vmax.f32 %v526_v54, 0.0  ;;  %2720 = vmatprep.subr.bf16.mxu0 %v2719_v26 }
 0x2c3   :  { %2722 = vmatpush1.bf16.msra.mxu0 %v2721_v31 }
 0x2c4   :  { %2387 = vmatmul.mubr.msk.f32.gmra.mrb[6].mxu1 %vm547_vm4, %v530_v55  ;;  %2724 = vmatprep.subr.bf16.mxu0 %v2723_v36  ;;  %v2735_v55 = vpack.c.bf16 %v763_v52, %v760_v51  ;;  %v985_v52 = vld [vmem:[#allocation23 + $0x8] sm:$0xff] }
 0x2c6   :  { %2736 = vmatprep.subr.bf16.mxu1 %v2735_v55 }
 0x2c7   :  { %2726 = vmatpush1.bf16.msra.mxu0 %v2725_v40  ;;  %2738 = vmatpush3.bf16.msra.mxu1 %v2735_v55  ;;  %v984_v55 = vld [vmem:[#allocation23] sm:$0xff] }
 0x37e   :  { %v3880_v56 = vpop.f32.mrb[0].mxu1 }
 0x37f   :  { %677 = vrot.lane.b32.xlu0 %v3880_v56, %s3379_s30  ;;  %v3884_v59 = vpop.f32.mrb[1].mxu1  ;;  %v649_v4 = vrot.slane %v3880_v56, 7 }
 0x380   :  { %v661_v10 = vrot.slane %v3884_v59, 1 }
 0x382   :  { %v632_v1 = vpop.f32.mrb[2].mxu1 }
 0x383   :  { %v650_v5 = vrot.slane %v632_v1, 7  ;;  %679 = vrot.lane.b32.xlu1 %v632_v1, %s3379_s30  ;;  %v634_v6 = vpop.f32.mrb[3].mxu1  ;;  %v2739_v1 = vpack.c.bf16 %v769_v63, %v766_v62  ;;  %v994_v62 = vld [vmem:[#allocation23 + $0x50] sm:$0xff] }
 0x384   :  { %v662_v11 = vrot.slane %v634_v6, 1  ;;  %v990_v63 = vld [vmem:[#allocation23 + $0x30] sm:$0xff] }
 0x385   :  { %v3891_v18 = vsel %vm419_vm2, %v649_v4, %v650_v5  ;;  %2740 = vmatprep.subr.bf16.mxu1 %v2739_v1 }
 0x386   :  { %v3895_v20 = vsel %vm452_vm3, %v661_v10, %v662_v11  ;;  %v638_v21 = vpop.f32.mrb[4].mxu1  ;;  %2742 = vmatpush3.bf16.msra.mxu1 %v2739_v1  ;;  %v658_v9 = vmul.f32 %v3891_v18, %v3853_v15 }
 0x387   :  { %v651_v24 = vrot.slane %v638_v21, 7  ;;  %681 = vrot.lane.b32.xlu0 %v638_v21, %s3379_s30  ;;  %v640_v25 = vpop.f32.mrb[5].mxu1 }
 0x388   :  { %v663_v29 = vrot.slane %v640_v25, 1 }
 0x389   :  { %v654_v32 = vsel %vm419_vm2, %v650_v5, %v651_v24  ;;  %v669_v5 = vmul.f32 %v3895_v20, %v3851_v14 }
 0x38a   :  { %v666_v33 = vsel %vm452_vm3, %v662_v11, %v663_v29 }
 0x38b   :  { %934 = vperm.xlu0 %2913, %v742_v30   ;;  %v670_v21 = vmul.f32 %v666_v33, %v3857_v17 }
 0x38f   :  { %939 = vperm.xlu0 %2913, %v743_v39  }
 0x397   :  { %v644_v49 = vpop.f32.mrb[6].mxu1 }
 0x398   :  { %v652_v53 = vrot.slane %v644_v49, 7  ;;  %683 = vrot.lane.b32.xlu1 %v644_v49, %s3379_s30  ;;  %v646_v54 = vpop.f32.mrb[7].mxu1 }
 0x399   :  { %v664_v56 = vrot.slane %v646_v54, 1 }
 0x39a   :  { %v656_v58 = vsel %vm419_vm2, %v652_v53, %v649_v4  ;;  %v653_v59 = vsel %vm419_vm2, %v651_v24, %v652_v53  ;;  %v988_v53 = vld [vmem:[#allocation23 + $0x20] sm:$0xff] }
 0x39b   :  { %v665_v60 = vsel %vm452_vm3, %v663_v29, %v664_v56  ;;  %v668_v61 = vsel %vm452_vm3, %v664_v56, %v661_v10  ;;  %v657_v3 = vmul.f32 %v656_v58, %v3849_v13  ;;  %v2389_v10 = vld [vmem:[#allocation17] ss:$0 sm:$0xff]  ;;  %v659_v13 = vmul.f32 %v654_v32, %v3855_v16 }
 0x39c   :  { %950 = vperm.xlu1 %2914, %v744_v57   ;;  %v671_v14 = vmul.f32 %v665_v60, %v3860_v19  ;;  %v660_v32 = vmul.f32 %v653_v59, %v3871_v45  ;;  %v672_v38 = vmul.f32 %v668_v61, %v3875_v46  ;;  %v2743_v54 = vpack.c.bf16 %v988_v53, %v985_v52  ;;  %v987_v56 = vld [vmem:[#allocation23 + $0x18] sm:$0xff]  ;;  %v986_v57 = vld [vmem:[#allocation23 + $0x10] sm:$0xff]  ;;  %v989_v59 = vld [vmem:[#allocation23 + $0x28] sm:$0xff] }
 0x39d   :  { %v2745_v58 = vpack.c.bf16 %v987_v56, %v984_v55  ;;  %v2775_v60 = vpack.c.bf16 %v989_v59, %v986_v57  ;;  %v991_v61 = vld [vmem:[#allocation23 + $0x38] sm:$0xff]  ;;  %v1026_v56 = vld [vmem:[#allocation23 + $0x150] sm:$0xff]  ;;  %v1029_v57 = vld [vmem:[#allocation23 + $0x168] sm:$0xff] }
 0x39e   :  { %2744 = vmatprep.subr.bf16.mxu0 %v2743_v54  ;;  %v2747_v1 = vpack.c.bf16 %v994_v62, %v991_v61  ;;  %v1027_v53 = vld [vmem:[#allocation23 + $0x158] sm:$0xff]  ;;  %v1030_v54 = vld [vmem:[#allocation23 + $0x170] sm:$0xff]  ;;  %v1028_v59 = vld [vmem:[#allocation23 + $0x160] sm:$0xff] }
 0x39f   :  { %2776 = vmatprep.subr.bf16.mxu1 %v2775_v60  ;;  %v2771_v55 = vpack.c.bf16 %v1030_v54, %v1027_v53  ;;  %v1333_v53 = vld [vmem:[%s4222_s20] sm:$0xff]  ;;  %v1334_v54 = vld [vmem:[%s4222_s20 + $0x8] sm:$0xff] }
 0x3a0   :  { %955 = vperm.xlu1 %2914, %v745_v2   ;;  %v993_v2 = vld [vmem:[#allocation23 + $0x48] sm:$0xff] }
 0x3f1   :  { %v678_v4 = vpop.permute.xlu0 %677 }
 0x3f2   :  { %v689_v6 = vadd.f32 %v678_v4, %v657_v3  ;;  %v992_v3 = vld [vmem:[#allocation23 + $0x40] sm:$0xff]  ;;  %v995_v4 = vld [vmem:[#allocation23 + $0x58] sm:$0xff] }
 0x3f4   :  { %v693_v8 = vadd.f32 %v689_v6, %v669_v5  ;;  %v2749_v5 = vpack.c.bf16 %v993_v2, %v990_v63  ;;  %v2779_v6 = vpack.c.bf16 %v995_v4, %v992_v3 }
 0x3f5   :  { %v680_v11 = vpop.permute.xlu1 %679 }
 0x3f6   :  { %v704_v12 = vmul.f32 %v2388_v7, %v693_v8  ;;  %v690_v22 = vadd.f32 %v680_v11, %v658_v9  ;;  %v1000_v8 = vld [vmem:[#allocation23 + $0x80] sm:$0xff]  ;;  %v999_v11 = vld [vmem:[#allocation23 + $0x78] sm:$0xff] }
 0x3f7   :  { %v996_v9 = vld [vmem:[#allocation23 + $0x60] sm:$0xff] }
 0x3f8   :  { %v715_v23 = vadd.f32 %v2389_v10, %v704_v12  ;;  %v694_v24 = vadd.f32 %v690_v22, %v670_v21  ;;  %v998_v12 = vld [vmem:[#allocation23 + $0x70] sm:$0xff]  ;;  %v1001_v21 = vld [vmem:[#allocation23 + $0x88] sm:$0xff] }
 0x3f9   :  { %v682_v25 = vpop.permute.xlu0 %681  ;;  %v2783_v22 = vpack.c.bf16 %v1001_v21, %v998_v12 }
 0x3fa   :  { %v705_v26 = vmul.f32 %v2388_v7, %v694_v24  ;;  %v691_v20 = vadd.f32 %v682_v25, %v659_v13  ;;  %v719_v27 = vmax.f32 %v715_v23, 0.0  ;;  %v1003_v23 = vld [vmem:[#allocation23 + $0x98] sm:$0xff]  ;;  %v1006_v24 = vld [vmem:[#allocation23 + $0xb0] sm:$0xff]  ;;  %v2753_v13 = vpack.c.bf16 %v999_v11, %v996_v9  ;;  %v1004_v25 = vld [vmem:[#allocation23 + $0xa0] sm:$0xff] }
 0x3fc   :  { %v716_v28 = vadd.f32 %v2389_v10, %v705_v26  ;;  %v695_v29 = vadd.f32 %v691_v20, %v671_v14  ;;  %v723_v18 = vrot.slane %v719_v27, 1  ;;  %v1007_v26 = vld [vmem:[#allocation23 + $0xb8] sm:$0xff]  ;;  %v2755_v14 = vpack.c.bf16 %v1006_v24, %v1003_v23  ;;  %v1002_v20 = vld [vmem:[#allocation23 + $0x90] sm:$0xff] }
 0x3fe   :  { %v720_v30 = vmax.f32 %v716_v28, 0.0  ;;  %v706_v15 = vmul.f32 %v2388_v7, %v695_v29  ;;  %v2787_v28 = vpack.c.bf16 %v1007_v26, %v1004_v25 }
 0x400   :  { %v724_v31 = vrot.slane %v720_v30, 1  ;;  %v717_v34 = vadd.f32 %v2389_v10, %v706_v15  ;;  %v1012_v15 = vld [vmem:[#allocation23 + $0xe0] sm:$0xff] }
 0x402   :  { %v729_v17 = vsel %vm452_vm3, %v723_v18, %v724_v31  ;;  %v721_v33 = vmax.f32 %v717_v34, 0.0  ;;  %v1011_v34 = vld [vmem:[#allocation23 + $0xd8] sm:$0xff] }
 0x403   :  { %v731_v35 = vmax.f32 %v719_v27, %v729_v17  ;;  %v1005_v27 = vld [vmem:[#allocation23 + $0xa8] sm:$0xff]  ;;  %v1010_v17 = vld [vmem:[#allocation23 + $0xd0] sm:$0xff] }
 0x404   :  { %v725_v36 = vrot.slane %v721_v33, 1  ;;  %v2757_v29 = vpack.c.bf16 %v1005_v27, %v1002_v20 }
 0x405   :  { %735 = vst.msk [vmem:[#allocation2] sm:$0xff] %vm547_vm4, %v731_v35  ;;  %v1013_v35 = vld [vmem:[#allocation23 + $0xe8] sm:$0xff] }
 0x406   :  { %v728_v16 = vsel %vm452_vm3, %v724_v31, %v725_v36  ;;  %v1008_v31 = vld [vmem:[#allocation23 + $0xc0] sm:$0xff] }
 0x407   :  { %v732_v19 = vmax.f32 %v720_v30, %v728_v16  ;;  %v1009_v30 = vld [vmem:[#allocation23 + $0xc8] sm:$0xff]  ;;  %v1015_v16 = vld [vmem:[#allocation23 + $0xf8] sm:$0xff] }
 0x409   :  { %736 = vst.msk [vmem:[#allocation2 + $0x8] sm:$0xff] %vm547_vm4, %v732_v19  ;;  %v1018_v19 = vld [vmem:[#allocation23 + $0x110] sm:$0xff] }
 0x40a   :  { %v684_v37 = vpop.permute.xlu1 %683 }
 0x40b   :  { %v692_v39 = vadd.f32 %v684_v37, %v660_v32  ;;  %v2763_v32 = vpack.c.bf16 %v1018_v19, %v1015_v16  ;;  %v1014_v37 = vld [vmem:[#allocation23 + $0xf0] sm:$0xff]  ;;  %v1241_v16 = vld [vmem:[#allocation24 + $0x8] sm:$0xff] }
 0x40d   :  { %v696_v40 = vadd.f32 %v692_v39, %v672_v38  ;;  %v1017_v38 = vld [vmem:[#allocation23 + $0x108] sm:$0xff]  ;;  %v1016_v39 = vld [vmem:[#allocation23 + $0x100] sm:$0xff] }
 0x40f   :  { %v707_v41 = vmul.f32 %v2388_v7, %v696_v40  ;;  %v997_v7 = vld [vmem:[#allocation23 + $0x68] sm:$0xff]  ;;  %v2765_v40 = vpack.c.bf16 %v1017_v38, %v1014_v37  ;;  %v1242_v37 = vld [vmem:[#allocation24 + $0x10] sm:$0xff]  ;;  %v1243_v38 = vld [vmem:[#allocation24 + $0x18] sm:$0xff] }
 0x410   :  { %v739_v42 = vld [vmem:[#allocation2] ss:$2 sm:$0xff] }
 0x411   :  { %v718_v43 = vadd.f32 %v2389_v10, %v707_v41  ;;  %2390 = vmatmul.mubr.msk.f32.vlgmr.msra.gmra.mrb[8].mxu0 %vm547_vm4, %v739_v42  ;;  %2523 = vmatprep.mubr.msk.f32.mxu1 %vm547_vm4, %v739_v42  ;;  %v2751_v10 = vpack.c.bf16 %v1000_v8, %v997_v7  ;;  %v1019_v41 = vld [vmem:[#allocation23 + $0x118] sm:$0xff] }
 0x412   :  { %846 = vmatprep.mubr.f32.mxu0 %v3377_v0  ;;  %2746 = vmatpush1.bf16.msra.mxu0 %v2745_v58  ;;  %v2795_v42 = vpack.c.bf16 %v1019_v41, %v1016_v39  ;;  %v2773_v58 = vpack.c.bf16 %v1029_v57, %v1026_v56  ;;  %v2811_v39 = vpack.c.bf16 %v1243_v38, %v1242_v37  ;;  %v1245_v41 = vld [vmem:[#allocation24 + $0x28] sm:$0xff] }
 0x413   :  { %v722_v44 = vmax.f32 %v718_v43, 0.0  ;;  %2748 = vmatprep.subr.bf16.mxu0 %v2747_v1  ;;  %v1021_v43 = vld [vmem:[#allocation23 + $0x128] sm:$0xff]  ;;  %v3951_v1 = vpop.permute.xlu0 %934  ;;  %v3987_v57 = vpack.c.bf16 %v1334_v54, %v1333_v53 }
 0x414   :  { %v1253_v56 = vld [vmem:[#allocation24 + $0x68] sm:$0xff] }
 0x415   :  { %v726_v47 = vrot.slane %v722_v44, 1 }
 0x416   :  { %2750 = vmatpush1.bf16.msra.mxu0 %v2749_v5 }
 0x417   :  { %v727_v48 = vsel %vm452_vm3, %v725_v36, %v726_v47  ;;  %v730_v45 = vsel %vm452_vm3, %v726_v47, %v723_v18  ;;  %2752 = vmatprep.subr.bf16.mxu0 %v2751_v10  ;;  %v2759_v18 = vpack.c.bf16 %v1012_v15, %v1009_v30  ;;  %v2791_v36 = vpack.c.bf16 %v1013_v35, %v1010_v17  ;;  %v3955_v11 = vpop.permute.xlu0 %939  ;;  %v2395_v15 = vld [vmem:[#allocation21] ss:$0 sm:$0xff] }
 0x418   :  { %v733_v46 = vmax.f32 %v721_v33, %v727_v48  ;;  %v734_v49 = vmax.f32 %v722_v44, %v730_v45  ;;  %v2761_v33 = vpack.c.bf16 %v1011_v34, %v1008_v31  ;;  %v1024_v44 = vld [vmem:[#allocation23 + $0x140] sm:$0xff]  ;;  %v1023_v45 = vld [vmem:[#allocation23 + $0x138] sm:$0xff] }
 0x419   :  { %v2767_v47 = vpack.c.bf16 %v1024_v44, %v1021_v43  ;;  %v1020_v48 = vld [vmem:[#allocation23 + $0x120] sm:$0xff]  ;;  %v1246_v43 = vld [vmem:[#allocation24 + $0x30] sm:$0xff]  ;;  %v1247_v44 = vld [vmem:[#allocation24 + $0x38] sm:$0xff] }
 0x41a   :  { %737 = vst.msk [vmem:[#allocation2 + $0x10] sm:$0xff] %vm547_vm4, %v733_v46  ;;  %738 = vst.msk [vmem:[#allocation2 + $0x18] sm:$0xff] %vm547_vm4, %v734_v49  ;;  %2754 = vmatpush1.bf16.msra.mxu0 %v2753_v13  ;;  %v1022_v46 = vld [vmem:[#allocation23 + $0x130] sm:$0xff]  ;;  %v2769_v49 = vpack.c.bf16 %v1023_v45, %v1020_v48  ;;  %v1248_v48 = vld [vmem:[#allocation24 + $0x40] sm:$0xff] }
 0x41b   :  { %2756 = vmatprep.subr.bf16.mxu0 %v2755_v14  ;;  %v3953_v2 = vpop.permute.xlu1 %950  ;;  %v1249_v45 = vld [vmem:[#allocation24 + $0x48] sm:$0xff] }
 0x41e   :  { %2758 = vmatpush1.bf16.msra.mxu0 %v2757_v29 }
 0x41f   :  { %2760 = vmatprep.subr.bf16.mxu0 %v2759_v18 }
 0x421   :  { %v741_v51 = vld [vmem:[#allocation2 + $0x10] ss:$2 sm:$0xff] }
 0x422   :  { %2391 = vmatmul.mubr.msk.f32.gmra.mrb[10].mxu0 %vm547_vm4, %v741_v51  ;;  %2524 = vmatmul.mubr.msk.f32.vlgmr.msra.gmra.mrb[8].mxu1 %vm547_vm4, %v741_v51  ;;  %v1025_v51 = vld [vmem:[#allocation23 + $0x148] sm:$0xff] }
 0x423   :  { %1096 = vmatprep.mubr.f32.mxu0 %v3377_v0  ;;  %2778 = vmatpush3.bf16.msra.mxu1 %v2775_v60  ;;  %v2799_v52 = vpack.c.bf16 %v1025_v51, %v1022_v46  ;;  %v1031_v60 = vld [vmem:[#allocation23 + $0x178] sm:$0xff]  ;;  %v2820_v46 = vpack.c.bf16 %v1249_v45, %v1248_v48 }
 0x424   :  { %2780 = vmatprep.subr.bf16.mxu1 %v2779_v6  ;;  %2762 = vmatpush1.bf16.msra.mxu0 %v2761_v33  ;;  %v2803_v61 = vpack.c.bf16 %v1031_v60, %v1028_v59  ;;  %v1251_v51 = vld [vmem:[#allocation24 + $0x58] sm:$0xff]  ;;  %v1336_v59 = vld [vmem:[%s4222_s20 + $0x18] sm:$0xff] }
 0x425   :  { %2764 = vmatprep.subr.bf16.mxu0 %v2763_v32  ;;  %v3380_v32 = vmov 0.0|0.0  }
 0x427   :  { %2782 = vmatpush3.bf16.msra.mxu1 %v2779_v6 }
 0x428   :  { %2784 = vmatprep.subr.bf16.mxu1 %v2783_v22  ;;  %2766 = vmatpush1.bf16.msra.mxu0 %v2765_v40  ;;  %v1244_v40 = vld [vmem:[#allocation24 + $0x20] sm:$0xff] }
 0x429   :  { %2768 = vmatprep.subr.bf16.mxu0 %v2767_v47  ;;  %v2817_v47 = vpack.c.bf16 %v1247_v44, %v1246_v43 }
 0x42b   :  { %2786 = vmatpush3.bf16.msra.mxu1 %v2783_v22  ;;  %v3961_v22 = vpop.permute.xlu1 %955 }
 0x42c   :  { %2788 = vmatprep.subr.bf16.mxu1 %v2787_v28  ;;  %2770 = vmatpush1.bf16.msra.mxu0 %v2769_v49  ;;  %v1250_v49 = vld [vmem:[#allocation24 + $0x50] sm:$0xff] }
 0x42d   :  { %2772 = vmatprep.subr.bf16.mxu0 %v2771_v55  ;;  %v1252_v55 = vld [vmem:[#allocation24 + $0x60] sm:$0xff] }
 0x42f   :  { %2790 = vmatpush3.bf16.msra.mxu1 %v2787_v28  ;;  %v2394_v28 = vld [vmem:[#allocation20] ss:$0 sm:$0xff] }
 0x430   :  { %2792 = vmatprep.subr.bf16.mxu1 %v2791_v36  ;;  %2774 = vmatpush1.bf16.msra.mxu0 %v2773_v58  ;;  %v1335_v58 = vld [vmem:[%s4222_s20 + $0x10] sm:$0xff] }
 0x431   :  { %2807 = vmatprep.subr.bf16.mxu0 %v3380_v32  ;;  %v3998_v60 = vpack.c.bf16 %v1336_v59, %v1335_v58 }
 0x433   :  { %2794 = vmatpush3.bf16.msra.mxu1 %v2791_v36  ;;  %v1240_v36 = vld [vmem:[#allocation24] sm:$0xff] }
 0x434   :  { %2796 = vmatprep.subr.bf16.mxu1 %v2795_v42  ;;  %v2808_v19 = vpack.c.bf16 %v1241_v16, %v1240_v36 }
 0x437   :  { %2798 = vmatpush3.bf16.msra.mxu1 %v2795_v42  ;;  %v2814_v42 = vpack.c.bf16 %v1245_v41, %v1244_v40 }
 0x438   :  { %2800 = vmatprep.subr.bf16.mxu1 %v2799_v52 }
 0x43b   :  { %2802 = vmatpush3.bf16.msra.mxu1 %v2799_v52  ;;  %v2823_v52 = vpack.c.bf16 %v1251_v51, %v1250_v49 }
 0x43c   :  { %2804 = vmatprep.subr.bf16.mxu1 %v2803_v61 }
 0x43f   :  { %2806 = vmatpush3.bf16.msra.mxu1 %v2803_v61  ;;  %v2826_v61 = vpack.c.bf16 %v1253_v56, %v1252_v55 }
 0x440   :  { %2831 = vmatprep.subr.bf16.mxu1 %v3380_v32 }
 0x4e4   :  { %v842_v62 = vpop.f32.mrb[8].mxu0 }
 0x4e5   :  { %v844_v63 = vpop.f32.mrb[9].mxu0  ;;  %v928_v5 = vrot.slane %v842_v62, 7  ;;  %v1254_v62 = vld [vmem:[#allocation24 + $0x70] sm:$0xff] }
 0x4f5   :  { %v848_v3 = vpop.f32.mrb[10].mxu0  ;;  %v2525_v4 = vpop.f32.mrb[8].mxu1 }
 0x4f6   :  { %v929_v6 = vrot.slane %v848_v3, 7  ;;  %v945_v7 = vrot.slane %v2525_v4, 1  ;;  %v850_v8 = vpop.f32.mrb[11].mxu0  ;;  %v919_v9 = vpop.f32.mrb[9].mxu1 }
 0x4f7   :  { %v944_v10 = vrot.slane %v919_v9, 1 }
 0x4f8   :  { %v931_v12 = vsel %vm419_vm2, %v929_v6, %v928_v5  ;;  %v930_v21 = vsel %vm419_vm2, %v928_v5, %v929_v6 }
 0x4f9   :  { %v942_v23 = vmul.f32 %v3951_v1, %v931_v12  ;;  %v943_v24 = vmul.f32 %v3955_v11, %v930_v21  ;;  %v946_v13 = vsel %vm452_vm3, %v944_v10, %v945_v7  ;;  %v947_v25 = vsel %vm452_vm3, %v945_v7, %v944_v10 }
 0x4fa   :  { %v958_v26 = vmul.f32 %v3953_v2, %v946_v13  ;;  %v959_v14 = vmul.f32 %v3961_v22, %v947_v25 }
 0x4fb   :  { %v960_v20 = vadd.f32 %v942_v23, %v844_v63  ;;  %v961_v27 = vadd.f32 %v943_v24, %v850_v8  ;;  %v1255_v63 = vld [vmem:[#allocation24 + $0x78] sm:$0xff] }
 0x4fc   :  { %v2829_v3 = vpack.c.bf16 %v1255_v63, %v1254_v62 }
 0x4fd   :  { %v962_v29 = vadd.f32 %v960_v20, %v958_v26  ;;  %v963_v30 = vadd.f32 %v961_v27, %v959_v14 }
 0x4ff   :  { %v971_v18 = vmul.f32 %v2394_v28, %v962_v29  ;;  %v972_v31 = vmul.f32 %v2394_v28, %v963_v30 }
 0x501   :  { %v980_v34 = vadd.f32 %v2395_v15, %v971_v18  ;;  %v981_v17 = vadd.f32 %v2395_v15, %v972_v31  ;;  %v2396_v15 = vld [vmem:[%s4219_s17] ss:$0 sm:$0xff]  ;;  %s3382_s17 = smov 32  }
 0x503   :  { %v982_v33 = vmax.f32 %v980_v34, 0.0  ;;  %v983_v35 = vmax.f32 %v981_v17, 0.0  ;;  %v2397_v34 = vld [vmem:[%s4220_s18] ss:$0 sm:$0xff]  ;;  %s3383_s18 = smov 96  }
 0x505   :  { %1097 = vmatmul.mubr.f32.vlgmr.msra.gmra.mrb[12].mxu0 %v982_v33  ;;  %2558 = vmatprep.mubr.f32.mxu1 %v982_v33 }
 0x506   :  { %2559 = vmatmul.mubr.f32.vlgmr.msra.gmra.mrb[10].mxu1 %v983_v35  ;;  %1102 = vmatprep.mubr.f32.mxu0 %v3377_v0 }
 0x507   :  { %2809 = vmatpush3.bf16.msra.mxu0 %v2808_v19  ;;  %2604 = vmatprep.mubr.msk.f32.mxu1 %vm3381_vm5, %v3377_v0 }
 0x508   :  { %2810 = vmatprep.subr.bf16.mxu0 %v3380_v32  ;;  %2833 = vmatpush3.bf16.msra.mxu1 %v3987_v57 }
 0x509   :  { %1103 = vmatmul.mubr.f32.gmra.mrb[14].mxu0 %v983_v35  ;;  %2834 = vmatprep.subr.bf16.mxu1 %v3380_v32 }
 0x50a   :  { %2593 = vmatprep.mubr.msk.f32.mxu0 %vm3381_vm5, %v3377_v0 }
 0x50b   :  { %2812 = vmatpush3.bf16.msra.mxu0 %v2811_v39 }
 0x50c   :  { %2813 = vmatprep.subr.bf16.mxu0 %v3380_v32  ;;  %2836 = vmatpush3.bf16.msra.mxu1 %v3998_v60 }
 0x50d   :  { %2837 = vmatprep.subr.bf16.mxu1 %v3380_v32 }
 0x50f   :  { %2815 = vmatpush3.bf16.msra.mxu0 %v2814_v42  ;;  %2605 = vmatmul.mubr.f32.vlgmr.msra.gmra.mrb[12].mxu1 %v3377_v0 }
 0x510   :  { %2816 = vmatprep.subr.bf16.mxu0 %v3380_v32  ;;  %2839 = vmatpush3.bf16.msra.mxu1 %v3987_v57 }
 0x511   :  { %2615 = vmatprep.mubr.msk.f32.mxu1 %vm3381_vm5, %v3377_v0  ;;  %2840 = vmatprep.subr.bf16.mxu1 %v3380_v32 }
 0x513   :  { %2818 = vmatpush3.bf16.msra.mxu0 %v2817_v47  ;;  %v2398_v47 = vld [vmem:[#allocation26] ss:$0 sm:$0xff] }
 0x514   :  { %2819 = vmatprep.subr.bf16.mxu0 %v3380_v32  ;;  %2842 = vmatpush3.bf16.msra.mxu1 %v3998_v60 }
 0x515   :  { %2843 = vmatprep.subr.bf16.mxu1 %v3380_v32 }
 0x517   :  { %2821 = vmatpush3.bf16.msra.mxu0 %v2820_v46 }
 0x518   :  { %2822 = vmatprep.subr.bf16.mxu0 %v3380_v32 }
 0x51b   :  { %2824 = vmatpush3.bf16.msra.mxu0 %v2823_v52 }
 0x51c   :  { %2825 = vmatprep.subr.bf16.mxu0 %v3380_v32 }
 0x51f   :  { %2827 = vmatpush3.bf16.msra.mxu0 %v2826_v61 }
 0x520   :  { %2828 = vmatprep.subr.bf16.mxu0 %v3380_v32 }
 0x523   :  { %2830 = vmatpush3.bf16.msra.mxu0 %v2829_v3 }
 0x524   :  { %2849 = vmatprep.subr.bf16.mxu0 %v3380_v32 }
 0x5d8   :  { %v1098_v4 = vpop.f32.mrb[12].mxu0 }
 0x5d9   :  { %v1100_v5 = vpop.f32.mrb[13].mxu0  ;;  %v2560_v6 = vpop.f32.mrb[10].mxu1  ;;  %v1184_v12 = vrot.slane %v1098_v4, 7 }
 0x5da   :  { %v1191_v7 = vrot.slane %v2560_v6, 1  ;;  %v1175_v8 = vpop.f32.mrb[11].mxu1 }
 0x5db   :  { %v1190_v9 = vrot.slane %v1175_v8, 1 }
 0x5dc   :  { %v1104_v10 = vpop.f32.mrb[14].mxu0 }
 0x5dd   :  { %v1192_v21 = vsel %vm452_vm3, %v1190_v9, %v1191_v7  ;;  %v1193_v23 = vsel %vm452_vm3, %v1191_v7, %v1190_v9  ;;  %v1185_v24 = vrot.slane %v1104_v10, 7  ;;  %v1106_v13 = vpop.f32.mrb[15].mxu0 }
 0x5de   :  { %v1194_v27 = vmul.f32 %v1192_v21, %v3953_v2  ;;  %v1195_v29 = vmul.f32 %v1193_v23, %v3961_v22 }
 0x5df   :  { %v1187_v25 = vsel %vm419_vm2, %v1185_v24, %v1184_v12  ;;  %v1186_v26 = vsel %vm419_vm2, %v1184_v12, %v1185_v24 }
 0x5e0   :  { %v1188_v14 = vmul.f32 %v1187_v25, %v3951_v1  ;;  %v1189_v20 = vmul.f32 %v1186_v26, %v3955_v11 }
 0x5e2   :  { %v1196_v28 = vadd.f32 %v1188_v14, %v1100_v5  ;;  %v1197_v30 = vadd.f32 %v1189_v20, %v1106_v13  ;;  %v1409_v50 = vpop.f32.mrb[12].mxu1 }
 0x5e3   :  { %v2606_v44 = vpop.f32.mrb[13].mxu1 }
 0x5e4   :  { %v1198_v18 = vadd.f32 %v1196_v28, %v1194_v27  ;;  %v1199_v31 = vadd.f32 %v1197_v30, %v1195_v29 }
 0x5e6   :  { %v1207_v17 = vmul.f32 %v2396_v15, %v1198_v18  ;;  %v1208_v1 = vmul.f32 %v2396_v15, %v1199_v31 }
 0x5e8   :  { %v1216_v33 = vadd.f32 %v2397_v34, %v1207_v17  ;;  %v1217_v11 = vadd.f32 %v2397_v34, %v1208_v1 }
 0x5ea   :  { %v1218_v35 = vmax.f32 %v1216_v33, 0.0  ;;  %v1219_v2 = vmax.f32 %v1217_v11, 0.0 }
 0x5ec   :  { %v1220_v36 = vrot.slane %v1218_v35, 1  ;;  %v1221_v16 = vrot.slane %v1219_v2, 1 }
 0x5ee   :  { %v1222_v22 = vsel %vm452_vm3, %v1220_v36, %v1221_v16  ;;  %v1223_v19 = vsel %vm452_vm3, %v1221_v16, %v1220_v36 }
 0x5ef   :  { %v1224_v37 = vmax.f32 %v1218_v35, %v1222_v22  ;;  %v1225_v38 = vmax.f32 %v1219_v2, %v1223_v19 }
 0x5f1   :  { %1226 = vst [vmem:[#allocation3] sm:$0xff] %v1224_v37  ;;  %1227 = vst [vmem:[#allocation3 + $0x8] sm:$0xff] %v1225_v38 }
 0x5f8   :  { %v1228_v39 = vld [vmem:[#allocation3] ss:$8 sm:$0x3]  ;;  %v1231_v40 = vld [vmem:[#allocation3 + $0x2] ss:$8 sm:$0x3] }
 0x5f9   :  { %1229 = vst [vmem:[#allocation4] sm:$0x3] %v1228_v39  ;;  %1232 = vst [vmem:[#allocation4 + $0x2] sm:$0x3] %v1231_v40 }
 0x5fa   :  { %v1234_v41 = vld [vmem:[#allocation3 + $0x4] ss:$8 sm:$0x3]  ;;  %v1237_v42 = vld [vmem:[#allocation3 + $0x6] ss:$8 sm:$0x3] }
 0x5fb   :  { %1235 = vst [vmem:[#allocation4 + $0x4] sm:$0x3] %v1234_v41  ;;  %1238 = vst [vmem:[#allocation4 + $0x6] sm:$0x3] %v1237_v42 }
 0x602   :  { %v1239_v43 = vld [vmem:[#allocation4] sm:$0xff] }
 0x603   :  { %2594 = vmatmul.mubr.f32.vlgmr.msra.gmra.mrb[16].mxu0 %v1239_v43 }
 0x604   :  { %2851 = vmatpush3.bf16.msra.mxu0 %v3987_v57  ;;  %2637 = vmatprep.mubr.msk.f32.mxu0 %vm3381_vm5, %v3377_v0 }
 0x605   :  { %2852 = vmatprep.subr.bf16.mxu0 %v3380_v32 }
 0x608   :  { %2854 = vmatpush3.bf16.msra.mxu0 %v3998_v60 }
 0x609   :  { %2861 = vmatprep.subr.bf16.mxu0 %v3380_v32 }
 0x6d6   :  { %v1329_v48 = vpop.f32.mrb[16].mxu0 }
 0x6d7   :  { %v4041_v45 = vadd.f32 %v2398_v47, %v1329_v48  ;;  %v2595_v46 = vpop.f32.mrb[17].mxu0 }
 0x6d9   :  { %v1413_v49 = vadd.f32 %v1409_v50, %v4041_v45 }
 0x6db   :  { %v1414_v51 = vsub.f32 0.0, %v1413_v49 }
 0x6dd   :  { %v1415_v52 = vmul.f32 1.442695, %v1414_v51 }
 0x6df   :  { %2916 = vpow2.f32 %v1415_v52 }
 0x6e9   :  { %v2917_v53 = vpop.eup %2916 }
 0x6ea   :  { %v1417_v54 = vadd.f32 1.0, %v2917_v53 }
 0x6ec   :  { %2918 = vrcp.f32 %v1417_v54 }
 0x6f6   :  { %v2919_v55 = vpop.eup %2918 }
 0x6f7   :  { %v1420_v56 = vmul.f32 2.0, %v2919_v55  ;;  %v1422_v62 = vmul.f32 0.0, %v2919_v55 }
 0x6f9   :  { %v2399_v58 = vadd.f32 -1.0, %v1420_v56 }
 0x6fb   :  { %1424 = vrot.lane.b32.xlu0 %v2399_v58, %s3379_s30 }
 0x76d   :  { %v1425_v59 = vpop.permute.xlu0 %1424 }
 0x76e   :  { %v1427_v61 = vmul.f32 %v2919_v55, %v1425_v59 }
 0x770   :  { %1429 = vrot.lane.b32.xlu1 %v1427_v61, %s3382_s17 }
 0x7e2   :  { %v1430_v63 = vpop.permute.xlu1 %1429 }
 0x7e3   :  { %v1432_v3 = vadd.f32 %v1430_v63, %v1422_v62 }
 0x7e5   :  { %2920 = vtanh.f32 %v1432_v3  ;;  %v1552_v20 = vrot.slane %v1432_v3, 6 }
 0x7ef   :  { %v2921_v4 = vpop.eup %2920 }
 0x7f0   :  { %1435 = vrot.lane.b32.xlu0 %v2921_v4, %s3379_s30  ;;  %v2400_v4 = vld [vmem:[#allocation27] ss:$0 sm:$0xff] }
 0x862   :  { %v1436_v5 = vpop.permute.xlu0 %1435 }
 0x863   :  { %v4047_v6 = vmul.f32 %v2919_v55, %v1436_v5 }
 0x865   :  { %1465 = vrot.lane.b32.xlu1 %v4047_v6, %s3382_s17 }
 0x8d7   :  { %v1466_v7 = vpop.permute.xlu1 %1465 }
 0x8d8   :  { %2616 = vmatmul.mubr.msk.f32.vlgmr.msra.gmra.mrb[14].mxu1 %vm1339_vm6, %v1466_v7 }
 0x8d9   :  { %2845 = vmatpush3.bf16.msra.mxu1 %v3987_v57  ;;  %2626 = vmatprep.mubr.msk.f32.mxu1 %vm3381_vm5, %v3377_v0 }
 0x8da   :  { %2846 = vmatprep.subr.bf16.mxu1 %v3380_v32 }
 0x8dd   :  { %2848 = vmatpush3.bf16.msra.mxu1 %v3998_v60 }
 0x8de   :  { %2855 = vmatprep.subr.bf16.mxu1 %v3380_v32 }
 0x9ab   :  { %v1535_v8 = vpop.f32.mrb[14].mxu1 }
 0x9ac   :  { %v1540_v9 = vrot.slane %v1535_v8, 6  ;;  %v2617_v10 = vpop.f32.mrb[15].mxu1 }
 0x9ad   :  { %v2401_v10 = vld [vmem:[#allocation29] ss:$0 sm:$0xff] }
 0x9ae   :  { %v1542_v12 = vadd.f32 %v1540_v9, %v4041_v45 }
 0x9b0   :  { %v1543_v21 = vsub.f32 0.0, %v1542_v12  ;;  %v1815_v12 = vld [vmem:[%s4226_s24] sm:$0xff] }
 0x9b2   :  { %v1544_v23 = vmul.f32 1.442695, %v1543_v21  ;;  %v1816_v21 = vld [vmem:[%s4226_s24 + $0x8] sm:$0xff] }
 0x9b4   :  { %2922 = vpow2.f32 %v1544_v23  ;;  %v2856_v23 = vpack.c.bf16 %v1816_v21, %v1815_v12 }
 0x9be   :  { %v2923_v24 = vpop.eup %2922 }
 0x9bf   :  { %v1546_v13 = vadd.f32 1.0, %v2923_v24  ;;  %v1899_v24 = vld [vmem:[%s4227_s25] sm:$0xff] }
 0x9c1   :  { %2924 = vrcp.f32 %v1546_v13  ;;  %v1900_v13 = vld [vmem:[%s4227_s25 + $0x8] sm:$0xff] }
 0x9cb   :  { %v2925_v57 = vpop.eup %2924 }
 0x9cc   :  { %v1549_v25 = vmul.f32 2.0, %v2925_v57  ;;  %v1554_v27 = vmul.f32 %v2925_v57, %v1552_v20  ;;  %v1901_v20 = vld [vmem:[%s4227_s25 + $0x10] sm:$0xff] }
 0x9ce   :  { %v2403_v26 = vadd.f32 -1.0, %v1549_v25 }
 0x9d0   :  { %1556 = vrot.lane.b32.xlu0 %v2403_v26, %s3379_s30  ;;  %v4093_v26 = vpack.c.bf16 %v1900_v13, %v1899_v24 }
 0xa42   :  { %v1557_v14 = vpop.permute.xlu0 %1556 }
 0xa43   :  { %v1559_v60 = vmul.f32 %v2925_v57, %v1557_v14  ;;  %v1817_v14 = vld [vmem:[%s4226_s24 + $0x10] sm:$0xff] }
 0xa45   :  { %1561 = vrot.lane.b32.xlu1 %v1559_v60, %s3382_s17  ;;  %v1818_v60 = vld [vmem:[%s4226_s24 + $0x18] sm:$0xff] }
 0xab7   :  { %v1562_v28 = vpop.permute.xlu1 %1561 }
 0xab8   :  { %v1564_v29 = vadd.f32 %v1562_v28, %v1554_v27  ;;  %v2859_v28 = vpack.c.bf16 %v1818_v60, %v1817_v14 }
 0xaba   :  { %2926 = vtanh.f32 %v1564_v29  ;;  %v1669_v40 = vrot.slane %v1564_v29, 6  ;;  %v1902_v29 = vld [vmem:[%s4227_s25 + $0x18] sm:$0xff] }
 0xac4   :  { %v2927_v30 = vpop.eup %2926 }
 0xac5   :  { %1567 = vrot.lane.b32.xlu0 %v2927_v30, %s3379_s30  ;;  %v4109_v30 = vpack.c.bf16 %v1902_v29, %v1901_v20 }
 0xb37   :  { %v1568_v15 = vpop.permute.xlu0 %1567 }
 0xb38   :  { %v4062_v18 = vmul.f32 %v2925_v57, %v1568_v15 }
 0xb3a   :  { %v1581_v31 = vrot.slane %v4062_v18, 2 }
 0xb3c   :  { %1582 = vrot.lane.b32.xlu1 %v1581_v31, %s3382_s17 }
 0xbae   :  { %v1583_v34 = vpop.permute.xlu1 %1582 }
 0xbaf   :  { %2627 = vmatmul.mubr.msk.f32.vlgmr.msra.gmra.mrb[16].mxu1 %vm1339_vm6, %v1583_v34 }
 0xbb0   :  { %2648 = vmatprep.mubr.msk.f32.mxu1 %vm3381_vm5, %v3377_v0  ;;  %2857 = vmatpush3.bf16.msra.mxu1 %v2856_v23 }
 0xbb1   :  { %2858 = vmatprep.subr.bf16.mxu1 %v3380_v32 }
 0xbb4   :  { %2860 = vmatpush3.bf16.msra.mxu1 %v2859_v28 }
 0xbb5   :  { %2867 = vmatprep.subr.bf16.mxu1 %v3380_v32 }
 0xc82   :  { %v1652_v17 = vpop.f32.mrb[16].mxu1 }
 0xc83   :  { %v1657_v1 = vrot.slane %v1652_v17, 4  ;;  %v2628_v33 = vpop.f32.mrb[17].mxu1 }
 0xc85   :  { %v1659_v11 = vadd.f32 %v1657_v1, %v4041_v45 }
 0xc87   :  { %v1660_v35 = vsub.f32 0.0, %v1659_v11 }
 0xc89   :  { %v1661_v2 = vmul.f32 1.442695, %v1660_v35 }
 0xc8b   :  { %2928 = vpow2.f32 %v1661_v2 }
 0xc95   :  { %v2929_v36 = vpop.eup %2928 }
 0xc96   :  { %v1663_v16 = vadd.f32 1.0, %v2929_v36 }
 0xc98   :  { %2930 = vrcp.f32 %v1663_v16 }
 0xca2   :  { %v2931_v22 = vpop.eup %2930 }
 0xca3   :  { %v1666_v19 = vmul.f32 2.0, %v2931_v22  ;;  %v1671_v41 = vmul.f32 %v2931_v22, %v1669_v40 }
 0xca5   :  { %v2405_v37 = vadd.f32 -1.0, %v1666_v19 }
 0xca7   :  { %1673 = vrot.lane.b32.xlu0 %v2405_v37, %s3379_s30 }
 0xd19   :  { %v1674_v38 = vpop.permute.xlu0 %1673 }
 0xd1a   :  { %v1676_v39 = vmul.f32 %v2931_v22, %v1674_v38 }
 0xd1c   :  { %1678 = vrot.lane.b32.xlu1 %v1676_v39, %s3382_s17 }
 0xd8e   :  { %v1679_v42 = vpop.permute.xlu1 %1678 }
 0xd8f   :  { %v1681_v43 = vadd.f32 %v1679_v42, %v1671_v41  ;;  %v2408_v42 = vld [vmem:[%s4228_s26] ss:$0 sm:$0xff]  ;;  %s3384_s26 = smov [#allocation30]  }
 0xd90   :  { %s2344_s15 = sshll.u32 %s3384_s26, 4  ;;  %s2345_s15 = int_to_ptr.vmem [resolvable:$true] %s2344_s15 }
 0xd91   :  { %2932 = vtanh.f32 %v1681_v43  ;;  %v1786_v5 = vrot.slane %v1681_v43, 6  ;;  %p3299_p9 = scmp.lt.s32.totalorder %s2345_s15, %s2345_s15 }
 0xd9b   :  { %v2933_v50 = vpop.eup %2932 }
 0xd9c   :  { %1684 = vrot.lane.b32.xlu0 %v2933_v50, %s3379_s30 }
 0xe0e   :  { %v1685_v44 = vpop.permute.xlu0 %1684 }
 0xe0f   :  { %v1687_v47 = vmul.f32 %v2931_v22, %v1685_v44 }
 0xe11   :  { %v1698_v48 = vrot.slane %v1687_v47, 4 }
 0xe13   :  { %1699 = vrot.lane.b32.xlu1 %v1698_v48, %s3382_s17 }
 0xe85   :  { %v1700_v46 = vpop.permute.xlu1 %1699 }
 0xe86   :  { %2638 = vmatmul.mubr.msk.f32.vlgmr.msra.gmra.mrb[18].mxu0 %vm1339_vm6, %v1700_v46 }
 0xe87   :  { %2659 = vmatprep.mubr.msk.f32.mxu0 %vm3381_vm5, %v3377_v0  ;;  %2863 = vmatpush3.bf16.msra.mxu0 %v4093_v26 }
 0xe88   :  { %2864 = vmatprep.subr.bf16.mxu0 %v3380_v32 }
 0xe8b   :  { %2866 = vmatpush3.bf16.msra.mxu0 %v4109_v30 }
 0xe8c   :  { %2873 = vmatprep.subr.bf16.mxu0 %v3380_v32 }
 0xe8e   :  { %2660 = vmatmul.mubr.f32.vlgmr.msra.gmra.mrb[20].mxu0 %v3377_v0 }
 0xe8f   :  { %2875 = vmatpush3.bf16.msra.mxu0 %v4093_v26  ;;  %2681 = vmatprep.mubr.msk.f32.mxu0 %vm3381_vm5, %v3377_v0 }
 0xe90   :  { %2876 = vmatprep.subr.bf16.mxu0 %v3380_v32 }
 0xe93   :  { %2878 = vmatpush3.bf16.msra.mxu0 %v4109_v30 }
 0xf59   :  { %v1769_v49 = vpop.f32.mrb[18].mxu0 }
 0xf5a   :  { %v1774_v51 = vrot.slane %v1769_v49, 2  ;;  %v2639_v52 = vpop.f32.mrb[19].mxu0 }
 0xf5c   :  { %v1776_v53 = vadd.f32 %v1774_v51, %v4041_v45 }
 0xf5e   :  { %v1777_v54 = vsub.f32 0.0, %v1776_v53 }
 0xf60   :  { %v1778_v55 = vmul.f32 1.442695, %v1777_v54 }
 0xf61   :  { %v1969_v40 = vpop.f32.mrb[20].mxu0 }
 0xf62   :  { %2934 = vpow2.f32 %v1778_v55  ;;  %v2661_v41 = vpop.f32.mrb[21].mxu0 }
 0xf6c   :  { %v2935_v56 = vpop.eup %2934 }
 0xf6d   :  { %v1780_v58 = vadd.f32 1.0, %v2935_v56 }
 0xf6f   :  { %2936 = vrcp.f32 %v1780_v58 }
 0xf79   :  { %v2937_v59 = vpop.eup %2936 }
 0xf7a   :  { %v1783_v61 = vmul.f32 2.0, %v2937_v59  ;;  %v1788_v45 = vmul.f32 %v2937_v59, %v1786_v5 }
 0xf7c   :  { %v2407_v62 = vadd.f32 -1.0, %v1783_v61 }
 0xf7e   :  { %1790 = vrot.lane.b32.xlu0 %v2407_v62, %s3379_s30 }
 0xff0   :  { %v1791_v63 = vpop.permute.xlu0 %1790 }
 0xff1   :  { %v1793_v3 = vmul.f32 %v2937_v59, %v1791_v63 }
 0xff3   :  { %1795 = vrot.lane.b32.xlu1 %v1793_v3, %s3382_s17 }
 0xff7   :  { %1444 = vrot.lane.b32.xlu1 %v2400_v4, %s3383_s18 }
0x1065   :  { %v1796_v7 = vpop.permute.xlu1 %1795 }
0x1066   :  { %v1798_v8 = vadd.f32 %v1796_v7, %v1788_v45 }
0x1068   :  { %2938 = vtanh.f32 %v1798_v8 }
0x1069   :  { %v1445_v57 = vpop.permute.xlu1 %1444 }
0x106a   :  { %v1447_v15 = vmul.f32 %v1445_v57, %v4047_v6  ;;  %v1571_v31 = vmul.f32 %v4062_v18, %v1445_v57  ;;  %v1688_v1 = vmul.f32 %v1687_v47, %v1445_v57 }
0x1072   :  { %v2939_v9 = vpop.eup %2938 }
0x1073   :  { %1801 = vrot.lane.b32.xlu0 %v2939_v9, %s3379_s30 }
0x1077   :  { %1453 = vrot.lane.b32.xlu0 %v2401_v10, %s3383_s18 }
0x10e5   :  { %v1802_v25 = vpop.permute.xlu0 %1801 }
0x10e6   :  { %v1804_v27 = vmul.f32 %v2937_v59, %v1802_v25 }
0x10e8   :  { %v1805_v34 = vmul.f32 %v1804_v27, %v1445_v57 }
0x10e9   :  { %v1454_v17 = vpop.permute.xlu0 %1453 }
0x10ea   :  { %v1456_v33 = vadd.f32 %v1454_v17, %v1447_v15  ;;  %v1572_v11 = vadd.f32 %v1571_v31, %v1454_v17  ;;  %v1689_v36 = vadd.f32 %v1688_v1, %v1454_v17  ;;  %v1806_v16 = vadd.f32 %v1805_v34, %v1454_v17 }
0x10ec   :  { %v1457_v35 = vmax.f32 %v1456_v33, 0.0  ;;  %v1573_v2 = vmax.f32 %v1572_v11, 0.0  ;;  %v1690_v6 = vmax.f32 %v1689_v36, 0.0  ;;  %v1807_v18 = vmax.f32 %v1806_v16, 0.0 }
0x10ee   :  { %1459 = vrot.lane.b32.xlu1 %v1457_v35, %s3382_s17  ;;  %1575 = vrot.lane.b32.xlu0 %v1573_v2, %s3382_s17 }
0x10f2   :  { %1692 = vrot.lane.b32.xlu1 %v1690_v6, %s3382_s17  ;;  %1809 = vrot.lane.b32.xlu0 %v1807_v18, %s3382_s17 }
0x1160   :  { %v1460_v22 = vpop.permute.xlu1 %1459  ;;  %v1576_v19 = vpop.permute.xlu0 %1575 }
0x1161   :  { %1463 = vst.msk [vmem:[#allocation5] sm:$0x3] %vm1462_vm7, %v1460_v22 }
0x1162   :  { %1579 = vst.msk [vmem:[#allocation5] sm:$0xc] %vm1578_vm8, %v1576_v19 }
0x1164   :  { %v1693_v37 = vpop.permute.xlu1 %1692  ;;  %v1810_v38 = vpop.permute.xlu0 %1809 }
0x1165   :  { %1696 = vst.msk [vmem:[#allocation5] sm:$0x30] %vm1695_vm9, %v1693_v37 }
0x1166   :  { %1813 = vst.msk [vmem:[#allocation5] sm:$0xc0] %vm1812_vm10, %v1810_v38 }
0x116d   :  { %v1814_v39 = vld [vmem:[#allocation5] sm:$0xff] }
0x116e   :  { %2649 = vmatmul.mubr.msk.f32.vlgmr.msra.gmra.mrb[18].mxu1 %vm1339_vm6, %v1814_v39 }
0x116f   :  { %2869 = vmatpush3.bf16.msra.mxu1 %v4093_v26  ;;  %2670 = vmatprep.mubr.msk.f32.mxu1 %vm3381_vm5, %v3377_v0 }
0x1170   :  { %2870 = vmatprep.subr.bf16.mxu1 %v3380_v32 }
0x1173   :  { %2872 = vmatpush3.bf16.msra.mxu1 %v4109_v30 }
0x1174   :  { %2879 = vmatprep.subr.bf16.mxu1 %v3380_v32 }
0x1241   :  { %v1895_v43 = vpop.f32.mrb[18].mxu1 }
0x1242   :  { %v4141_v50 = vadd.f32 %v2408_v42, %v1895_v43  ;;  %v2650_v44 = vpop.f32.mrb[19].mxu1 }
0x1244   :  { %v1973_v47 = vadd.f32 %v1969_v40, %v4141_v50 }
0x1246   :  { %v1974_v48 = vsub.f32 0.0, %v1973_v47 }
0x1248   :  { %v1975_v46 = vmul.f32 1.442695, %v1974_v48 }
0x124a   :  { %2940 = vpow2.f32 %v1975_v46 }
0x1254   :  { %v2941_v49 = vpop.eup %2940 }
0x1255   :  { %v1977_v51 = vadd.f32 1.0, %v2941_v49 }
0x1257   :  { %2942 = vrcp.f32 %v1977_v51 }
0x1261   :  { %v2943_v52 = vpop.eup %2942 }
0x1262   :  { %v1980_v53 = vmul.f32 2.0, %v2943_v52  ;;  %v1982_v58 = vmul.f32 0.0, %v2943_v52 }
0x1264   :  { %v2410_v54 = vadd.f32 -1.0, %v1980_v53 }
0x1266   :  { %1984 = vrot.lane.b32.xlu1 %v2410_v54, %s3379_s30 }
0x12d8   :  { %v1985_v55 = vpop.permute.xlu1 %1984 }
0x12d9   :  { %v1987_v56 = vmul.f32 %v2943_v52, %v1985_v55 }
0x12db   :  { %1989 = vrot.lane.b32.xlu0 %v1987_v56, %s3382_s17 }
0x134d   :  { %v1990_v59 = vpop.permute.xlu0 %1989 }
0x134e   :  { %v1992_v61 = vadd.f32 %v1990_v59, %v1982_v58 }
0x1350   :  { %2944 = vtanh.f32 %v1992_v61  ;;  %v2089_v57 = vrot.slane %v1992_v61, 6 }
0x135a   :  { %v2945_v62 = vpop.eup %2944 }
0x135b   :  { %1995 = vrot.lane.b32.xlu1 %v2945_v62, %s3379_s30 }
0x13cd   :  { %v1996_v63 = vpop.permute.xlu1 %1995 }
0x13ce   :  { %v1998_v3 = vmul.f32 %v2943_v52, %v1996_v63 }
0x13d0   :  { %2000 = vrot.lane.b32.xlu0 %v1998_v3, %s3382_s17 }
0x1442   :  { %v2001_v4 = vpop.permute.xlu0 %2000 }
0x1443   :  { %2003 = vst.msk [vmem:[#allocation30] sm:$0x3] %vm1462_vm7, %v2001_v4  ;;  %2671 = vmatmul.mubr.msk.f32.vlgmr.msra.gmra.mrb[20].mxu1 %vm1339_vm6, %v2001_v4 }
0x1444   :  { %2881 = vmatpush3.bf16.msra.mxu1 %v4093_v26  ;;  %2692 = vmatprep.mubr.msk.f32.mxu1 %vm3381_vm5, %v3377_v0 }
0x1445   :  { %2882 = vmatprep.subr.bf16.mxu1 %v3380_v32 }
0x1448   :  { %2884 = vmatpush3.bf16.msra.mxu1 %v4109_v30 }
0x1516   :  { %v2072_v5 = vpop.f32.mrb[20].mxu1 }
0x1517   :  { %v2077_v45 = vrot.slane %v2072_v5, 6  ;;  %v2672_v7 = vpop.f32.mrb[21].mxu1 }
0x1519   :  { %v2079_v8 = vadd.f32 %v2077_v45, %v4141_v50 }
0x151b   :  { %v2080_v9 = vsub.f32 0.0, %v2079_v8 }
0x151d   :  { %v2081_v10 = vmul.f32 1.442695, %v2080_v9 }
0x151f   :  { %2946 = vpow2.f32 %v2081_v10 }
0x1529   :  { %v2947_v12 = vpop.eup %2946 }
0x152a   :  { %v2083_v21 = vadd.f32 1.0, %v2947_v12 }
0x152c   :  { %2948 = vrcp.f32 %v2083_v21 }
0x1536   :  { %v2949_v23 = vpop.eup %2948 }
0x1537   :  { %v2086_v24 = vmul.f32 2.0, %v2949_v23  ;;  %v2091_v25 = vmul.f32 %v2949_v23, %v2089_v57 }
0x1539   :  { %v2412_v13 = vadd.f32 -1.0, %v2086_v24 }
0x153b   :  { %2093 = vrot.lane.b32.xlu1 %v2412_v13, %s3379_s30 }
0x15ad   :  { %v2094_v0 = vpop.permute.xlu1 %2093 }
0x15ae   :  { %v2096_v32 = vmul.f32 %v2949_v23, %v2094_v0 }
0x15b0   :  { %2098 = vrot.lane.b32.xlu0 %v2096_v32, %s3382_s17 }
0x1622   :  { %v2099_v26 = vpop.permute.xlu0 %2098 }
0x1623   :  { %v2101_v14 = vadd.f32 %v2099_v26, %v2091_v25 }
0x1625   :  { %2950 = vtanh.f32 %v2101_v14  ;;  %v2201_v18 = vrot.slane %v2101_v14, 6 }
0x162f   :  { %v2951_v60 = vpop.eup %2950 }
0x1630   :  { %2104 = vrot.lane.b32.xlu1 %v2951_v60, %s3379_s30 }
0x16a2   :  { %v2105_v20 = vpop.permute.xlu1 %2104 }
0x16a3   :  { %v2107_v27 = vmul.f32 %v2949_v23, %v2105_v20 }
0x16a5   :  { %v2113_v28 = vrot.slane %v2107_v27, 2 }
0x16a7   :  { %2114 = vrot.lane.b32.xlu0 %v2113_v28, %s3382_s17 }
0x1719   :  { %v2115_v29 = vpop.permute.xlu0 %2114 }
0x171a   :  { %2682 = vmatmul.mubr.msk.f32.vlgmr.msra.gmra.mrb[22].mxu0 %vm1339_vm6, %v2115_v29 }
0x17ed   :  { %v2184_v30 = vpop.f32.mrb[22].mxu0 }
0x17ee   :  { %v2189_v15 = vrot.slane %v2184_v30, 4  ;;  %v2683_v31 = vpop.f32.mrb[23].mxu0 }
0x17f0   :  { %v2191_v34 = vadd.f32 %v2189_v15, %v4141_v50 }
0x17f2   :  { %v2192_v17 = vsub.f32 0.0, %v2191_v34 }
0x17f4   :  { %v2193_v1 = vmul.f32 1.442695, %v2192_v17 }
0x17f6   :  { %2952 = vpow2.f32 %v2193_v1 }
0x1800   :  { %v2953_v33 = vpop.eup %2952 }
0x1801   :  { %v2195_v11 = vadd.f32 1.0, %v2953_v33 }
0x1803   :  { %2954 = vrcp.f32 %v2195_v11 }
0x180d   :  { %v2955_v35 = vpop.eup %2954 }
0x180e   :  { %v2198_v2 = vmul.f32 2.0, %v2955_v35  ;;  %v2203_v22 = vmul.f32 %v2955_v35, %v2201_v18 }
0x1810   :  { %v2414_v36 = vadd.f32 -1.0, %v2198_v2 }
0x1812   :  { %2205 = vrot.lane.b32.xlu1 %v2414_v36, %s3379_s30 }
0x1884   :  { %v2206_v16 = vpop.permute.xlu1 %2205 }
0x1885   :  { %v2208_v6 = vmul.f32 %v2955_v35, %v2206_v16 }
0x1887   :  { %2210 = vrot.lane.b32.xlu0 %v2208_v6, %s3382_s17 }
0x18f9   :  { %v2211_v19 = vpop.permute.xlu0 %2210 }
0x18fa   :  { %v2213_v37 = vadd.f32 %v2211_v19, %v2203_v22 }
0x18fc   :  { %2956 = vtanh.f32 %v2213_v37  ;;  %v2313_v59 = vrot.slane %v2213_v37, 6 }
0x1906   :  { %v2957_v38 = vpop.eup %2956 }
0x1907   :  { %2216 = vrot.lane.b32.xlu1 %v2957_v38, %s3379_s30 }
0x1979   :  { %v2217_v39 = vpop.permute.xlu1 %2216 }
0x197a   :  { %v2219_v40 = vmul.f32 %v2955_v35, %v2217_v39 }
0x197c   :  { %v2225_v41 = vrot.slane %v2219_v40, 4 }
0x197e   :  { %2226 = vrot.lane.b32.xlu0 %v2225_v41, %s3382_s17 }
0x19f0   :  { %v2227_v42 = vpop.permute.xlu0 %2226 }
0x19f1   :  { %2693 = vmatmul.mubr.msk.f32.vlgmr.msra.gmra.mrb[22].mxu1 %vm1339_vm6, %v2227_v42 }
0x1ac4   :  { %v2296_v43 = vpop.f32.mrb[22].mxu1 }
0x1ac5   :  { %v2301_v44 = vrot.slane %v2296_v43, 2  ;;  %v2694_v47 = vpop.f32.mrb[23].mxu1 }
0x1ac7   :  { %v2303_v48 = vadd.f32 %v2301_v44, %v4141_v50 }
0x1ac9   :  { %v2304_v46 = vsub.f32 0.0, %v2303_v48 }
0x1acb   :  { %v2305_v49 = vmul.f32 1.442695, %v2304_v46 }
0x1acd   :  { %2958 = vpow2.f32 %v2305_v49 }
0x1ad7   :  { %v2959_v51 = vpop.eup %2958 }
0x1ad8   :  { %v2307_v52 = vadd.f32 1.0, %v2959_v51 }
0x1ada   :  { %2960 = vrcp.f32 %v2307_v52 }
0x1ae4   :  { %v2961_v53 = vpop.eup %2960 }
0x1ae5   :  { %v2310_v54 = vmul.f32 2.0, %v2961_v53  ;;  %v2315_v61 = vmul.f32 %v2961_v53, %v2313_v59 }
0x1ae7   :  { %v2416_v55 = vadd.f32 -1.0, %v2310_v54 }
0x1ae9   :  { %2317 = vrot.lane.b32.xlu1 %v2416_v55, %s3379_s30 }
0x1b5b   :  { %v2318_v56 = vpop.permute.xlu1 %2317 }
0x1b5c   :  { %v2320_v58 = vmul.f32 %v2961_v53, %v2318_v56 }
0x1b5e   :  { %2322 = vrot.lane.b32.xlu0 %v2320_v58, %s3382_s17 }
0x1b62   :  { %2109 = vrot.lane.b32.xlu0 %v2107_v27, %s3382_s17 }
0x1bd0   :  { %v2323_v50 = vpop.permute.xlu0 %2322 }
0x1bd1   :  { %v2325_v62 = vadd.f32 %v2323_v50, %v2315_v61 }
0x1bd3   :  { %2962 = vtanh.f32 %v2325_v62 }
0x1bd4   :  { %v2110_v63 = vpop.permute.xlu0 %2109 }
0x1bd5   :  { %2112 = vst.msk [vmem:[#allocation30] sm:$0xc] %vm1578_vm8, %v2110_v63 }
0x1bdd   :  { %v2963_v3 = vpop.eup %2962 }
0x1bde   :  { %2328 = vrot.lane.b32.xlu1 %v2963_v3, %s3379_s30  ;;  %s3294_s30 = scalar_lea.vmem %s2345_s15, 128 }
0x1bdf   :  { %p3295_p8 = scmp.ne.s32.totalorder %s2345_s15, %s3294_s30  ;;  %p3300_p10 = scmp.lt.s32.totalorder %s3294_s30, %s3294_s30 }
0x1be1   :  { %p3301_p11 = por %p3300_p10, %p3299_p9 }
0x1be2   :  { %2221 = vrot.lane.b32.xlu1 %v2219_v40, %s3382_s17 }
0x1be3   :  { %p3302_p12 = pnand %p3301_p11, %p3295_p8 }
0x1c50   :  { %v2329_v4 = vpop.permute.xlu1 %2328 }
0x1c51   :  { %v2331_v5 = vmul.f32 %v2961_v53, %v2329_v4 }
0x1c53   :  { %2333 = vrot.lane.b32.xlu0 %v2331_v5, %s3382_s17 }
0x1c54   :  { %v2222_v45 = vpop.permute.xlu1 %2221 }
0x1c55   :  { %2224 = vst.msk [vmem:[#allocation30] sm:$0x30] %vm1695_vm9, %v2222_v45 }
0x1cc5   :  { %v2334_v7 = vpop.permute.xlu0 %2333 }
0x1cc6   :  { %2336 = vst.msk [vmem:[#allocation30] sm:$0xc0] %vm1812_vm10, %v2334_v7  ;;  %2337 = vst.msk [vmem:[#allocation31 - $0x6] sm:$0xc0] %vm1812_vm10, %v2334_v7 }
0x1cc7   :  { %3305 = shalt.err (!%p3302_p12)
}
0x1cc8   :  { %s3306_s0 = scalar_lea.hbm %s4229_s27, 128 }
0x1cc9   :  { %p3307_p13 = scmp.ne.s32.totalorder %s4229_s27, %s3306_s0  ;;  %p3310_p0 = scmp.lt.u32.totalorder %s3306_s0, %s4229_s27 }
0x1ccb   :  { %p3312_p1 = pnand %p3310_p0, %p3307_p13 }
0x1ccd   :  { %3315 = shalt.err (!%p3312_p1)
}
0x1cce   :  { %2347 = dma.vmem_to_hbm [thread:$0]  %s2345_s15, 128, %s4229_s27, [#allocation8]  }
0x1ccf   :  { %s3316_s16 = scalar_lea.vmem %s2355_s9, 32  ;;  %p3321_p3 = scmp.lt.s32.totalorder %s2355_s9, %s2355_s9 }
0x1cd0   :  { %p3317_p2 = scmp.ne.s32.totalorder %s2355_s9, %s3316_s16  ;;  %p3322_p4 = scmp.lt.s32.totalorder %s3316_s16, %s3316_s16 }
0x1cd2   :  { %p3323_p5 = por %p3322_p4, %p3321_p3 }
0x1cd4   :  { %p3324_p6 = pnand %p3323_p5, %p3317_p2 }
0x1cd6   :  { %3327 = shalt.err (!%p3324_p6)
}
0x1cd7   :  { %s4272_s14 = sld [smem:[#allocation56_spill]] }
0x1cdd   :  { %s3328_s3 = scalar_lea.hbm %s4272_s14, 32 }
0x1cde   :  { %p3329_p7 = scmp.ne.s32.totalorder %s4272_s14, %s3328_s3  ;;  %p3332_p8 = scmp.lt.u32.totalorder %s3328_s3, %s4272_s14 }
0x1ce0   :  { %p3334_p9 = pnand %p3332_p8, %p3329_p7 }
0x1ce2   :  { %3337 = shalt.err (!%p3334_p9)
}
0x1ce3   :  { %2357 = dma.vmem_to_hbm [thread:$0]  %s2355_s9, 32, %s4272_s14, [#allocation32]  }
0x1ce4   :  { %3354 = dma.done.wait [#allocation8], 128  }
0x1ce5   :  { %3355 = vsyncadd [#allocation8], 4294967168 }
0x1ce6   :  { %3356 = dma.done.wait [#allocation32], 32  }
0x1ce7   :  { %3357 = vsyncadd [#allocation32], 4294967264 }
0x1ce8   :  { %2364 = vsyncpa [#allocation7], 1 }
0x1ce9   :  { %2365 = vsyncpa [#allocation10], 1 }
0x1cea   :  { %2366 = vsyncpa [#allocation13], 1 }
0x1ceb   :  { %2367 = vsyncpa [#allocation16], 1 }
0x1cec   :  { %2368 = vsyncpa [#allocation19], 1 }
0x1ced   :  { %2369 = vsyncpa [#allocation22], 1 }
0x1cee   :  { %2370 = vsyncpa [#allocation25], 1 }
0x1cef   :  { %2371 = vsyncpa [#allocation28], 1 }
0x1cf0   :  { %2372 = vsyncpa [#allocation8], 1 }
0x1cf1   :  { %2373 = vsyncpa [#allocation32], 1 }

</bundles_post_ra>
